<compile_context>
chip_gen: v7x
topology: tpu7x:2x2x1
jax: 0.10.0
libtpu: 0.0.40
codegen_flags: <defaults>
</compile_context>

<pallas_src>
import math

import numpy as np
import jax
import jax.numpy as jnp
from jax import lax
from jax.experimental import pallas as pl
from jax.experimental.pallas import tpu as pltpu

# ---------------------------------------------------------------------------
# Model dimensions (small synthetic configuration).
# ---------------------------------------------------------------------------
T = 14                      # sequence length (14 days)
F_DIM = 6                   # feature_len
H = 16                      # hidden_size
A = 4                       # aux_len
N_CONT = 2                  # number of continents (synthetic)
CNT = 2                     # countries per continent
NC = N_CONT * CNT           # total countries = 4
GH = NC * H                 # 64  real hidden lanes (all countries)
GHP = 128                   # hidden lanes padded to one full vreg
G4P = 4 * GHP               # 512 gate-major stacked gate width (i|f|g|o)
FCN_IN = CNT * (H + A)      # 40
FCN_HID = 8
Z_REAL = N_CONT * FCN_HID   # 16 real z1 lanes
ZP = 128                    # z1 / cont padded lane width
OUT = 1                     # output_size
OUT_W = 128                 # merged output lane width

# LSTM slab row layout (lane width = G4P = 512).
WIH_R0 = 0                  # NC blocks of 8 rows each (F_DIM=6 rows used)
WHH_R0 = NC * 8             # 32  : W_hh, GHP rows
B_R0 = WHH_R0 + GHP         # 160 : merged LSTM bias (1 row)
R_LSTM = B_R0 + 8           # 168

# Head slab row layout (lane width = ZP = 128).
W1H_R0 = 0                  # relu(h) -> z1, GHP rows
W1A_R0 = W1H_R0 + GHP       # 128 : aux -> z1, NC blocks of 8 rows (A=4 used)
B1_R0 = W1A_R0 + NC * 8     # 160
W2_R0 = B1_R0 + 8           # 168 : z1 -> cont, ZP rows
B2_R0 = W2_R0 + ZP          # 296
M_R0 = B2_R0 + 8            # 304 : [I_cont | wt | 0], ZP rows
BT_R0 = M_R0 + ZP           # 432
R_HEAD = BT_R0 + 8          # 440


# ---------------------------------------------------------------------------
# Fused kernel: scrub -> hoisted input projection -> batched LSTM recurrence
#               -> relu -> stacked FCN heads -> merged lane-dense output.
# ---------------------------------------------------------------------------
def _fused_kernel(x_ref, aux_ref, lstm_ref, head_ref, out_ref, xg_ref):
    f32 = jnp.float32

    # 1. Hoisted input projection for every step of every country at once,
    #    consuming x in its native (NC, T, F) layout (no transpose anywhere):
    #    xg[t] = sum_k scrub(x[k, t, :]) @ Wih_k   (gate-major, 128-aligned).
    xg = None
    for k in range(NC):
        xk = x_ref[k]                                           # (T, F)
        xk = jnp.where(jnp.isfinite(xk), xk, 0.0)               # nan/inf -> 0
        d = jnp.dot(xk,
                    lstm_ref[WIH_R0 + k * 8: WIH_R0 + k * 8 + F_DIM, :],
                    preferred_element_type=f32)                 # (T, G4P)
        xg = d if xg is None else xg + d
    # Stage in VMEM scratch; per-step rows come back as plain vector loads.
    xg_ref[...] = xg + lstm_ref[B_R0:B_R0 + 1, :]

    # 2. Block-diagonal batched single-layer LSTM recurrence, fully unrolled.
    #    W_hh is (GHP, G4P) with zero rows/cols for the padded lanes.
    # TODO(synk): hold W_hh in MXU weight registers via pltpu.matmul_push_rhs;
    # relying on Mosaic to hoist the weight push out of the unrolled loop.
    whh = lstm_ref[WHH_R0:WHH_R0 + GHP, :]                      # (128, 512)
    h = jnp.zeros((1, GHP), f32)
    c = jnp.zeros((1, GHP), f32)
    for t in range(T):                                          # static unroll
        g = xg_ref[t:t + 1, :] + jnp.dot(h, whh,
                                         preferred_element_type=f32)
        i_g = jax.nn.sigmoid(g[:, 0 * GHP:1 * GHP])             # full vregs,
        f_g = jax.nn.sigmoid(g[:, 1 * GHP:2 * GHP])             # 128-aligned
        g_g = jnp.tanh(g[:, 2 * GHP:3 * GHP])
        o_g = jax.nn.sigmoid(g[:, 3 * GHP:4 * GHP])
        c = f_g * c + i_g * g_g
        h = o_g * jnp.tanh(c)
    # Padding lanes (64..127) of h/c stay exactly 0 because their weights and
    # biases are 0 and c starts at 0.

    h = jnp.maximum(h, 0.0)                                     # F.relu(h_T)

    # 3. Stacked per-continent FCN head (Linear->ReLU->Linear->ReLU), all
    #    weights 128-lane padded; aux enters via its own small matmuls so no
    #    concat / reshape is needed.
    z1 = jnp.dot(h, head_ref[W1H_R0:W1H_R0 + GHP, :],
                 preferred_element_type=jnp.float32)            # (1, 128)
    for k in range(NC):
        z1 = z1 + jnp.dot(aux_ref[k:k + 1, :],
                          head_ref[W1A_R0 + k * 8: W1A_R0 + k * 8 + A, :],
                          preferred_element_type=jnp.float32)
    z1 = jnp.maximum(z1 + head_ref[B1_R0:B1_R0 + 1, :], 0.0)
    cont = jnp.maximum(
        jnp.dot(z1, head_ref[W2_R0:W2_R0 + ZP, :],
                preferred_element_type=jnp.float32)
        + head_ref[B2_R0:B2_R0 + 1, :], 0.0)                    # (1, 128)

    # 4. Merged lane-dense output: out = cont @ [I_cont | wt | 0] + bt_pad
    #    -> lanes [0, N_CONT) = continent preds, lane N_CONT = total pred.
    out_ref[...] = (jnp.dot(cont, head_ref[M_R0:M_R0 + ZP, :],
                            preferred_element_type=jnp.float32)
                    + head_ref[BT_R0:BT_R0 + 1, :])


@jax.jit
def covid_aux_net(x, aux, lstm_slab, head_slab):
    """Returns the merged (1, OUT_W) output row.

    lanes [0, N_CONT*OUT): continent_patients_pred
    lanes [N_CONT*OUT, N_CONT*OUT+OUT): total_patients_pred
    (split on host to avoid any extra XLA glue around the fused kernel)
    """
    vmem = pl.BlockSpec(memory_space=pltpu.MemorySpace.VMEM)
    return pl.pallas_call(
        _fused_kernel,
        out_shape=jax.ShapeDtypeStruct((1, OUT_W), jnp.float32),
        in_specs=[vmem, vmem, vmem, vmem],
        out_specs=vmem,
        scratch_shapes=[pltpu.VMEM((T, G4P), jnp.float32)],
    )(x, aux, lstm_slab, head_slab)


# ---------------------------------------------------------------------------
# Parameter init (per-country / per-continent "PyTorch" layout) and one-time
# host-side packing into the two padded, gate-major slabs the kernel consumes.
# ---------------------------------------------------------------------------
def init_params(key):
    ks = jax.random.split(key, 9)
    s = 1.0 / math.sqrt(H)
    u = lambda k, shp, lim: jax.random.uniform(k, shp, jnp.float32, -lim, lim)
    return {
        "w_ih": u(ks[0], (NC, F_DIM, 4 * H), s),
        "w_hh": u(ks[1], (NC, H, 4 * H), s),
        "b_lstm": u(ks[2], (NC, 1, 4 * H), s),        # b_ih + b_hh merged
        "w1": u(ks[3], (N_CONT, FCN_IN, FCN_HID), 1.0 / math.sqrt(FCN_IN)),
        "b1": u(ks[4], (N_CONT, 1, FCN_HID), 1.0 / math.sqrt(FCN_IN)),
        "w2": u(ks[5], (N_CONT, FCN_HID, OUT), 1.0 / math.sqrt(FCN_HID)),
        "b2": u(ks[6], (N_CONT, 1, OUT), 1.0 / math.sqrt(FCN_HID)),
        "wt": u(ks[7], (N_CONT * OUT, OUT), 1.0 / math.sqrt(N_CONT)),
        "bt": u(ks[8], (1, OUT), 1.0 / math.sqrt(N_CONT)),
    }


def pack_params(params):
    """One-time host-side repack into two padded slabs (LSTM slab, head slab)."""
    w_ih = np.asarray(params["w_ih"])     # (NC, F, 4H)
    w_hh = np.asarray(params["w_hh"])     # (NC, H, 4H)
    b_l = np.asarray(params["b_lstm"])    # (NC, 1, 4H)

    # --- LSTM slab: lane width G4P, gate-major columns, 128-lane aligned ---
    lstm = np.zeros((R_LSTM, G4P), np.float32)
    for k in range(NC):
        for g in range(4):                            # gate order i, f, g, o
            col = g * GHP + k * H
            lstm[WIH_R0 + k * 8: WIH_R0 + k * 8 + F_DIM, col:col + H] = \
                w_ih[k][:, g * H:(g + 1) * H]
            lstm[WHH_R0 + k * H: WHH_R0 + (k + 1) * H, col:col + H] = \
                w_hh[k][:, g * H:(g + 1) * H]
            lstm[B_R0, col:col + H] = b_l[k][0, g * H:(g + 1) * H]

    # --- Head slab: lane width ZP; z1/cont are continent-major, zero-padded ---
    w1 = np.asarray(params["w1"])
    b1 = np.asarray(params["b1"])
    w2 = np.asarray(params["w2"])
    b2 = np.asarray(params["b2"])
    wt = np.asarray(params["wt"])
    bt = np.asarray(params["bt"])

    head = np.zeros((R_HEAD, ZP), np.float32)
    for c_ in range(N_CONT):
        zc = c_ * FCN_HID
        for p_ in range(CNT):
            k = c_ * CNT + p_
            # hidden rows of country k -> W1h rows [k*H, (k+1)*H)
            head[W1H_R0 + k * H: W1H_R0 + (k + 1) * H, zc:zc + FCN_HID] = \
                w1[c_][p_ * (H + A): p_ * (H + A) + H, :]
            # aux rows of country k -> W1a block (8 rows per country, A used)
            head[W1A_R0 + k * 8: W1A_R0 + k * 8 + A, zc:zc + FCN_HID] = \
                w1[c_][p_ * (H + A) + H: (p_ + 1) * (H + A), :]
        head[B1_R0, zc:zc + FCN_HID] = b1[c_][0]
        head[W2_R0 + zc: W2_R0 + zc + FCN_HID, c_ * OUT:(c_ + 1) * OUT] = w2[c_]
        head[B2_R0, c_ * OUT:(c_ + 1) * OUT] = b2[c_][0]
    # Final combine M = [I_cont | wt | 0] and its bias (total head).
    for j in range(N_CONT * OUT):
        head[M_R0 + j, j] = 1.0
    head[M_R0: M_R0 + N_CONT * OUT, N_CONT * OUT: N_CONT * OUT + OUT] = wt
    head[BT_R0, N_CONT * OUT: N_CONT * OUT + OUT] = bt[0]

    return jnp.asarray(lstm), jnp.asarray(head)


# ---------------------------------------------------------------------------
# Pure-JAX reference (original per-country / per-continent layout)
# ---------------------------------------------------------------------------
def ref_forward(x, aux, params):
    x = jnp.where(jnp.isfinite(x), x, 0.0)

    def lstm_one(xc, wih, whh, b):
        def step(carry, xt):
            h, c = carry
            gates = xt[None, :] @ wih + h @ whh + b
            i = jax.nn.sigmoid(gates[:, :H])
            f = jax.nn.sigmoid(gates[:, H:2 * H])
            g = jnp.tanh(gates[:, 2 * H:3 * H])
            o = jax.nn.sigmoid(gates[:, 3 * H:])
            c = f * c + i * g
            h = o * jnp.tanh(c)
            return (h, c), None
        (h, _), _ = lax.scan(step,
                             (jnp.zeros((1, H)), jnp.zeros((1, H))), xc)
        return jnp.maximum(h[0], 0.0)

    h = jax.vmap(lstm_one)(x, params["w_ih"], params["w_hh"],
                           params["b_lstm"])
    hc = jnp.concatenate([h, aux], axis=1).reshape(N_CONT, FCN_IN)
    z1 = jnp.maximum(jnp.einsum("kd,kdh->kh", hc, params["w1"])
                     + params["b1"][:, 0, :], 0.0)
    cont = jnp.maximum(jnp.einsum("kh,kho->ko", z1, params["w2"])
                       + params["b2"][:, 0, :], 0.0)[:, 0]
    tot = cont[None, :] @ params["wt"] + params["bt"]
    return cont, tot[0]


if __name__ == "__main__":
    key = jax.random.PRNGKey(0)
    k_x, k_aux, k_p = jax.random.split(key, 3)

    x = jax.random.normal(k_x, (NC, T, F_DIM), jnp.float32)
    # exercise the nan/inf scrubbing path
    x = x.at[0, 0, 0].set(jnp.nan)
    x = x.at[1, 3, 2].set(jnp.inf)
    aux = jax.random.normal(k_aux, (NC, A), jnp.float32)

    params = init_params(k_p)
    lstm_slab, head_slab = pack_params(params)    # one-time host-side repack

    out = covid_aux_net(x, aux, lstm_slab, head_slab)
    jax.block_until_ready(out)

    out_h = np.asarray(out)
    cont_pred = out_h[0, :N_CONT * OUT]                       # (N_CONT,)
    total_pred = out_h[0, N_CONT * OUT: N_CONT * OUT + OUT]   # (OUT,)

    cont_ref, total_ref = ref_forward(x, aux, params)
    cont_ref = np.asarray(cont_ref)
    total_ref = np.asarray(total_ref)

    assert cont_pred.shape == (N_CONT,) and total_pred.shape == (OUT,)
    assert np.allclose(cont_pred, cont_ref, atol=2e-2, rtol=2e-2)
    assert np.allclose(total_pred, total_ref, atol=2e-2, rtol=2e-2)
    # Padded output lanes must stay exactly zero (nothing leaks from padding).
    assert np.allclose(out_h[0, N_CONT * OUT + OUT:], 0.0, atol=1e-5)

    print("KERNEL_OK")
</pallas_src>

<mosaic_0001>
module attributes {stable_mosaic.version = 11 : i64} {
  func.func @_fused_kernel(%arg0: memref<4x14x6xf32, #tpu.memory_space<vmem>>, %arg1: memref<4x4xf32, #tpu.memory_space<vmem>>, %arg2: memref<168x512xf32, #tpu.memory_space<vmem>>, %arg3: memref<440x128xf32, #tpu.memory_space<vmem>>, %arg4: memref<1x128xf32, #tpu.memory_space<vmem>>, %arg5: memref<14x512xf32, #tpu.memory_space<vmem>>) attributes {dimension_semantics = [], scalar_prefetch = 0 : i64, scratch_operands = 1 : i64, tpu.core_type = #tpu.core_type<tc>} {
    %c0 = arith.constant 0 : index
    %c0_0 = arith.constant 0 : index
    %c0_1 = arith.constant 0 : index
    %0 = vector.load %arg0[%c0, %c0_0, %c0_1] : memref<4x14x6xf32, #tpu.memory_space<vmem>>, vector<1x14x6xf32>
    %1 = vector.shape_cast %0 : vector<1x14x6xf32> to vector<14x6xf32>
    %2 = tpu.weird %1 : vector<14x6xf32> -> vector<14x6xi1>
    %cst = arith.constant dense<true> : vector<14x6xi1>
    %3 = arith.xori %2, %cst : vector<14x6xi1>
    %cst_2 = arith.constant 0.000000e+00 : f32
    %4 = vector.broadcast %cst_2 : f32 to vector<14x6xf32>
    %5 = arith.select %3, %1, %4 : vector<14x6xi1>, vector<14x6xf32>
    %c0_3 = arith.constant 0 : index
    %c0_4 = arith.constant 0 : index
    %6 = vector.load %arg2[%c0_3, %c0_4] : memref<168x512xf32, #tpu.memory_space<vmem>>, vector<6x512xf32>
    %cst_5 = arith.constant dense<0.000000e+00> : vector<14x512xf32>
    %7 = tpu.matmul %5, %6, %cst_5 {dimension_numbers = #tpu.dot_dimension_numbers<[1], [0], [0], [1], [0, 0, 1, 1], [], []>} : vector<14x6xf32>, vector<6x512xf32>, vector<14x512xf32> -> vector<14x512xf32>
    %c1 = arith.constant 1 : index
    %c0_6 = arith.constant 0 : index
    %c0_7 = arith.constant 0 : index
    %8 = vector.load %arg0[%c1, %c0_6, %c0_7] : memref<4x14x6xf32, #tpu.memory_space<vmem>>, vector<1x14x6xf32>
    %9 = vector.shape_cast %8 : vector<1x14x6xf32> to vector<14x6xf32>
    %10 = tpu.weird %9 : vector<14x6xf32> -> vector<14x6xi1>
    %cst_8 = arith.constant dense<true> : vector<14x6xi1>
    %11 = arith.xori %10, %cst_8 : vector<14x6xi1>
    %cst_9 = arith.constant 0.000000e+00 : f32
    %12 = vector.broadcast %cst_9 : f32 to vector<14x6xf32>
    %13 = arith.select %11, %9, %12 : vector<14x6xi1>, vector<14x6xf32>
    %c8 = arith.constant 8 : index
    %c0_10 = arith.constant 0 : index
    %14 = vector.load %arg2[%c8, %c0_10] : memref<168x512xf32, #tpu.memory_space<vmem>>, vector<6x512xf32>
    %cst_11 = arith.constant dense<0.000000e+00> : vector<14x512xf32>
    %15 = tpu.matmul %13, %14, %cst_11 {dimension_numbers = #tpu.dot_dimension_numbers<[1], [0], [0], [1], [0, 0, 1, 1], [], []>} : vector<14x6xf32>, vector<6x512xf32>, vector<14x512xf32> -> vector<14x512xf32>
    %16 = arith.addf %7, %15 : vector<14x512xf32>
    %c2 = arith.constant 2 : index
    %c0_12 = arith.constant 0 : index
    %c0_13 = arith.constant 0 : index
    %17 = vector.load %arg0[%c2, %c0_12, %c0_13] : memref<4x14x6xf32, #tpu.memory_space<vmem>>, vector<1x14x6xf32>
    %18 = vector.shape_cast %17 : vector<1x14x6xf32> to vector<14x6xf32>
    %19 = tpu.weird %18 : vector<14x6xf32> -> vector<14x6xi1>
    %cst_14 = arith.constant dense<true> : vector<14x6xi1>
    %20 = arith.xori %19, %cst_14 : vector<14x6xi1>
    %cst_15 = arith.constant 0.000000e+00 : f32
    %21 = vector.broadcast %cst_15 : f32 to vector<14x6xf32>
    %22 = arith.select %20, %18, %21 : vector<14x6xi1>, vector<14x6xf32>
    %c16 = arith.constant 16 : index
    %c0_16 = arith.constant 0 : index
    %23 = vector.load %arg2[%c16, %c0_16] : memref<168x512xf32, #tpu.memory_space<vmem>>, vector<6x512xf32>
    %cst_17 = arith.constant dense<0.000000e+00> : vector<14x512xf32>
    %24 = tpu.matmul %22, %23, %cst_17 {dimension_numbers = #tpu.dot_dimension_numbers<[1], [0], [0], [1], [0, 0, 1, 1], [], []>} : vector<14x6xf32>, vector<6x512xf32>, vector<14x512xf32> -> vector<14x512xf32>
    %25 = arith.addf %16, %24 : vector<14x512xf32>
    %c3 = arith.constant 3 : index
    %c0_18 = arith.constant 0 : index
    %c0_19 = arith.constant 0 : index
    %26 = vector.load %arg0[%c3, %c0_18, %c0_19] : memref<4x14x6xf32, #tpu.memory_space<vmem>>, vector<1x14x6xf32>
    %27 = vector.shape_cast %26 : vector<1x14x6xf32> to vector<14x6xf32>
    %28 = tpu.weird %27 : vector<14x6xf32> -> vector<14x6xi1>
    %cst_20 = arith.constant dense<true> : vector<14x6xi1>
    %29 = arith.xori %28, %cst_20 : vector<14x6xi1>
    %cst_21 = arith.constant 0.000000e+00 : f32
    %30 = vector.broadcast %cst_21 : f32 to vector<14x6xf32>
    %31 = arith.select %29, %27, %30 : vector<14x6xi1>, vector<14x6xf32>
    %c24 = arith.constant 24 : index
    %c0_22 = arith.constant 0 : index
    %32 = vector.load %arg2[%c24, %c0_22] : memref<168x512xf32, #tpu.memory_space<vmem>>, vector<6x512xf32>
    %cst_23 = arith.constant dense<0.000000e+00> : vector<14x512xf32>
    %33 = tpu.matmul %31, %32, %cst_23 {dimension_numbers = #tpu.dot_dimension_numbers<[1], [0], [0], [1], [0, 0, 1, 1], [], []>} : vector<14x6xf32>, vector<6x512xf32>, vector<14x512xf32> -> vector<14x512xf32>
    %34 = arith.addf %25, %33 : vector<14x512xf32>
    %c160 = arith.constant 160 : index
    %c0_24 = arith.constant 0 : index
    %35 = vector.load %arg2[%c160, %c0_24] : memref<168x512xf32, #tpu.memory_space<vmem>>, vector<1x512xf32>
    %36 = vector.broadcast %35 : vector<1x512xf32> to vector<14x512xf32>
    %37 = arith.addf %34, %36 : vector<14x512xf32>
    %c0_25 = arith.constant 0 : index
    %c0_26 = arith.constant 0 : index
    %38 = vector.load %arg5[%c0_25, %c0_26] : memref<14x512xf32, #tpu.memory_space<vmem>>, vector<14x512xf32>
    tpu.vector_store %arg5[%c0_25, %c0_26], %37 {strides = array<i32>} : memref<14x512xf32, #tpu.memory_space<vmem>>, vector<14x512xf32>,
    %c32 = arith.constant 32 : index
    %c0_27 = arith.constant 0 : index
    %39 = vector.load %arg2[%c32, %c0_27] : memref<168x512xf32, #tpu.memory_space<vmem>>, vector<128x512xf32>
    %cst_28 = arith.constant 0.000000e+00 : f32
    %40 = vector.broadcast %cst_28 : f32 to vector<1x128xf32>
    %cst_29 = arith.constant 0.000000e+00 : f32
    %41 = vector.broadcast %cst_29 : f32 to vector<1x128xf32>
    %c0_30 = arith.constant 0 : index
    %c0_31 = arith.constant 0 : index
    %42 = vector.load %arg5[%c0_30, %c0_31] : memref<14x512xf32, #tpu.memory_space<vmem>>, vector<1x512xf32>
    %cst_32 = arith.constant dense<0.000000e+00> : vector<1x512xf32>
    %43 = tpu.matmul %40, %39, %cst_32 {dimension_numbers = #tpu.dot_dimension_numbers<[1], [0], [0], [1], [0, 0, 1, 1], [], []>} : vector<1x128xf32>, vector<128x512xf32>, vector<1x512xf32> -> vector<1x512xf32>
    %44 = arith.addf %42, %43 : vector<1x512xf32>
    %45 = vector.extract_strided_slice %44 {offsets = [0, 0], sizes = [1, 128], strides = [1, 1]} : vector<1x512xf32> to vector<1x128xf32>
    %46 = arith.negf %45 : vector<1x128xf32>
    %47 = math.exp %46 : vector<1x128xf32>
    %cst_33 = arith.constant 1.000000e+00 : f32
    %48 = vector.broadcast %cst_33 : f32 to vector<1x128xf32>
    %49 = arith.addf %48, %47 : vector<1x128xf32>
    %50 = arith.divf %48, %49 : vector<1x128xf32>
    %51 = vector.extract_strided_slice %44 {offsets = [0, 128], sizes = [1, 128], strides = [1, 1]} : vector<1x512xf32> to vector<1x128xf32>
    %52 = arith.negf %51 : vector<1x128xf32>
    %53 = math.exp %52 : vector<1x128xf32>
    %cst_34 = arith.constant 1.000000e+00 : f32
    %54 = vector.broadcast %cst_34 : f32 to vector<1x128xf32>
    %55 = arith.addf %54, %53 : vector<1x128xf32>
    %56 = arith.divf %54, %55 : vector<1x128xf32>
    %57 = vector.extract_strided_slice %44 {offsets = [0, 256], sizes = [1, 128], strides = [1, 1]} : vector<1x512xf32> to vector<1x128xf32>
    %58 = math.tanh %57 : vector<1x128xf32>
    %59 = vector.extract_strided_slice %44 {offsets = [0, 384], sizes = [1, 128], strides = [1, 1]} : vector<1x512xf32> to vector<1x128xf32>
    %60 = arith.negf %59 : vector<1x128xf32>
    %61 = math.exp %60 : vector<1x128xf32>
    %cst_35 = arith.constant 1.000000e+00 : f32
    %62 = vector.broadcast %cst_35 : f32 to vector<1x128xf32>
    %63 = arith.addf %62, %61 : vector<1x128xf32>
    %64 = arith.divf %62, %63 : vector<1x128xf32>
    %65 = arith.mulf %56, %41 : vector<1x128xf32>
    %66 = arith.mulf %50, %58 : vector<1x128xf32>
    %67 = arith.addf %65, %66 : vector<1x128xf32>
    %68 = math.tanh %67 : vector<1x128xf32>
    %69 = arith.mulf %64, %68 : vector<1x128xf32>
    %c1_36 = arith.constant 1 : index
    %c0_37 = arith.constant 0 : index
    %70 = vector.load %arg5[%c1_36, %c0_37] : memref<14x512xf32, #tpu.memory_space<vmem>>, vector<1x512xf32>
    %cst_38 = arith.constant dense<0.000000e+00> : vector<1x512xf32>
    %71 = tpu.matmul %69, %39, %cst_38 {dimension_numbers = #tpu.dot_dimension_numbers<[1], [0], [0], [1], [0, 0, 1, 1], [], []>} : vector<1x128xf32>, vector<128x512xf32>, vector<1x512xf32> -> vector<1x512xf32>
    %72 = arith.addf %70, %71 : vector<1x512xf32>
    %73 = vector.extract_strided_slice %72 {offsets = [0, 0], sizes = [1, 128], strides = [1, 1]} : vector<1x512xf32> to vector<1x128xf32>
    %74 = arith.negf %73 : vector<1x128xf32>
    %75 = math.exp %74 : vector<1x128xf32>
    %cst_39 = arith.constant 1.000000e+00 : f32
    %76 = vector.broadcast %cst_39 : f32 to vector<1x128xf32>
    %77 = arith.addf %76, %75 : vector<1x128xf32>
    %78 = arith.divf %76, %77 : vector<1x128xf32>
    %79 = vector.extract_strided_slice %72 {offsets = [0, 128], sizes = [1, 128], strides = [1, 1]} : vector<1x512xf32> to vector<1x128xf32>
    %80 = arith.negf %79 : vector<1x128xf32>
    %81 = math.exp %80 : vector<1x128xf32>
    %cst_40 = arith.constant 1.000000e+00 : f32
    %82 = vector.broadcast %cst_40 : f32 to vector<1x128xf32>
    %83 = arith.addf %82, %81 : vector<1x128xf32>
    %84 = arith.divf %82, %83 : vector<1x128xf32>
    %85 = vector.extract_strided_slice %72 {offsets = [0, 256], sizes = [1, 128], strides = [1, 1]} : vector<1x512xf32> to vector<1x128xf32>
    %86 = math.tanh %85 : vector<1x128xf32>
    %87 = vector.extract_strided_slice %72 {offsets = [0, 384], sizes = [1, 128], strides = [1, 1]} : vector<1x512xf32> to vector<1x128xf32>
    %88 = arith.negf %87 : vector<1x128xf32>
    %89 = math.exp %88 : vector<1x128xf32>
    %cst_41 = arith.constant 1.000000e+00 : f32
    %90 = vector.broadcast %cst_41 : f32 to vector<1x128xf32>
    %91 = arith.addf %90, %89 : vector<1x128xf32>
    %92 = arith.divf %90, %91 : vector<1x128xf32>
    %93 = arith.mulf %84, %67 : vector<1x128xf32>
    %94 = arith.mulf %78, %86 : vector<1x128xf32>
    %95 = arith.addf %93, %94 : vector<1x128xf32>
    %96 = math.tanh %95 : vector<1x128xf32>
    %97 = arith.mulf %92, %96 : vector<1x128xf32>
    %c2_42 = arith.constant 2 : index
    %c0_43 = arith.constant 0 : index
    %98 = vector.load %arg5[%c2_42, %c0_43] : memref<14x512xf32, #tpu.memory_space<vmem>>, vector<1x512xf32>
    %cst_44 = arith.constant dense<0.000000e+00> : vector<1x512xf32>
    %99 = tpu.matmul %97, %39, %cst_44 {dimension_numbers = #tpu.dot_dimension_numbers<[1], [0], [0], [1], [0, 0, 1, 1], [], []>} : vector<1x128xf32>, vector<128x512xf32>, vector<1x512xf32> -> vector<1x512xf32>
    %100 = arith.addf %98, %99 : vector<1x512xf32>
    %101 = vector.extract_strided_slice %100 {offsets = [0, 0], sizes = [1, 128], strides = [1, 1]} : vector<1x512xf32> to vector<1x128xf32>
    %102 = arith.negf %101 : vector<1x128xf32>
    %103 = math.exp %102 : vector<1x128xf32>
    %cst_45 = arith.constant 1.000000e+00 : f32
    %104 = vector.broadcast %cst_45 : f32 to vector<1x128xf32>
    %105 = arith.addf %104, %103 : vector<1x128xf32>
    %106 = arith.divf %104, %105 : vector<1x128xf32>
    %107 = vector.extract_strided_slice %100 {offsets = [0, 128], sizes = [1, 128], strides = [1, 1]} : vector<1x512xf32> to vector<1x128xf32>
    %108 = arith.negf %107 : vector<1x128xf32>
    %109 = math.exp %108 : vector<1x128xf32>
    %cst_46 = arith.constant 1.000000e+00 : f32
    %110 = vector.broadcast %cst_46 : f32 to vector<1x128xf32>
    %111 = arith.addf %110, %109 : vector<1x128xf32>
    %112 = arith.divf %110, %111 : vector<1x128xf32>
    %113 = vector.extract_strided_slice %100 {offsets = [0, 256], sizes = [1, 128], strides = [1, 1]} : vector<1x512xf32> to vector<1x128xf32>
    %114 = math.tanh %113 : vector<1x128xf32>
    %115 = vector.extract_strided_slice %100 {offsets = [0, 384], sizes = [1, 128], strides = [1, 1]} : vector<1x512xf32> to vector<1x128xf32>
    %116 = arith.negf %115 : vector<1x128xf32>
    %117 = math.exp %116 : vector<1x128xf32>
    %cst_47 = arith.constant 1.000000e+00 : f32
    %118 = vector.broadcast %cst_47 : f32 to vector<1x128xf32>
    %119 = arith.addf %118, %117 : vector<1x128xf32>
    %120 = arith.divf %118, %119 : vector<1x128xf32>
    %121 = arith.mulf %112, %95 : vector<1x128xf32>
    %122 = arith.mulf %106, %114 : vector<1x128xf32>
    %123 = arith.addf %121, %122 : vector<1x128xf32>
    %124 = math.tanh %123 : vector<1x128xf32>
    %125 = arith.mulf %120, %124 : vector<1x128xf32>
    %c3_48 = arith.constant 3 : index
    %c0_49 = arith.constant 0 : index
    %126 = vector.load %arg5[%c3_48, %c0_49] : memref<14x512xf32, #tpu.memory_space<vmem>>, vector<1x512xf32>
    %cst_50 = arith.constant dense<0.000000e+00> : vector<1x512xf32>
    %127 = tpu.matmul %125, %39, %cst_50 {dimension_numbers = #tpu.dot_dimension_numbers<[1], [0], [0], [1], [0, 0, 1, 1], [], []>} : vector<1x128xf32>, vector<128x512xf32>, vector<1x512xf32> -> vector<1x512xf32>
    %128 = arith.addf %126, %127 : vector<1x512xf32>
    %129 = vector.extract_strided_slice %128 {offsets = [0, 0], sizes = [1, 128], strides = [1, 1]} : vector<1x512xf32> to vector<1x128xf32>
    %130 = arith.negf %129 : vector<1x128xf32>
    %131 = math.exp %130 : vector<1x128xf32>
    %cst_51 = arith.constant 1.000000e+00 : f32
    %132 = vector.broadcast %cst_51 : f32 to vector<1x128xf32>
    %133 = arith.addf %132, %131 : vector<1x128xf32>
    %134 = arith.divf %132, %133 : vector<1x128xf32>
    %135 = vector.extract_strided_slice %128 {offsets = [0, 128], sizes = [1, 128], strides = [1, 1]} : vector<1x512xf32> to vector<1x128xf32>
    %136 = arith.negf %135 : vector<1x128xf32>
    %137 = math.exp %136 : vector<1x128xf32>
    %cst_52 = arith.constant 1.000000e+00 : f32
    %138 = vector.broadcast %cst_52 : f32 to vector<1x128xf32>
    %139 = arith.addf %138, %137 : vector<1x128xf32>
    %140 = arith.divf %138, %139 : vector<1x128xf32>
    %141 = vector.extract_strided_slice %128 {offsets = [0, 256], sizes = [1, 128], strides = [1, 1]} : vector<1x512xf32> to vector<1x128xf32>
    %142 = math.tanh %141 : vector<1x128xf32>
    %143 = vector.extract_strided_slice %128 {offsets = [0, 384], sizes = [1, 128], strides = [1, 1]} : vector<1x512xf32> to vector<1x128xf32>
    %144 = arith.negf %143 : vector<1x128xf32>
    %145 = math.exp %144 : vector<1x128xf32>
    %cst_53 = arith.constant 1.000000e+00 : f32
    %146 = vector.broadcast %cst_53 : f32 to vector<1x128xf32>
    %147 = arith.addf %146, %145 : vector<1x128xf32>
    %148 = arith.divf %146, %147 : vector<1x128xf32>
    %149 = arith.mulf %140, %123 : vector<1x128xf32>
    %150 = arith.mulf %134, %142 : vector<1x128xf32>
    %151 = arith.addf %149, %150 : vector<1x128xf32>
    %152 = math.tanh %151 : vector<1x128xf32>
    %153 = arith.mulf %148, %152 : vector<1x128xf32>
    %c4 = arith.constant 4 : index
    %c0_54 = arith.constant 0 : index
    %154 = vector.load %arg5[%c4, %c0_54] : memref<14x512xf32, #tpu.memory_space<vmem>>, vector<1x512xf32>
    %cst_55 = arith.constant dense<0.000000e+00> : vector<1x512xf32>
    %155 = tpu.matmul %153, %39, %cst_55 {dimension_numbers = #tpu.dot_dimension_numbers<[1], [0], [0], [1], [0, 0, 1, 1], [], []>} : vector<1x128xf32>, vector<128x512xf32>, vector<1x512xf32> -> vector<1x512xf32>
    %156 = arith.addf %154, %155 : vector<1x512xf32>
    %157 = vector.extract_strided_slice %156 {offsets = [0, 0], sizes = [1, 128], strides = [1, 1]} : vector<1x512xf32> to vector<1x128xf32>
    %158 = arith.negf %157 : vector<1x128xf32>
    %159 = math.exp %158 : vector<1x128xf32>
    %cst_56 = arith.constant 1.000000e+00 : f32
    %160 = vector.broadcast %cst_56 : f32 to vector<1x128xf32>
    %161 = arith.addf %160, %159 : vector<1x128xf32>
    %162 = arith.divf %160, %161 : vector<1x128xf32>
    %163 = vector.extract_strided_slice %156 {offsets = [0, 128], sizes = [1, 128], strides = [1, 1]} : vector<1x512xf32> to vector<1x128xf32>
    %164 = arith.negf %163 : vector<1x128xf32>
    %165 = math.exp %164 : vector<1x128xf32>
    %cst_57 = arith.constant 1.000000e+00 : f32
    %166 = vector.broadcast %cst_57 : f32 to vector<1x128xf32>
    %167 = arith.addf %166, %165 : vector<1x128xf32>
    %168 = arith.divf %166, %167 : vector<1x128xf32>
    %169 = vector.extract_strided_slice %156 {offsets = [0, 256], sizes = [1, 128], strides = [1, 1]} : vector<1x512xf32> to vector<1x128xf32>
    %170 = math.tanh %169 : vector<1x128xf32>
    %171 = vector.extract_strided_slice %156 {offsets = [0, 384], sizes = [1, 128], strides = [1, 1]} : vector<1x512xf32> to vector<1x128xf32>
    %172 = arith.negf %171 : vector<1x128xf32>
    %173 = math.exp %172 : vector<1x128xf32>
    %cst_58 = arith.constant 1.000000e+00 : f32
    %174 = vector.broadcast %cst_58 : f32 to vector<1x128xf32>
    %175 = arith.addf %174, %173 : vector<1x128xf32>
    %176 = arith.divf %174, %175 : vector<1x128xf32>
    %177 = arith.mulf %168, %151 : vector<1x128xf32>
    %178 = arith.mulf %162, %170 : vector<1x128xf32>
    %179 = arith.addf %177, %178 : vector<1x128xf32>
    %180 = math.tanh %179 : vector<1x128xf32>
    %181 = arith.mulf %176, %180 : vector<1x128xf32>
    %c5 = arith.constant 5 : index
    %c0_59 = arith.constant 0 : index
    %182 = vector.load %arg5[%c5, %c0_59] : memref<14x512xf32, #tpu.memory_space<vmem>>, vector<1x512xf32>
    %cst_60 = arith.constant dense<0.000000e+00> : vector<1x512xf32>
    %183 = tpu.matmul %181, %39, %cst_60 {dimension_numbers = #tpu.dot_dimension_numbers<[1], [0], [0], [1], [0, 0, 1, 1], [], []>} : vector<1x128xf32>, vector<128x512xf32>, vector<1x512xf32> -> vector<1x512xf32>
    %184 = arith.addf %182, %183 : vector<1x512xf32>
    %185 = vector.extract_strided_slice %184 {offsets = [0, 0], sizes = [1, 128], strides = [1, 1]} : vector<1x512xf32> to vector<1x128xf32>
    %186 = arith.negf %185 : vector<1x128xf32>
    %187 = math.exp %186 : vector<1x128xf32>
    %cst_61 = arith.constant 1.000000e+00 : f32
    %188 = vector.broadcast %cst_61 : f32 to vector<1x128xf32>
    %189 = arith.addf %188, %187 : vector<1x128xf32>
    %190 = arith.divf %188, %189 : vector<1x128xf32>
    %191 = vector.extract_strided_slice %184 {offsets = [0, 128], sizes = [1, 128], strides = [1, 1]} : vector<1x512xf32> to vector<1x128xf32>
    %192 = arith.negf %191 : vector<1x128xf32>
    %193 = math.exp %192 : vector<1x128xf32>
    %cst_62 = arith.constant 1.000000e+00 : f32
    %194 = vector.broadcast %cst_62 : f32 to vector<1x128xf32>
    %195 = arith.addf %194, %193 : vector<1x128xf32>
    %196 = arith.divf %194, %195 : vector<1x128xf32>
    %197 = vector.extract_strided_slice %184 {offsets = [0, 256], sizes = [1, 128], strides = [1, 1]} : vector<1x512xf32> to vector<1x128xf32>
    %198 = math.tanh %197 : vector<1x128xf32>
    %199 = vector.extract_strided_slice %184 {offsets = [0, 384], sizes = [1, 128], strides = [1, 1]} : vector<1x512xf32> to vector<1x128xf32>
    %200 = arith.negf %199 : vector<1x128xf32>
    %201 = math.exp %200 : vector<1x128xf32>
    %cst_63 = arith.constant 1.000000e+00 : f32
    %202 = vector.broadcast %cst_63 : f32 to vector<1x128xf32>
    %203 = arith.addf %202, %201 : vector<1x128xf32>
    %204 = arith.divf %202, %203 : vector<1x128xf32>
    %205 = arith.mulf %196, %179 : vector<1x128xf32>
    %206 = arith.mulf %190, %198 : vector<1x128xf32>
    %207 = arith.addf %205, %206 : vector<1x128xf32>
    %208 = math.tanh %207 : vector<1x128xf32>
    %209 = arith.mulf %204, %208 : vector<1x128xf32>
    %c6 = arith.constant 6 : index
    %c0_64 = arith.constant 0 : index
    %210 = vector.load %arg5[%c6, %c0_64] : memref<14x512xf32, #tpu.memory_space<vmem>>, vector<1x512xf32>
    %cst_65 = arith.constant dense<0.000000e+00> : vector<1x512xf32>
    %211 = tpu.matmul %209, %39, %cst_65 {dimension_numbers = #tpu.dot_dimension_numbers<[1], [0], [0], [1], [0, 0, 1, 1], [], []>} : vector<1x128xf32>, vector<128x512xf32>, vector<1x512xf32> -> vector<1x512xf32>
    %212 = arith.addf %210, %211 : vector<1x512xf32>
    %213 = vector.extract_strided_slice %212 {offsets = [0, 0], sizes = [1, 128], strides = [1, 1]} : vector<1x512xf32> to vector<1x128xf32>
    %214 = arith.negf %213 : vector<1x128xf32>
    %215 = math.exp %214 : vector<1x128xf32>
    %cst_66 = arith.constant 1.000000e+00 : f32
    %216 = vector.broadcast %cst_66 : f32 to vector<1x128xf32>
    %217 = arith.addf %216, %215 : vector<1x128xf32>
    %218 = arith.divf %216, %217 : vector<1x128xf32>
    %219 = vector.extract_strided_slice %212 {offsets = [0, 128], sizes = [1, 128], strides = [1, 1]} : vector<1x512xf32> to vector<1x128xf32>
    %220 = arith.negf %219 : vector<1x128xf32>
    %221 = math.exp %220 : vector<1x128xf32>
    %cst_67 = arith.constant 1.000000e+00 : f32
    %222 = vector.broadcast %cst_67 : f32 to vector<1x128xf32>
    %223 = arith.addf %222, %221 : vector<1x128xf32>
    %224 = arith.divf %222, %223 : vector<1x128xf32>
    %225 = vector.extract_strided_slice %212 {offsets = [0, 256], sizes = [1, 128], strides = [1, 1]} : vector<1x512xf32> to vector<1x128xf32>
    %226 = math.tanh %225 : vector<1x128xf32>
    %227 = vector.extract_strided_slice %212 {offsets = [0, 384], sizes = [1, 128], strides = [1, 1]} : vector<1x512xf32> to vector<1x128xf32>
    %228 = arith.negf %227 : vector<1x128xf32>
    %229 = math.exp %228 : vector<1x128xf32>
    %cst_68 = arith.constant 1.000000e+00 : f32
    %230 = vector.broadcast %cst_68 : f32 to vector<1x128xf32>
    %231 = arith.addf %230, %229 : vector<1x128xf32>
    %232 = arith.divf %230, %231 : vector<1x128xf32>
    %233 = arith.mulf %224, %207 : vector<1x128xf32>
    %234 = arith.mulf %218, %226 : vector<1x128xf32>
    %235 = arith.addf %233, %234 : vector<1x128xf32>
    %236 = math.tanh %235 : vector<1x128xf32>
    %237 = arith.mulf %232, %236 : vector<1x128xf32>
    %c7 = arith.constant 7 : index
    %c0_69 = arith.constant 0 : index
    %238 = vector.load %arg5[%c7, %c0_69] : memref<14x512xf32, #tpu.memory_space<vmem>>, vector<1x512xf32>
    %cst_70 = arith.constant dense<0.000000e+00> : vector<1x512xf32>
    %239 = tpu.matmul %237, %39, %cst_70 {dimension_numbers = #tpu.dot_dimension_numbers<[1], [0], [0], [1], [0, 0, 1, 1], [], []>} : vector<1x128xf32>, vector<128x512xf32>, vector<1x512xf32> -> vector<1x512xf32>
    %240 = arith.addf %238, %239 : vector<1x512xf32>
    %241 = vector.extract_strided_slice %240 {offsets = [0, 0], sizes = [1, 128], strides = [1, 1]} : vector<1x512xf32> to vector<1x128xf32>
    %242 = arith.negf %241 : vector<1x128xf32>
    %243 = math.exp %242 : vector<1x128xf32>
    %cst_71 = arith.constant 1.000000e+00 : f32
    %244 = vector.broadcast %cst_71 : f32 to vector<1x128xf32>
    %245 = arith.addf %244, %243 : vector<1x128xf32>
    %246 = arith.divf %244, %245 : vector<1x128xf32>
    %247 = vector.extract_strided_slice %240 {offsets = [0, 128], sizes = [1, 128], strides = [1, 1]} : vector<1x512xf32> to vector<1x128xf32>
    %248 = arith.negf %247 : vector<1x128xf32>
    %249 = math.exp %248 : vector<1x128xf32>
    %cst_72 = arith.constant 1.000000e+00 : f32
    %250 = vector.broadcast %cst_72 : f32 to vector<1x128xf32>
    %251 = arith.addf %250, %249 : vector<1x128xf32>
    %252 = arith.divf %250, %251 : vector<1x128xf32>
    %253 = vector.extract_strided_slice %240 {offsets = [0, 256], sizes = [1, 128], strides = [1, 1]} : vector<1x512xf32> to vector<1x128xf32>
    %254 = math.tanh %253 : vector<1x128xf32>
    %255 = vector.extract_strided_slice %240 {offsets = [0, 384], sizes = [1, 128], strides = [1, 1]} : vector<1x512xf32> to vector<1x128xf32>
    %256 = arith.negf %255 : vector<1x128xf32>
    %257 = math.exp %256 : vector<1x128xf32>
    %cst_73 = arith.constant 1.000000e+00 : f32
    %258 = vector.broadcast %cst_73 : f32 to vector<1x128xf32>
    %259 = arith.addf %258, %257 : vector<1x128xf32>
    %260 = arith.divf %258, %259 : vector<1x128xf32>
    %261 = arith.mulf %252, %235 : vector<1x128xf32>
    %262 = arith.mulf %246, %254 : vector<1x128xf32>
    %263 = arith.addf %261, %262 : vector<1x128xf32>
    %264 = math.tanh %263 : vector<1x128xf32>
    %265 = arith.mulf %260, %264 : vector<1x128xf32>
    %c8_74 = arith.constant 8 : index
    %c0_75 = arith.constant 0 : index
    %266 = vector.load %arg5[%c8_74, %c0_75] : memref<14x512xf32, #tpu.memory_space<vmem>>, vector<1x512xf32>
    %cst_76 = arith.constant dense<0.000000e+00> : vector<1x512xf32>
    %267 = tpu.matmul %265, %39, %cst_76 {dimension_numbers = #tpu.dot_dimension_numbers<[1], [0], [0], [1], [0, 0, 1, 1], [], []>} : vector<1x128xf32>, vector<128x512xf32>, vector<1x512xf32> -> vector<1x512xf32>
    %268 = arith.addf %266, %267 : vector<1x512xf32>
    %269 = vector.extract_strided_slice %268 {offsets = [0, 0], sizes = [1, 128], strides = [1, 1]} : vector<1x512xf32> to vector<1x128xf32>
    %270 = arith.negf %269 : vector<1x128xf32>
    %271 = math.exp %270 : vector<1x128xf32>
    %cst_77 = arith.constant 1.000000e+00 : f32
    %272 = vector.broadcast %cst_77 : f32 to vector<1x128xf32>
    %273 = arith.addf %272, %271 : vector<1x128xf32>
    %274 = arith.divf %272, %273 : vector<1x128xf32>
    %275 = vector.extract_strided_slice %268 {offsets = [0, 128], sizes = [1, 128], strides = [1, 1]} : vector<1x512xf32> to vector<1x128xf32>
    %276 = arith.negf %275 : vector<1x128xf32>
    %277 = math.exp %276 : vector<1x128xf32>
    %cst_78 = arith.constant 1.000000e+00 : f32
    %278 = vector.broadcast %cst_78 : f32 to vector<1x128xf32>
    %279 = arith.addf %278, %277 : vector<1x128xf32>
    %280 = arith.divf %278, %279 : vector<1x128xf32>
    %281 = vector.extract_strided_slice %268 {offsets = [0, 256], sizes = [1, 128], strides = [1, 1]} : vector<1x512xf32> to vector<1x128xf32>
    %282 = math.tanh %281 : vector<1x128xf32>
    %283 = vector.extract_strided_slice %268 {offsets = [0, 384], sizes = [1, 128], strides = [1, 1]} : vector<1x512xf32> to vector<1x128xf32>
    %284 = arith.negf %283 : vector<1x128xf32>
    %285 = math.exp %284 : vector<1x128xf32>
    %cst_79 = arith.constant 1.000000e+00 : f32
    %286 = vector.broadcast %cst_79 : f32 to vector<1x128xf32>
    %287 = arith.addf %286, %285 : vector<1x128xf32>
    %288 = arith.divf %286, %287 : vector<1x128xf32>
    %289 = arith.mulf %280, %263 : vector<1x128xf32>
    %290 = arith.mulf %274, %282 : vector<1x128xf32>
    %291 = arith.addf %289, %290 : vector<1x128xf32>
    %292 = math.tanh %291 : vector<1x128xf32>
    %293 = arith.mulf %288, %292 : vector<1x128xf32>
    %c9 = arith.constant 9 : index
    %c0_80 = arith.constant 0 : index
    %294 = vector.load %arg5[%c9, %c0_80] : memref<14x512xf32, #tpu.memory_space<vmem>>, vector<1x512xf32>
    %cst_81 = arith.constant dense<0.000000e+00> : vector<1x512xf32>
    %295 = tpu.matmul %293, %39, %cst_81 {dimension_numbers = #tpu.dot_dimension_numbers<[1], [0], [0], [1], [0, 0, 1, 1], [], []>} : vector<1x128xf32>, vector<128x512xf32>, vector<1x512xf32> -> vector<1x512xf32>
    %296 = arith.addf %294, %295 : vector<1x512xf32>
    %297 = vector.extract_strided_slice %296 {offsets = [0, 0], sizes = [1, 128], strides = [1, 1]} : vector<1x512xf32> to vector<1x128xf32>
    %298 = arith.negf %297 : vector<1x128xf32>
    %299 = math.exp %298 : vector<1x128xf32>
    %cst_82 = arith.constant 1.000000e+00 : f32
    %300 = vector.broadcast %cst_82 : f32 to vector<1x128xf32>
    %301 = arith.addf %300, %299 : vector<1x128xf32>
    %302 = arith.divf %300, %301 : vector<1x128xf32>
    %303 = vector.extract_strided_slice %296 {offsets = [0, 128], sizes = [1, 128], strides = [1, 1]} : vector<1x512xf32> to vector<1x128xf32>
    %304 = arith.negf %303 : vector<1x128xf32>
    %305 = math.exp %304 : vector<1x128xf32>
    %cst_83 = arith.constant 1.000000e+00 : f32
    %306 = vector.broadcast %cst_83 : f32 to vector<1x128xf32>
    %307 = arith.addf %306, %305 : vector<1x128xf32>
    %308 = arith.divf %306, %307 : vector<1x128xf32>
    %309 = vector.extract_strided_slice %296 {offsets = [0, 256], sizes = [1, 128], strides = [1, 1]} : vector<1x512xf32> to vector<1x128xf32>
    %310 = math.tanh %309 : vector<1x128xf32>
    %311 = vector.extract_strided_slice %296 {offsets = [0, 384], sizes = [1, 128], strides = [1, 1]} : vector<1x512xf32> to vector<1x128xf32>
    %312 = arith.negf %311 : vector<1x128xf32>
    %313 = math.exp %312 : vector<1x128xf32>
    %cst_84 = arith.constant 1.000000e+00 : f32
    %314 = vector.broadcast %cst_84 : f32 to vector<1x128xf32>
    %315 = arith.addf %314, %313 : vector<1x128xf32>
    %316 = arith.divf %314, %315 : vector<1x128xf32>
    %317 = arith.mulf %308, %291 : vector<1x128xf32>
    %318 = arith.mulf %302, %310 : vector<1x128xf32>
    %319 = arith.addf %317, %318 : vector<1x128xf32>
    %320 = math.tanh %319 : vector<1x128xf32>
    %321 = arith.mulf %316, %320 : vector<1x128xf32>
    %c10 = arith.constant 10 : index
    %c0_85 = arith.constant 0 : index
    %322 = vector.load %arg5[%c10, %c0_85] : memref<14x512xf32, #tpu.memory_space<vmem>>, vector<1x512xf32>
    %cst_86 = arith.constant dense<0.000000e+00> : vector<1x512xf32>
    %323 = tpu.matmul %321, %39, %cst_86 {dimension_numbers = #tpu.dot_dimension_numbers<[1], [0], [0], [1], [0, 0, 1, 1], [], []>} : vector<1x128xf32>, vector<128x512xf32>, vector<1x512xf32> -> vector<1x512xf32>
    %324 = arith.addf %322, %323 : vector<1x512xf32>
    %325 = vector.extract_strided_slice %324 {offsets = [0, 0], sizes = [1, 128], strides = [1, 1]} : vector<1x512xf32> to vector<1x128xf32>
    %326 = arith.negf %325 : vector<1x128xf32>
    %327 = math.exp %326 : vector<1x128xf32>
    %cst_87 = arith.constant 1.000000e+00 : f32
    %328 = vector.broadcast %cst_87 : f32 to vector<1x128xf32>
    %329 = arith.addf %328, %327 : vector<1x128xf32>
    %330 = arith.divf %328, %329 : vector<1x128xf32>
    %331 = vector.extract_strided_slice %324 {offsets = [0, 128], sizes = [1, 128], strides = [1, 1]} : vector<1x512xf32> to vector<1x128xf32>
    %332 = arith.negf %331 : vector<1x128xf32>
    %333 = math.exp %332 : vector<1x128xf32>
    %cst_88 = arith.constant 1.000000e+00 : f32
    %334 = vector.broadcast %cst_88 : f32 to vector<1x128xf32>
    %335 = arith.addf %334, %333 : vector<1x128xf32>
    %336 = arith.divf %334, %335 : vector<1x128xf32>
    %337 = vector.extract_strided_slice %324 {offsets = [0, 256], sizes = [1, 128], strides = [1, 1]} : vector<1x512xf32> to vector<1x128xf32>
    %338 = math.tanh %337 : vector<1x128xf32>
    %339 = vector.extract_strided_slice %324 {offsets = [0, 384], sizes = [1, 128], strides = [1, 1]} : vector<1x512xf32> to vector<1x128xf32>
    %340 = arith.negf %339 : vector<1x128xf32>
    %341 = math.exp %340 : vector<1x128xf32>
    %cst_89 = arith.constant 1.000000e+00 : f32
    %342 = vector.broadcast %cst_89 : f32 to vector<1x128xf32>
    %343 = arith.addf %342, %341 : vector<1x128xf32>
    %344 = arith.divf %342, %343 : vector<1x128xf32>
    %345 = arith.mulf %336, %319 : vector<1x128xf32>
    %346 = arith.mulf %330, %338 : vector<1x128xf32>
    %347 = arith.addf %345, %346 : vector<1x128xf32>
    %348 = math.tanh %347 : vector<1x128xf32>
    %349 = arith.mulf %344, %348 : vector<1x128xf32>
    %c11 = arith.constant 11 : index
    %c0_90 = arith.constant 0 : index
    %350 = vector.load %arg5[%c11, %c0_90] : memref<14x512xf32, #tpu.memory_space<vmem>>, vector<1x512xf32>
    %cst_91 = arith.constant dense<0.000000e+00> : vector<1x512xf32>
    %351 = tpu.matmul %349, %39, %cst_91 {dimension_numbers = #tpu.dot_dimension_numbers<[1], [0], [0], [1], [0, 0, 1, 1], [], []>} : vector<1x128xf32>, vector<128x512xf32>, vector<1x512xf32> -> vector<1x512xf32>
    %352 = arith.addf %350, %351 : vector<1x512xf32>
    %353 = vector.extract_strided_slice %352 {offsets = [0, 0], sizes = [1, 128], strides = [1, 1]} : vector<1x512xf32> to vector<1x128xf32>
    %354 = arith.negf %353 : vector<1x128xf32>
    %355 = math.exp %354 : vector<1x128xf32>
    %cst_92 = arith.constant 1.000000e+00 : f32
    %356 = vector.broadcast %cst_92 : f32 to vector<1x128xf32>
    %357 = arith.addf %356, %355 : vector<1x128xf32>
    %358 = arith.divf %356, %357 : vector<1x128xf32>
    %359 = vector.extract_strided_slice %352 {offsets = [0, 128], sizes = [1, 128], strides = [1, 1]} : vector<1x512xf32> to vector<1x128xf32>
    %360 = arith.negf %359 : vector<1x128xf32>
    %361 = math.exp %360 : vector<1x128xf32>
    %cst_93 = arith.constant 1.000000e+00 : f32
    %362 = vector.broadcast %cst_93 : f32 to vector<1x128xf32>
    %363 = arith.addf %362, %361 : vector<1x128xf32>
    %364 = arith.divf %362, %363 : vector<1x128xf32>
    %365 = vector.extract_strided_slice %352 {offsets = [0, 256], sizes = [1, 128], strides = [1, 1]} : vector<1x512xf32> to vector<1x128xf32>
    %366 = math.tanh %365 : vector<1x128xf32>
    %367 = vector.extract_strided_slice %352 {offsets = [0, 384], sizes = [1, 128], strides = [1, 1]} : vector<1x512xf32> to vector<1x128xf32>
    %368 = arith.negf %367 : vector<1x128xf32>
    %369 = math.exp %368 : vector<1x128xf32>
    %cst_94 = arith.constant 1.000000e+00 : f32
    %370 = vector.broadcast %cst_94 : f32 to vector<1x128xf32>
    %371 = arith.addf %370, %369 : vector<1x128xf32>
    %372 = arith.divf %370, %371 : vector<1x128xf32>
    %373 = arith.mulf %364, %347 : vector<1x128xf32>
    %374 = arith.mulf %358, %366 : vector<1x128xf32>
    %375 = arith.addf %373, %374 : vector<1x128xf32>
    %376 = math.tanh %375 : vector<1x128xf32>
    %377 = arith.mulf %372, %376 : vector<1x128xf32>
    %c12 = arith.constant 12 : index
    %c0_95 = arith.constant 0 : index
    %378 = vector.load %arg5[%c12, %c0_95] : memref<14x512xf32, #tpu.memory_space<vmem>>, vector<1x512xf32>
    %cst_96 = arith.constant dense<0.000000e+00> : vector<1x512xf32>
    %379 = tpu.matmul %377, %39, %cst_96 {dimension_numbers = #tpu.dot_dimension_numbers<[1], [0], [0], [1], [0, 0, 1, 1], [], []>} : vector<1x128xf32>, vector<128x512xf32>, vector<1x512xf32> -> vector<1x512xf32>
    %380 = arith.addf %378, %379 : vector<1x512xf32>
    %381 = vector.extract_strided_slice %380 {offsets = [0, 0], sizes = [1, 128], strides = [1, 1]} : vector<1x512xf32> to vector<1x128xf32>
    %382 = arith.negf %381 : vector<1x128xf32>
    %383 = math.exp %382 : vector<1x128xf32>
    %cst_97 = arith.constant 1.000000e+00 : f32
    %384 = vector.broadcast %cst_97 : f32 to vector<1x128xf32>
    %385 = arith.addf %384, %383 : vector<1x128xf32>
    %386 = arith.divf %384, %385 : vector<1x128xf32>
    %387 = vector.extract_strided_slice %380 {offsets = [0, 128], sizes = [1, 128], strides = [1, 1]} : vector<1x512xf32> to vector<1x128xf32>
    %388 = arith.negf %387 : vector<1x128xf32>
    %389 = math.exp %388 : vector<1x128xf32>
    %cst_98 = arith.constant 1.000000e+00 : f32
    %390 = vector.broadcast %cst_98 : f32 to vector<1x128xf32>
    %391 = arith.addf %390, %389 : vector<1x128xf32>
    %392 = arith.divf %390, %391 : vector<1x128xf32>
    %393 = vector.extract_strided_slice %380 {offsets = [0, 256], sizes = [1, 128], strides = [1, 1]} : vector<1x512xf32> to vector<1x128xf32>
    %394 = math.tanh %393 : vector<1x128xf32>
    %395 = vector.extract_strided_slice %380 {offsets = [0, 384], sizes = [1, 128], strides = [1, 1]} : vector<1x512xf32> to vector<1x128xf32>
    %396 = arith.negf %395 : vector<1x128xf32>
    %397 = math.exp %396 : vector<1x128xf32>
    %cst_99 = arith.constant 1.000000e+00 : f32
    %398 = vector.broadcast %cst_99 : f32 to vector<1x128xf32>
    %399 = arith.addf %398, %397 : vector<1x128xf32>
    %400 = arith.divf %398, %399 : vector<1x128xf32>
    %401 = arith.mulf %392, %375 : vector<1x128xf32>
    %402 = arith.mulf %386, %394 : vector<1x128xf32>
    %403 = arith.addf %401, %402 : vector<1x128xf32>
    %404 = math.tanh %403 : vector<1x128xf32>
    %405 = arith.mulf %400, %404 : vector<1x128xf32>
    %c13 = arith.constant 13 : index
    %c0_100 = arith.constant 0 : index
    %406 = vector.load %arg5[%c13, %c0_100] : memref<14x512xf32, #tpu.memory_space<vmem>>, vector<1x512xf32>
    %cst_101 = arith.constant dense<0.000000e+00> : vector<1x512xf32>
    %407 = tpu.matmul %405, %39, %cst_101 {dimension_numbers = #tpu.dot_dimension_numbers<[1], [0], [0], [1], [0, 0, 1, 1], [], []>} : vector<1x128xf32>, vector<128x512xf32>, vector<1x512xf32> -> vector<1x512xf32>
    %408 = arith.addf %406, %407 : vector<1x512xf32>
    %409 = vector.extract_strided_slice %408 {offsets = [0, 0], sizes = [1, 128], strides = [1, 1]} : vector<1x512xf32> to vector<1x128xf32>
    %410 = arith.negf %409 : vector<1x128xf32>
    %411 = math.exp %410 : vector<1x128xf32>
    %cst_102 = arith.constant 1.000000e+00 : f32
    %412 = vector.broadcast %cst_102 : f32 to vector<1x128xf32>
    %413 = arith.addf %412, %411 : vector<1x128xf32>
    %414 = arith.divf %412, %413 : vector<1x128xf32>
    %415 = vector.extract_strided_slice %408 {offsets = [0, 128], sizes = [1, 128], strides = [1, 1]} : vector<1x512xf32> to vector<1x128xf32>
    %416 = arith.negf %415 : vector<1x128xf32>
    %417 = math.exp %416 : vector<1x128xf32>
    %cst_103 = arith.constant 1.000000e+00 : f32
    %418 = vector.broadcast %cst_103 : f32 to vector<1x128xf32>
    %419 = arith.addf %418, %417 : vector<1x128xf32>
    %420 = arith.divf %418, %419 : vector<1x128xf32>
    %421 = vector.extract_strided_slice %408 {offsets = [0, 256], sizes = [1, 128], strides = [1, 1]} : vector<1x512xf32> to vector<1x128xf32>
    %422 = math.tanh %421 : vector<1x128xf32>
    %423 = vector.extract_strided_slice %408 {offsets = [0, 384], sizes = [1, 128], strides = [1, 1]} : vector<1x512xf32> to vector<1x128xf32>
    %424 = arith.negf %423 : vector<1x128xf32>
    %425 = math.exp %424 : vector<1x128xf32>
    %cst_104 = arith.constant 1.000000e+00 : f32
    %426 = vector.broadcast %cst_104 : f32 to vector<1x128xf32>
    %427 = arith.addf %426, %425 : vector<1x128xf32>
    %428 = arith.divf %426, %427 : vector<1x128xf32>
    %429 = arith.mulf %420, %403 : vector<1x128xf32>
    %430 = arith.mulf %414, %422 : vector<1x128xf32>
    %431 = arith.addf %429, %430 : vector<1x128xf32>
    %432 = math.tanh %431 : vector<1x128xf32>
    %433 = arith.mulf %428, %432 : vector<1x128xf32>
    %cst_105 = arith.constant 0.000000e+00 : f32
    %434 = vector.broadcast %cst_105 : f32 to vector<1x128xf32>
    %435 = arith.maximumf %433, %434 : vector<1x128xf32>
    %c0_106 = arith.constant 0 : index
    %c0_107 = arith.constant 0 : index
    %436 = vector.load %arg3[%c0_106, %c0_107] : memref<440x128xf32, #tpu.memory_space<vmem>>, vector<128x128xf32>
    %cst_108 = arith.constant dense<0.000000e+00> : vector<1x128xf32>
    %437 = tpu.matmul %435, %436, %cst_108 {dimension_numbers = #tpu.dot_dimension_numbers<[1], [0], [0], [1], [0, 0, 1, 1], [], []>} : vector<1x128xf32>, vector<128x128xf32>, vector<1x128xf32> -> vector<1x128xf32>
    %c0_109 = arith.constant 0 : index
    %c0_110 = arith.constant 0 : index
    %438 = vector.load %arg1[%c0_109, %c0_110] : memref<4x4xf32, #tpu.memory_space<vmem>>, vector<1x4xf32>
    %c128 = arith.constant 128 : index
    %c0_111 = arith.constant 0 : index
    %439 = vector.load %arg3[%c128, %c0_111] : memref<440x128xf32, #tpu.memory_space<vmem>>, vector<4x128xf32>
    %cst_112 = arith.constant dense<0.000000e+00> : vector<1x128xf32>
    %440 = tpu.matmul %438, %439, %cst_112 {dimension_numbers = #tpu.dot_dimension_numbers<[1], [0], [0], [1], [0, 0, 1, 1], [], []>} : vector<1x4xf32>, vector<4x128xf32>, vector<1x128xf32> -> vector<1x128xf32>
    %441 = arith.addf %437, %440 : vector<1x128xf32>
    %c1_113 = arith.constant 1 : index
    %c0_114 = arith.constant 0 : index
    %442 = vector.load %arg1[%c1_113, %c0_114] : memref<4x4xf32, #tpu.memory_space<vmem>>, vector<1x4xf32>
    %c136 = arith.constant 136 : index
    %c0_115 = arith.constant 0 : index
    %443 = vector.load %arg3[%c136, %c0_115] : memref<440x128xf32, #tpu.memory_space<vmem>>, vector<4x128xf32>
    %cst_116 = arith.constant dense<0.000000e+00> : vector<1x128xf32>
    %444 = tpu.matmul %442, %443, %cst_116 {dimension_numbers = #tpu.dot_dimension_numbers<[1], [0], [0], [1], [0, 0, 1, 1], [], []>} : vector<1x4xf32>, vector<4x128xf32>, vector<1x128xf32> -> vector<1x128xf32>
    %445 = arith.addf %441, %444 : vector<1x128xf32>
    %c2_117 = arith.constant 2 : index
    %c0_118 = arith.constant 0 : index
    %446 = vector.load %arg1[%c2_117, %c0_118] : memref<4x4xf32, #tpu.memory_space<vmem>>, vector<1x4xf32>
    %c144 = arith.constant 144 : index
    %c0_119 = arith.constant 0 : index
    %447 = vector.load %arg3[%c144, %c0_119] : memref<440x128xf32, #tpu.memory_space<vmem>>, vector<4x128xf32>
    %cst_120 = arith.constant dense<0.000000e+00> : vector<1x128xf32>
    %448 = tpu.matmul %446, %447, %cst_120 {dimension_numbers = #tpu.dot_dimension_numbers<[1], [0], [0], [1], [0, 0, 1, 1], [], []>} : vector<1x4xf32>, vector<4x128xf32>, vector<1x128xf32> -> vector<1x128xf32>
    %449 = arith.addf %445, %448 : vector<1x128xf32>
    %c3_121 = arith.constant 3 : index
    %c0_122 = arith.constant 0 : index
    %450 = vector.load %arg1[%c3_121, %c0_122] : memref<4x4xf32, #tpu.memory_space<vmem>>, vector<1x4xf32>
    %c152 = arith.constant 152 : index
    %c0_123 = arith.constant 0 : index
    %451 = vector.load %arg3[%c152, %c0_123] : memref<440x128xf32, #tpu.memory_space<vmem>>, vector<4x128xf32>
    %cst_124 = arith.constant dense<0.000000e+00> : vector<1x128xf32>
    %452 = tpu.matmul %450, %451, %cst_124 {dimension_numbers = #tpu.dot_dimension_numbers<[1], [0], [0], [1], [0, 0, 1, 1], [], []>} : vector<1x4xf32>, vector<4x128xf32>, vector<1x128xf32> -> vector<1x128xf32>
    %453 = arith.addf %449, %452 : vector<1x128xf32>
    %c160_125 = arith.constant 160 : index
    %c0_126 = arith.constant 0 : index
    %454 = vector.load %arg3[%c160_125, %c0_126] : memref<440x128xf32, #tpu.memory_space<vmem>>, vector<1x128xf32>
    %455 = arith.addf %453, %454 : vector<1x128xf32>
    %cst_127 = arith.constant 0.000000e+00 : f32
    %456 = vector.broadcast %cst_127 : f32 to vector<1x128xf32>
    %457 = arith.maximumf %455, %456 : vector<1x128xf32>
    %c168 = arith.constant 168 : index
    %c0_128 = arith.constant 0 : index
    %458 = vector.load %arg3[%c168, %c0_128] : memref<440x128xf32, #tpu.memory_space<vmem>>, vector<128x128xf32>
    %cst_129 = arith.constant dense<0.000000e+00> : vector<1x128xf32>
    %459 = tpu.matmul %457, %458, %cst_129 {dimension_numbers = #tpu.dot_dimension_numbers<[1], [0], [0], [1], [0, 0, 1, 1], [], []>} : vector<1x128xf32>, vector<128x128xf32>, vector<1x128xf32> -> vector<1x128xf32>
    %c296 = arith.constant 296 : index
    %c0_130 = arith.constant 0 : index
    %460 = vector.load %arg3[%c296, %c0_130] : memref<440x128xf32, #tpu.memory_space<vmem>>, vector<1x128xf32>
    %461 = arith.addf %459, %460 : vector<1x128xf32>
    %cst_131 = arith.constant 0.000000e+00 : f32
    %462 = vector.broadcast %cst_131 : f32 to vector<1x128xf32>
    %463 = arith.maximumf %461, %462 : vector<1x128xf32>
    %c304 = arith.constant 304 : index
    %c0_132 = arith.constant 0 : index
    %464 = vector.load %arg3[%c304, %c0_132] : memref<440x128xf32, #tpu.memory_space<vmem>>, vector<128x128xf32>
    %cst_133 = arith.constant dense<0.000000e+00> : vector<1x128xf32>
    %465 = tpu.matmul %463, %464, %cst_133 {dimension_numbers = #tpu.dot_dimension_numbers<[1], [0], [0], [1], [0, 0, 1, 1], [], []>} : vector<1x128xf32>, vector<128x128xf32>, vector<1x128xf32> -> vector<1x128xf32>
    %c432 = arith.constant 432 : index
    %c0_134 = arith.constant 0 : index
    %466 = vector.load %arg3[%c432, %c0_134] : memref<440x128xf32, #tpu.memory_space<vmem>>, vector<1x128xf32>
    %467 = arith.addf %465, %466 : vector<1x128xf32>
    %c0_135 = arith.constant 0 : index
    %c0_136 = arith.constant 0 : index
    %468 = vector.load %arg4[%c0_135, %c0_136] : memref<1x128xf32, #tpu.memory_space<vmem>>, vector<1x128xf32>
    tpu.vector_store %arg4[%c0_135, %c0_136], %467 {strides = array<i32>} : memref<1x128xf32, #tpu.memory_space<vmem>>, vector<1x128xf32>,
    return
  }
}

</mosaic_0001>

<bundles_post_ra>
// kernel: covid_aux_net.1
= control target key start
LH: loop header
LB: loop body
LE: loop exit
PB: predicated region body
PF: predicated region fallthrough
CT: control target
= control target key end

     0   :  { %9 = vsyncpa [#allocation4], 0  ;;  %s6811_s0 = inlined_call_operand.vmem [shape: f32[4,14,6], index: 0, kind: input, shape index: {}]   ;;  %s6812_s1 = inlined_call_operand.vmem [shape: f32[4,4], index: 1, kind: input, shape index: {}]   ;;  %s6813_s2 = inlined_call_operand.hbm [shape: f32[168,512], index: 2, kind: input, shape index: {}]   ;;  %s6814_s3 = inlined_call_operand.hbm [shape: f32[440,128], index: 3, kind: input, shape index: {}]   ;;  %s6815_s4 = inlined_call_operand.hbm [shape: f32[1,128], index: 4, kind: output, shape index: {}]  }
   0x1   :  { %10 = vsyncpa [#allocation7], 0 }
   0x2   :  { %11 = vsyncpa [#allocation5], 0  ;;  %s5946_s15 = smov [#allocation3]   ;;  %s5874_s19 = scalar_lea.hbm %s6813_s2, 10752 }
   0x3   :  { %s21_s16 = sshll.u32 %s5946_s15, 4  ;;  %p5875_p0 = scmp.ne.s32.totalorder %s6813_s2, %s5874_s19  ;;  %s22_s16 = int_to_ptr.vmem [resolvable:$true] %s21_s16 }
   0x4   :  { %p5878_p1 = scmp.lt.u32.totalorder %s5874_s19, %s6813_s2 }
   0x6   :  { %p5880_p2 = pnand %p5878_p1, %p5875_p0 }
   0x8   :  { %5883 = shalt.err (!%p5880_p2)
}
   0x9   :  { %s5884_s24 = scalar_lea.vmem %s22_s16, 10752  ;;  %p5889_p4 = scmp.lt.s32.totalorder %s22_s16, %s22_s16 }
   0xa   :  { %p5885_p3 = scmp.ne.s32.totalorder %s22_s16, %s5884_s24  ;;  %p5890_p5 = scmp.lt.s32.totalorder %s5884_s24, %s5884_s24 }
   0xc   :  { %p5891_p6 = por %p5890_p5, %p5889_p4 }
   0xe   :  { %p5892_p7 = pnand %p5891_p6, %p5885_p3 }
  0x10   :  { %5895 = shalt.err (!%p5892_p7)
}
  0x11   :  { %s5947_s25 = smov 512   ;;  %s5948_s26 = smov 32  }
  0x12   :  { %27 = dma.hbm_to_vmem [thread:$0]  %s6813_s2, 10752, %s22_s16, [#allocation4], %s5947_s25, %s5947_s25, %s5948_s26  }
  0x13   :  { %s5949_s29 = smov [#allocation6]   ;;  %s5896_s7 = scalar_lea.hbm %s6814_s3, 7040 }
  0x14   :  { %s33_s30 = sshll.u32 %s5949_s29, 4  ;;  %p5897_p8 = scmp.ne.s32.totalorder %s6814_s3, %s5896_s7  ;;  %s34_s30 = int_to_ptr.vmem [resolvable:$true] %s33_s30 }
  0x15   :  { %p5900_p9 = scmp.lt.u32.totalorder %s5896_s7, %s6814_s3 }
  0x17   :  { %p5902_p10 = pnand %p5900_p9, %p5897_p8 }
  0x19   :  { %5905 = shalt.err (!%p5902_p10)
}
  0x1a   :  { %s5906_s12 = scalar_lea.vmem %s34_s30, 7040  ;;  %p5911_p12 = scmp.lt.s32.totalorder %s34_s30, %s34_s30 }
  0x1b   :  { %p5907_p11 = scmp.ne.s32.totalorder %s34_s30, %s5906_s12  ;;  %p5912_p13 = scmp.lt.s32.totalorder %s5906_s12, %s5906_s12 }
  0x1d   :  { %p5913_p0 = por %p5912_p13, %p5911_p12 }
  0x1f   :  { %p5914_p1 = pnand %p5913_p0, %p5907_p11 }
  0x21   :  { %5917 = shalt.err (!%p5914_p1)
}
  0x22   :  { %s5950_s2 = smov 128   ;;  %s5951_s13 = smov 8  }
  0x23   :  { %39 = dma.hbm_to_vmem [thread:$0]  %s6814_s3, 7040, %s34_s30, [#allocation7], %s5950_s2, %s5950_s2, %s5951_s13  }
  0x24   :  { %5940 = dma.done.wait [#allocation4], 10752  }
  0x25   :  { %5941 = vsyncadd [#allocation4], 4294956544 }
  0x26   :  { %5942 = dma.done.wait [#allocation7], 7040  }
  0x27   :  { %5943 = vsyncadd [#allocation7], 4294960256  ;;  %v5952_v0 = vmov 0.0   ;;  %vm78_vm0 = vcmask 1045504   ;;  %v68_v1 = vld [vmem:[#allocation3 + $0x28] sm:$0x3f] }
  0x28   :  { %155 = vmatprep.mubr.f32.mxu0 %v5952_v0  ;;  %404 = vmatprep.mubr.f32.mxu1 %v5952_v0  ;;  %v67_v2 = vld [vmem:[#allocation3 + $0x20] sm:$0x3f]  ;;  %v57_v3 = vld [vmem:[#allocation3 + $0x18] sm:$0x3f]  ;;  %v56_v5 = vld [vmem:[#allocation3 + $0x10] sm:$0x3f] }
  0x29   :  { %4376 = vmatprep.subr.msk.mxu0 %vm78_vm0, %v68_v1  ;;  %4388 = vmatprep.subr.msk.mxu1 %vm78_vm0, %v57_v3  ;;  %v70_v4 = vld [vmem:[#allocation3 + $0x38] sm:$0x3f]  ;;  %v4374_v6 = vld [vmem:[%s6811_s0 + $0x10] sm:$0xff]  ;;  %vm71_vm2 = vcmask 48128   ;;  %v46_v8 = vld [vmem:[%s6811_s0] sm:$0xff]  ;;  %vm5953_vm3 = vmmov 1  }
  0x2a   :  { %4377 = vmatpush1.msk.msra.mxu0 %vm78_vm0, %v67_v2  ;;  %4389 = vmatpush1.msk.msra.mxu1 %vm78_vm0, %v56_v5  ;;  %vm61_vm1 = vweird.f32 %v4374_v6  ;;  %v69_v7 = vld [vmem:[#allocation3 + $0x30] sm:$0x3f]  ;;  %v4375_v9 = vld [vmem:[%s6811_s0 + $0x18] sm:$0x3f]  ;;  %vm48_vm5 = vweird.f32 %v46_v8  ;;  %v47_v10 = vld [vmem:[%s6811_s0 + $0x8] sm:$0x3f] }
  0x2b   :  { %4380 = vmatprep.subr.msk.mxu0 %vm78_vm0, %v70_v4  ;;  %vm63_vm4 = vmxor %vm61_vm1, %vm5953_vm3  ;;  %vm62_vm6 = vweird.f32 %v4375_v9  ;;  %v429_v11 = vld [vmem:[#allocation3 + $0x58] sm:$0x3f]  ;;  %vm49_vm8 = vweird.f32 %v47_v10  ;;  %v55_v13 = vld [vmem:[#allocation3 + $0x8] sm:$0x3f] }
  0x2c   :  { %v65_v12 = vsel %vm63_vm4, %v4374_v6, 0.0  ;;  %vm50_vm7 = vmxor %vm48_vm5, %vm5953_vm3  ;;  %4398 = vmatprep.subr.msk.mxu1 %vm78_vm0, %v429_v11  ;;  %v428_v15 = vld [vmem:[#allocation3 + $0x50] sm:$0x3f]  ;;  %v4392_v16 = vld [vmem:[%s6811_s0 + $0x20] sm:$0xff] }
  0x2d   :  { %4378 = vmatmul.mubr.msk.f32.vlgmr.msra.gmra.mrb[0].mxu0 %vm71_vm2, %v65_v12  ;;  %v52_v14 = vsel %vm50_vm7, %v46_v8, 0.0  ;;  %vm64_vm9 = vmxor %vm62_vm6, %vm5953_vm3  ;;  %vm420_vm11 = vweird.f32 %v4392_v16  ;;  %v4393_v18 = vld [vmem:[%s6811_s0 + $0x28] sm:$0x3f]  ;;  %v622_v19 = vld [vmem:[#allocation3 + $0x78] sm:$0x3f] }
  0x2e   :  { %4381 = vmatpush1.msk.msra.mxu0 %vm78_vm0, %v69_v7  ;;  %4390 = vmatmul.mubr.msk.f32.vlgmr.msra.gmra.mrb[0].mxu1 %vm71_vm2, %v52_v14  ;;  %v66_v17 = vsel %vm64_vm9, %v4375_v9, 0.0  ;;  %vm51_vm10 = vmxor %vm49_vm8, %vm5953_vm3  ;;  %vm421_vm13 = vweird.f32 %v4393_v18  ;;  %v4402_v21 = vld [vmem:[%s6811_s0 + $0x30] sm:$0xff]  ;;  %v845_v22 = vld [vmem:[#allocation3 + $0x98] sm:$0xff] }
  0x2f   :  { %161 = vmatprep.mubr.f32.mxu0 %v5952_v0  ;;  %410 = vmatprep.mubr.f32.mxu1 %v5952_v0  ;;  %v53_v20 = vsel %vm51_vm10, %v47_v10, 0.0  ;;  %vm422_vm12 = vmxor %vm420_vm11, %vm5953_vm3  ;;  %v849_v23 = vld [vmem:[#allocation3 + $0xb8] sm:$0xff]  ;;  %v54_v24 = vld [vmem:[#allocation3] sm:$0x3f]  ;;  %vm613_vm15 = vweird.f32 %v4402_v21 }
  0x30   :  { %4384 = vmatprep.subr.msk.mxu0 %vm78_vm0, %v55_v13  ;;  %4399 = vmatpush1.msk.msra.mxu1 %vm78_vm0, %v428_v15  ;;  %v424_v25 = vsel %vm422_vm12, %v4392_v16, 0.0  ;;  %vm423_vm14 = vmxor %vm421_vm13, %vm5953_vm3  ;;  %v427_v26 = vld [vmem:[#allocation3 + $0x48] sm:$0x3f]  ;;  %v621_v27 = vld [vmem:[#allocation3 + $0x70] sm:$0x3f]  ;;  %v6055_v28 = vpack.c.bf16 %v849_v23, %v845_v22 }
  0x31   :  { %4379 = vmatmul.mubr.msk.f32.gmra.mrb[2].mxu0 %vm71_vm2, %v66_v17  ;;  %4408 = vmatprep.subr.msk.mxu1 %vm78_vm0, %v622_v19  ;;  %v4403_v29 = vld [vmem:[%s6811_s0 + $0x38] sm:$0x3f]  ;;  %v6064_v30 = vsel %vm423_vm14, %v4393_v18, 0.0  ;;  %vm615_vm1 = vmxor %vm613_vm15, %vm5953_vm3  ;;  %v844_v31 = vld [vmem:[#allocation3 + $0x90] sm:$0xff] }
  0x32   :  { %4391 = vmatmul.mubr.msk.f32.gmra.mrb[2].mxu1 %vm71_vm2, %v53_v20  ;;  %232 = vmatprep.mubr.f32.mxu0 %v5952_v0  ;;  %vm614_vm4 = vweird.f32 %v4403_v29  ;;  %v848_v32 = vld [vmem:[#allocation3 + $0xb0] sm:$0xff]  ;;  %v853_v33 = vld [vmem:[#allocation3 + $0xd8] sm:$0xff]  ;;  %v426_v35 = vld [vmem:[#allocation3 + $0x40] sm:$0x3f]  ;;  %v6075_v36 = vsel %vm615_vm1, %v4402_v21, 0.0 }
  0x33   :  { %589 = vmatprep.mubr.f32.mxu1 %v5952_v0  ;;  %v857_v34 = vld [vmem:[#allocation3 + $0xf8] sm:$0xff]  ;;  %vm616_vm5 = vmxor %vm614_vm4, %vm5953_vm3  ;;  %v6078_v37 = vpack.c.bf16 %v848_v32, %v844_v31  ;;  %v620_v38 = vld [vmem:[#allocation3 + $0x68] sm:$0x3f]  ;;  %vm3794_vm3 = vcmask 31744  }
  0x34   :  { %v6081_v39 = vpack.c.bf16 %v857_v34, %v853_v33  ;;  %v852_v40 = vld [vmem:[#allocation3 + $0xd0] sm:$0xff]  ;;  %v861_v42 = vld [vmem:[#allocation3 + $0x118] sm:$0xff]  ;;  %v6088_v44 = vsel %vm616_vm5, %v4403_v29, 0.0  ;;  %v843_v45 = vld [vmem:[#allocation3 + $0x88] sm:$0xff] }
  0x35   :  { %4382 = vmatmul.mubr.msk.f32.vlgmr.msra.gmra.mrb[4].mxu0 %vm71_vm2, %v65_v12  ;;  %v856_v41 = vld [vmem:[#allocation3 + $0xf0] sm:$0xff]  ;;  %v865_v43 = vld [vmem:[#allocation3 + $0x138] sm:$0xff]  ;;  %v847_v46 = vld [vmem:[#allocation3 + $0xa8] sm:$0xff] }
  0x36   :  { %4385 = vmatpush1.msk.msra.mxu0 %vm78_vm0, %v54_v24  ;;  %4400 = vmatmul.mubr.msk.f32.vlgmr.msra.gmra.mrb[0].mxu1 %vm71_vm2, %v424_v25  ;;  %v6092_v47 = vpack.c.bf16 %v856_v41, %v852_v40  ;;  %v6096_v48 = vpack.c.bf16 %v865_v43, %v861_v42  ;;  %v860_v49 = vld [vmem:[#allocation3 + $0x110] sm:$0xff]  ;;  %v869_v51 = vld [vmem:[#allocation3 + $0x158] sm:$0xff]  ;;  %v619_v53 = vld [vmem:[#allocation3 + $0x60] sm:$0x3f]  ;;  %v6101_v54 = vpack.c.bf16 %v847_v46, %v843_v45 }
  0x37   :  { %238 = vmatprep.mubr.f32.mxu0 %v5952_v0  ;;  %595 = vmatprep.mubr.f32.mxu1 %v5952_v0  ;;  %v864_v50 = vld [vmem:[#allocation3 + $0x130] sm:$0xff]  ;;  %v873_v52 = vld [vmem:[#allocation3 + $0x178] sm:$0xff]  ;;  %v842_v61 = vld [vmem:[#allocation3 + $0x80] sm:$0xff] }
  0x38   :  { %4394 = vmatprep.subr.msk.mxu0 %vm78_vm0, %v427_v26  ;;  %4409 = vmatpush1.msk.msra.mxu1 %vm78_vm0, %v621_v27  ;;  %v6105_v55 = vpack.c.bf16 %v864_v50, %v860_v49  ;;  %v6109_v56 = vpack.c.bf16 %v873_v52, %v869_v51  ;;  %v868_v57 = vld [vmem:[#allocation3 + $0x150] sm:$0xff]  ;;  %v877_v59 = vld [vmem:[#allocation3 + $0x198] sm:$0xff]  ;;  %v846_v62 = vld [vmem:[#allocation3 + $0xa0] sm:$0xff] }
  0x39   :  { %4383 = vmatmul.mubr.msk.f32.gmra.mrb[6].mxu0 %vm71_vm2, %v66_v17  ;;  %4679 = vmatprep.subr.bf16.mxu1 %v6055_v28  ;;  %v872_v58 = vld [vmem:[#allocation3 + $0x170] sm:$0xff]  ;;  %v881_v60 = vld [vmem:[#allocation3 + $0x1b8] sm:$0xff]  ;;  %v851_v63 = vld [vmem:[#allocation3 + $0xc8] sm:$0xff]  ;;  %v6123_v6 = vpack.c.bf16 %v846_v62, %v842_v61 }
  0x3a   :  { %4401 = vmatmul.mubr.msk.f32.gmra.mrb[2].mxu1 %vm71_vm2, %v6064_v30  ;;  %327 = vmatprep.mubr.f32.mxu0 %v5952_v0  ;;  %v855_v1 = vld [vmem:[#allocation3 + $0xe8] sm:$0xff]  ;;  %v6115_v2 = vpack.c.bf16 %v872_v58, %v868_v57  ;;  %v6120_v3 = vpack.c.bf16 %v881_v60, %v877_v59  ;;  %v876_v4 = vld [vmem:[#allocation3 + $0x190] sm:$0xff]  ;;  %v885_v7 = vld [vmem:[#allocation3 + $0x1d8] sm:$0xff] }
  0x3b   :  { %782 = vmatprep.mubr.f32.mxu1 %v5952_v0  ;;  %v880_v5 = vld [vmem:[#allocation3 + $0x1b0] sm:$0xff]  ;;  %v889_v8 = vld [vmem:[#allocation3 + $0x1f8] sm:$0xff]  ;;  %v6125_v9 = vpack.c.bf16 %v855_v1, %v851_v63  ;;  %v850_v10 = vld [vmem:[#allocation3 + $0xc0] sm:$0xff] }
  0x3c   :  { %v854_v11 = vld [vmem:[#allocation3 + $0xe0] sm:$0xff]  ;;  %v859_v12 = vld [vmem:[#allocation3 + $0x108] sm:$0xff]  ;;  %v6133_v15 = vpack.c.bf16 %v889_v8, %v885_v7  ;;  %v884_v16 = vld [vmem:[#allocation3 + $0x1d0] sm:$0xff] }
  0x3d   :  { %4386 = vmatmul.mubr.msk.f32.vlgmr.msra.gmra.mrb[0].mxu0 %vm71_vm2, %v52_v14  ;;  %v863_v13 = vld [vmem:[#allocation3 + $0x128] sm:$0xff]  ;;  %v6128_v14 = vpack.c.bf16 %v880_v5, %v876_v4  ;;  %v888_v17 = vld [vmem:[#allocation3 + $0x1f0] sm:$0xff]  ;;  %v6137_v18 = vpack.c.bf16 %v854_v11, %v850_v10  ;;  %v893_v19 = vld [vmem:[#allocation3 + $0x218] sm:$0xff] }
  0x3e   :  { %4395 = vmatpush1.msk.msra.mxu0 %vm78_vm0, %v426_v35  ;;  %4410 = vmatmul.mubr.msk.f32.vlgmr.msra.gmra.mrb[0].mxu1 %vm71_vm2, %v6075_v36  ;;  %v6140_v21 = vpack.c.bf16 %v863_v13, %v859_v12  ;;  %v858_v22 = vld [vmem:[#allocation3 + $0x100] sm:$0xff]  ;;  %v867_v24 = vld [vmem:[#allocation3 + $0x148] sm:$0xff]  ;;  %v6143_v26 = vpack.c.bf16 %v888_v17, %v884_v16  ;;  %v892_v29 = vld [vmem:[#allocation3 + $0x210] sm:$0xff]  ;;  %v806_v17 = vlaneseq }
  0x3f   :  { %333 = vmatprep.mubr.f32.mxu0 %v5952_v0  ;;  %788 = vmatprep.mubr.f32.mxu1 %v5952_v0  ;;  %v862_v23 = vld [vmem:[#allocation3 + $0x120] sm:$0xff]  ;;  %v901_v32 = vld [vmem:[#allocation3 + $0x258] sm:$0xff]  ;;  %v879_v40 = vld [vmem:[#allocation3 + $0x1a8] sm:$0xff] }
  0x40   :  { %4404 = vmatprep.subr.msk.mxu0 %vm78_vm0, %v620_v38  ;;  %4681 = vmatpush1.bf16.msra.mxu1 %v6078_v37  ;;  %v6151_v31 = vpack.c.bf16 %v862_v23, %v858_v22  ;;  %v905_v33 = vld [vmem:[#allocation3 + $0x278] sm:$0xff]  ;;  %v866_v35 = vld [vmem:[#allocation3 + $0x140] sm:$0xff]  ;;  %v875_v38 = vld [vmem:[#allocation3 + $0x188] sm:$0xff] }
  0x41   :  { %4387 = vmatmul.mubr.msk.f32.gmra.mrb[2].mxu0 %vm71_vm2, %v53_v20  ;;  %4683 = vmatprep.subr.bf16.mxu1 %v6081_v39  ;;  %v897_v20 = vld [vmem:[#allocation3 + $0x238] sm:$0xff]  ;;  %v6161_v42 = vpack.c.bf16 %v905_v33, %v901_v32  ;;  %v900_v43 = vld [vmem:[#allocation3 + $0x250] sm:$0xff]  ;;  %v6167_v46 = vpack.c.bf16 %v879_v40, %v875_v38  ;;  %v874_v49 = vld [vmem:[#allocation3 + $0x180] sm:$0xff] }
  0x42   :  { %4411 = vmatmul.mubr.msk.f32.gmra.mrb[2].mxu1 %vm71_vm2, %v6088_v44  ;;  %512 = vmatprep.mubr.f32.mxu0 %v5952_v0  ;;  %v6148_v27 = vpack.c.bf16 %v897_v20, %v893_v19  ;;  %v878_v50 = vld [vmem:[#allocation3 + $0x1a0] sm:$0xff]  ;;  %v883_v51 = vld [vmem:[#allocation3 + $0x1c8] sm:$0xff]  ;;  %v807_v20 = vshrl.u32 %v806_v17, 7 }
  0x43   :  { %1042 = vmatprep.mubr.f32.mxu1 %v5952_v0  ;;  %v887_v52 = vld [vmem:[#allocation3 + $0x1e8] sm:$0xff]  ;;  %v6174_v57 = vpack.c.bf16 %v878_v50, %v874_v49  ;;  %v882_v59 = vld [vmem:[#allocation3 + $0x1c0] sm:$0xff] }
  0x44   :  { %4685 = vmatpush1.bf16.msra.mxu1 %v6092_v47  ;;  %v6177_v58 = vpack.c.bf16 %v887_v52, %v883_v51  ;;  %v886_v60 = vld [vmem:[#allocation3 + $0x1e0] sm:$0xff]  ;;  %v891_v61 = vld [vmem:[#allocation3 + $0x208] sm:$0xff] }
  0x45   :  { %4396 = vmatmul.mubr.msk.f32.vlgmr.msra.gmra.mrb[0].mxu0 %vm71_vm2, %v424_v25  ;;  %4687 = vmatprep.subr.bf16.mxu1 %v6096_v48  ;;  %v871_v25 = vld [vmem:[#allocation3 + $0x168] sm:$0xff]  ;;  %v6182_v63 = vpack.c.bf16 %v886_v60, %v882_v59  ;;  %v890_v4 = vld [vmem:[#allocation3 + $0x200] sm:$0xff] }
  0x46   :  { %4405 = vmatpush1.msk.msra.mxu0 %vm78_vm0, %v619_v53  ;;  %518 = vmatprep.mubr.f32.mxu0 %v5952_v0  ;;  %v6155_v34 = vpack.c.bf16 %v871_v25, %v867_v24  ;;  %v895_v62 = vld [vmem:[#allocation3 + $0x228] sm:$0xff]  ;;  %v894_v5 = vld [vmem:[#allocation3 + $0x220] sm:$0xff]  ;;  %v816_v24 = vsub.s32 2, %v807_v20  ;;  %vm3798_vm0 = vcmask 1043456  }
  0x47   :  { %4647 = vmatprep.subr.bf16.mxu0 %v6101_v54  ;;  %v6185_v1 = vpack.c.bf16 %v895_v62, %v891_v61  ;;  %v899_v7 = vld [vmem:[#allocation3 + $0x248] sm:$0xff]  ;;  %v6192_v10 = vpack.c.bf16 %v894_v5, %v890_v4  ;;  %v898_v12 = vld [vmem:[#allocation3 + $0x240] sm:$0xff]  ;;  %v808_v61 = vsub.s32 0, %v807_v20  ;;  %v812_v62 = vsub.s32 1, %v807_v20 }
  0x48   :  { %4689 = vmatpush1.bf16.msra.mxu1 %v6105_v55  ;;  %v903_v8 = vld [vmem:[#allocation3 + $0x268] sm:$0xff]  ;;  %v902_v13 = vld [vmem:[#allocation3 + $0x260] sm:$0xff] }
  0x49   :  { %4397 = vmatmul.mubr.msk.f32.gmra.mrb[2].mxu0 %vm71_vm2, %v6064_v30  ;;  %4691 = vmatprep.subr.bf16.mxu1 %v6109_v56  ;;  %v896_v30 = vld [vmem:[#allocation3 + $0x230] sm:$0xff]  ;;  %v6195_v11 = vpack.c.bf16 %v903_v8, %v899_v7  ;;  %v6200_v16 = vpack.c.bf16 %v902_v13, %v898_v12 }
  0x4a   :  { %705 = vmatprep.mubr.f32.mxu0 %v5952_v0  ;;  %v6158_v41 = vpack.c.bf16 %v896_v30, %v892_v29  ;;  %v804_v29 = vld [vmem:[#allocation3 + $0x280] ss:$8 sm:$0xf]  ;;  %v820_v30 = vsub.s32 3, %v807_v20 }
  0x4b   :  { %v817_v32 = vrot.slane %v804_v29, %v816_v24  ;;  %v809_v4 = vrot.slane %v804_v29, %v808_v61  ;;  %v813_v5 = vrot.slane %v804_v29, %v812_v62 }
  0x4c   :  { %4693 = vmatpush1.bf16.msra.mxu1 %v6115_v2 }
  0x4d   :  { %4406 = vmatmul.mubr.msk.f32.vlgmr.msra.gmra.mrb[0].mxu0 %vm71_vm2, %v6075_v36  ;;  %4695 = vmatprep.subr.bf16.mxu1 %v6120_v3  ;;  %v870_v36 = vld [vmem:[#allocation3 + $0x160] sm:$0xff] }
  0x4e   :  { %4649 = vmatpush1.bf16.msra.mxu0 %v6123_v6  ;;  %711 = vmatprep.mubr.f32.mxu0 %v5952_v0  ;;  %v6164_v45 = vpack.c.bf16 %v870_v36, %v866_v35  ;;  %v821_v35 = vrot.slane %v804_v29, %v820_v30 }
  0x4f   :  { %4651 = vmatprep.subr.bf16.mxu0 %v6125_v9 }
  0x50   :  { %4697 = vmatpush1.bf16.msra.mxu1 %v6128_v14 }
  0x51   :  { %4407 = vmatmul.mubr.msk.f32.gmra.mrb[2].mxu0 %vm71_vm2, %v6088_v44  ;;  %4699 = vmatprep.subr.bf16.mxu1 %v6133_v15  ;;  %v904_v44 = vld [vmem:[#allocation3 + $0x270] sm:$0xff]  ;;  %vm5956_vm2 = vmmov 0  }
  0x52   :  { %4653 = vmatpush1.bf16.msra.mxu0 %v6137_v18  ;;  %971 = vmatprep.mubr.f32.mxu0 %v5952_v0  ;;  %v6170_v53 = vpack.c.bf16 %v904_v44, %v900_v43 }
  0x53   :  { %4655 = vmatprep.subr.bf16.mxu0 %v6140_v21 }
  0x54   :  { %4701 = vmatpush1.bf16.msra.mxu1 %v6143_v26 }
  0x55   :  { %4703 = vmatprep.subr.bf16.mxu1 %v6148_v27 }
  0x56   :  { %4657 = vmatpush1.bf16.msra.mxu0 %v6151_v31 }
  0x57   :  { %4659 = vmatprep.subr.bf16.mxu0 %v6155_v34 }
  0x58   :  { %4705 = vmatpush1.bf16.msra.mxu1 %v6158_v41 }
  0x59   :  { %4707 = vmatprep.subr.bf16.mxu1 %v6161_v42 }
  0x5a   :  { %4661 = vmatpush1.bf16.msra.mxu0 %v6164_v45 }
  0x5b   :  { %4663 = vmatprep.subr.bf16.mxu0 %v6167_v46 }
  0x5c   :  { %4709 = vmatpush1.bf16.msra.mxu1 %v6170_v53 }
  0x5d   :  { %4743 = vmatprep.subr.bf16.mxu1 %v6055_v28 }
  0x5e   :  { %4665 = vmatpush1.bf16.msra.mxu0 %v6174_v57 }
  0x5f   :  { %4667 = vmatprep.subr.bf16.mxu0 %v6177_v58  ;;  %1043 = vmatmul.mubr.f32.vlgmr.msra.gmra.mrb[4].mxu1 %v5952_v0 }
  0x60   :  { %4745 = vmatpush1.bf16.msra.mxu1 %v6078_v37  ;;  %1247 = vmatprep.mubr.f32.mxu1 %v5952_v0 }
  0x61   :  { %4747 = vmatprep.subr.bf16.mxu1 %v6081_v39 }
  0x62   :  { %4669 = vmatpush1.bf16.msra.mxu0 %v6182_v63 }
  0x63   :  { %4671 = vmatprep.subr.bf16.mxu0 %v6185_v1 }
  0x64   :  { %4749 = vmatpush1.bf16.msra.mxu1 %v6092_v47 }
  0x65   :  { %4751 = vmatprep.subr.bf16.mxu1 %v6096_v48 }
  0x66   :  { %4673 = vmatpush1.bf16.msra.mxu0 %v6192_v10 }
  0x67   :  { %4675 = vmatprep.subr.bf16.mxu0 %v6195_v11 }
  0x68   :  { %4753 = vmatpush1.bf16.msra.mxu1 %v6105_v55 }
  0x69   :  { %4755 = vmatprep.subr.bf16.mxu1 %v6109_v56 }
  0x6a   :  { %4677 = vmatpush1.bf16.msra.mxu0 %v6200_v16 }
  0x6b   :  { %4711 = vmatprep.subr.bf16.mxu0 %v6101_v54 }
  0x6c   :  { %4757 = vmatpush1.bf16.msra.mxu1 %v6115_v2 }
  0x6d   :  { %972 = vmatmul.mubr.f32.vlgmr.msra.gmra.mrb[8].mxu0 %v5952_v0  ;;  %4759 = vmatprep.subr.bf16.mxu1 %v6120_v3 }
  0x6e   :  { %4713 = vmatpush1.bf16.msra.mxu0 %v6123_v6  ;;  %1176 = vmatprep.mubr.f32.mxu0 %v5952_v0 }
  0x6f   :  { %4715 = vmatprep.subr.bf16.mxu0 %v6125_v9 }
  0x70   :  { %4761 = vmatpush1.bf16.msra.mxu1 %v6128_v14 }
  0x71   :  { %4763 = vmatprep.subr.bf16.mxu1 %v6133_v15 }
  0x72   :  { %4717 = vmatpush1.bf16.msra.mxu0 %v6137_v18 }
  0x73   :  { %4719 = vmatprep.subr.bf16.mxu0 %v6140_v21 }
  0x74   :  { %4765 = vmatpush1.bf16.msra.mxu1 %v6143_v26 }
  0x75   :  { %4767 = vmatprep.subr.bf16.mxu1 %v6148_v27 }
  0x76   :  { %4721 = vmatpush1.bf16.msra.mxu0 %v6151_v31 }
  0x77   :  { %4723 = vmatprep.subr.bf16.mxu0 %v6155_v34 }
  0x78   :  { %4769 = vmatpush1.bf16.msra.mxu1 %v6158_v41 }
  0x79   :  { %4771 = vmatprep.subr.bf16.mxu1 %v6161_v42 }
  0x7a   :  { %4725 = vmatpush1.bf16.msra.mxu0 %v6164_v45 }
  0x7b   :  { %4727 = vmatprep.subr.bf16.mxu0 %v6167_v46 }
  0x7c   :  { %4773 = vmatpush1.bf16.msra.mxu1 %v6170_v53 }
  0x7d   :  { %4807 = vmatprep.subr.bf16.mxu1 %v6055_v28 }
  0x7e   :  { %4729 = vmatpush1.bf16.msra.mxu0 %v6174_v57 }
  0x7f   :  { %4731 = vmatprep.subr.bf16.mxu0 %v6177_v58 }
  0x82   :  { %4733 = vmatpush1.bf16.msra.mxu0 %v6182_v63 }
  0x83   :  { %4735 = vmatprep.subr.bf16.mxu0 %v6185_v1 }
  0x86   :  { %4737 = vmatpush1.bf16.msra.mxu0 %v6192_v10 }
  0x87   :  { %4739 = vmatprep.subr.bf16.mxu0 %v6195_v11 }
  0x8a   :  { %4741 = vmatpush1.bf16.msra.mxu0 %v6200_v16 }
  0x8b   :  { %4775 = vmatprep.subr.bf16.mxu0 %v6101_v54 }
 0x108   :  { %v234_v19 = vpop.f32.mrb[4].mxu0 }
 0x109   :  { %v236_v22 = vpop.f32.mrb[5].mxu0 }
 0x10c   :  { %v240_v23 = vpop.f32.mrb[6].mxu0 }
 0x10d   :  { %v242_v25 = vpop.f32.mrb[7].mxu0 }
 0x111   :  { %v784_v33 = vpop.f32.mrb[0].mxu1 }
 0x112   :  { %v5614_v36 = vadd.f32 %v784_v33, %v234_v19  ;;  %v786_v38 = vpop.f32.mrb[1].mxu1 }
 0x113   :  { %v5615_v40 = vadd.f32 %v786_v38, %v236_v22 }
 0x114   :  { %v828_v43 = vadd.f32 %v5614_v36, %v817_v32 }
 0x115   :  { %v829_v44 = vadd.f32 %v5615_v40, %v821_v35  ;;  %v790_v49 = vpop.f32.mrb[2].mxu1 }
 0x116   :  { %836 = vst [vmem:[#allocation2 + $0x10] sm:$0xff] %v828_v43  ;;  %v5616_v50 = vadd.f32 %v790_v49, %v240_v23  ;;  %v792_v51 = vpop.f32.mrb[3].mxu1 }
 0x117   :  { %837 = vst [vmem:[#allocation2 + $0x18] sm:$0xff] %v829_v44  ;;  %v5617_v52 = vadd.f32 %v792_v51, %v242_v25 }
 0x118   :  { %v832_v59 = vadd.f32 %v5616_v50, %v817_v32  ;;  %v5954_v32 = vmov 1966171168  }
 0x119   :  { %v833_v60 = vadd.f32 %v5617_v52, %v821_v35  ;;  %v1056_v33 = vunpack.c.l.s4 %v5954_v32 }
 0x11a   :  { %840 = vst [vmem:[#allocation2 + $0x30] sm:$0x3f] %v832_v59 }
 0x11b   :  { %841 = vst [vmem:[#allocation2 + $0x38] sm:$0x3f] %v833_v60  ;;  %v1057_v35 = vunpack.c.0.s8 %v1056_v33 }
 0x11d   :  { %v6235_v36 = vsub.s32 %v1057_v35, %v807_v20 }
 0x120   :  { %v707_v7 = vpop.f32.mrb[0].mxu0 }
 0x121   :  { %v826_v8 = vadd.f32 %v809_v4, %v707_v7  ;;  %v709_v12 = vpop.f32.mrb[1].mxu0 }
 0x122   :  { %v827_v13 = vadd.f32 %v813_v5, %v709_v12 }
 0x123   :  { %834 = vst [vmem:[#allocation2] sm:$0xff] %v826_v8 }
 0x124   :  { %835 = vst [vmem:[#allocation2 + $0x8] sm:$0xff] %v827_v13  ;;  %v713_v17 = vpop.f32.mrb[2].mxu0 }
 0x125   :  { %v830_v19 = vadd.f32 %v809_v4, %v713_v17  ;;  %v715_v22 = vpop.f32.mrb[3].mxu0 }
 0x126   :  { %v831_v23 = vadd.f32 %v813_v5, %v715_v22 }
 0x127   :  { %838 = vst [vmem:[#allocation2 + $0x20] sm:$0x3f] %v830_v19 }
 0x128   :  { %839 = vst [vmem:[#allocation2 + $0x28] sm:$0x3f] %v831_v23 }
 0x12b   :  { %v906_v51 = vld [vmem:[#allocation2] ss:$8 sm:$0xf] }
 0x132   :  { %v1044_v24 = vpop.f32.mrb[4].mxu1 }
 0x133   :  { %v1046_v25 = vpop.f32.mrb[5].mxu1 }
 0x134   :  { %v1054_v30 = vcombine.low %v1044_v24, %v1046_v25 }
 0x136   :  { %v1068_v40 = vrot.slane %v1054_v30, %v6235_v36 }
 0x140   :  { %v973_v29 = vpop.f32.mrb[8].mxu0 }
 0x141   :  { %v975_v38 = vpop.f32.mrb[9].mxu0 }
 0x142   :  { %v1053_v43 = vcombine.low %v973_v29, %v975_v38 }
 0x144   :  { %v1061_v44 = vrot.slane %v1053_v43, %v6235_v36 }
 0x146   :  { %v1069_v49 = vcombine.low %v1061_v44, %v1068_v40 }
 0x148   :  { %v1076_v50 = vrot.slane %v1069_v49, %v6235_v36 }
 0x14a   :  { %v1078_v52 = vadd.f32 %v1076_v50, %v906_v51 }
 0x14c   :  { %v4412_v59 = vmul.f32 -1.442695, %v1078_v52  ;;  %v1086_v60 = vrot.slane %v1078_v52, 1  ;;  %v1097_v62 = vrot.slane %v1078_v52, 3  ;;  %v1094_v5 = vrot.slane %v1078_v52, 2 }
 0x14e   :  { %5650 = vpow2.f32 %v4412_v59  ;;  %v4413_v61 = vmul.f32 -1.442695, %v1086_v60  ;;  %v4414_v20 = vmul.f32 -1.442695, %v1097_v62 }
 0x14f   :  { %v1111_v60 = vld [vmem:[#allocation2 + $0x1] ss:$8 sm:$0xf] }
 0x150   :  { %5652 = vpow2.f32 %v4413_v61 }
 0x151   :  { %5654 = vpow2.f32 %v4414_v20 }
 0x158   :  { %v5651_v4 = vpop.eup %5650 }
 0x159   :  { %v1082_v7 = vadd.f32 1.0, %v5651_v4 }
 0x15a   :  { %v5653_v8 = vpop.eup %5652 }
 0x15b   :  { %5656 = vrcp.f32 %v1082_v7  ;;  %v1091_v12 = vadd.f32 1.0, %v5653_v8  ;;  %v5655_v13 = vpop.eup %5654 }
 0x15c   :  { %5658 = vtanh.f32 %v1094_v5  ;;  %v1102_v23 = vadd.f32 1.0, %v5655_v13 }
 0x15d   :  { %5660 = vrcp.f32 %v1091_v12 }
 0x15e   :  { %5662 = vrcp.f32 %v1102_v23 }
 0x165   :  { %v5657_v17 = vpop.eup %5656 }
 0x166   :  { %v5659_v19 = vpop.eup %5658 }
 0x167   :  { %v5661_v22 = vpop.eup %5660  ;;  %v1106_v25 = vmul.f32 %v5659_v19, %v5657_v17 }
 0x168   :  { %v1105_v24 = vmul.f32 0.0, %v5661_v22  ;;  %v5663_v32 = vpop.eup %5662 }
 0x16a   :  { %v6240_v30 = vadd.f32 %v1106_v25, %v1105_v24 }
 0x16c   :  { %5664 = vtanh.f32 %v6240_v30 }
 0x176   :  { %v5665_v33 = vpop.eup %5664 }
 0x177   :  { %v1109_v35 = vmul.f32 %v5665_v33, %v5663_v32 }
 0x179   :  { %1177 = vmatmul.mubr.f32.vlgmr.msra.gmra.mrb[10].mxu0 %v1109_v35  ;;  %1248 = vmatmul.mubr.f32.vlgmr.msra.gmra.mrb[6].mxu1 %v1109_v35 }
 0x17a   :  { %4777 = vmatpush1.bf16.msra.mxu0 %v6123_v6  ;;  %4809 = vmatpush1.bf16.msra.mxu1 %v6078_v37 }
 0x17b   :  { %4779 = vmatprep.subr.bf16.mxu0 %v6125_v9  ;;  %4811 = vmatprep.subr.bf16.mxu1 %v6081_v39 }
 0x17c   :  { %1381 = vmatprep.mubr.f32.mxu0 %v5952_v0  ;;  %1452 = vmatprep.mubr.f32.mxu1 %v5952_v0 }
 0x17e   :  { %4781 = vmatpush1.bf16.msra.mxu0 %v6137_v18  ;;  %4813 = vmatpush1.bf16.msra.mxu1 %v6092_v47 }
 0x17f   :  { %4783 = vmatprep.subr.bf16.mxu0 %v6140_v21  ;;  %4815 = vmatprep.subr.bf16.mxu1 %v6096_v48 }
 0x182   :  { %4785 = vmatpush1.bf16.msra.mxu0 %v6151_v31  ;;  %4817 = vmatpush1.bf16.msra.mxu1 %v6105_v55 }
 0x183   :  { %4787 = vmatprep.subr.bf16.mxu0 %v6155_v34  ;;  %4819 = vmatprep.subr.bf16.mxu1 %v6109_v56 }
 0x186   :  { %4789 = vmatpush1.bf16.msra.mxu0 %v6164_v45  ;;  %4821 = vmatpush1.bf16.msra.mxu1 %v6115_v2 }
 0x187   :  { %4791 = vmatprep.subr.bf16.mxu0 %v6167_v46  ;;  %4823 = vmatprep.subr.bf16.mxu1 %v6120_v3 }
 0x18a   :  { %4793 = vmatpush1.bf16.msra.mxu0 %v6174_v57  ;;  %4825 = vmatpush1.bf16.msra.mxu1 %v6128_v14 }
 0x18b   :  { %4795 = vmatprep.subr.bf16.mxu0 %v6177_v58  ;;  %4827 = vmatprep.subr.bf16.mxu1 %v6133_v15 }
 0x18e   :  { %4797 = vmatpush1.bf16.msra.mxu0 %v6182_v63  ;;  %4829 = vmatpush1.bf16.msra.mxu1 %v6143_v26 }
 0x18f   :  { %4799 = vmatprep.subr.bf16.mxu0 %v6185_v1  ;;  %4831 = vmatprep.subr.bf16.mxu1 %v6148_v27 }
 0x192   :  { %4801 = vmatpush1.bf16.msra.mxu0 %v6192_v10  ;;  %4833 = vmatpush1.bf16.msra.mxu1 %v6158_v41 }
 0x193   :  { %4803 = vmatprep.subr.bf16.mxu0 %v6195_v11  ;;  %4835 = vmatprep.subr.bf16.mxu1 %v6161_v42 }
 0x196   :  { %4805 = vmatpush1.bf16.msra.mxu0 %v6200_v16  ;;  %4837 = vmatpush1.bf16.msra.mxu1 %v6170_v53 }
 0x197   :  { %4839 = vmatprep.subr.bf16.mxu0 %v6101_v54  ;;  %4871 = vmatprep.subr.bf16.mxu1 %v6055_v28 }
 0x24c   :  { %v1178_v29 = vpop.f32.mrb[10].mxu0  ;;  %v1249_v38 = vpop.f32.mrb[6].mxu1 }
 0x24d   :  { %v1180_v40 = vpop.f32.mrb[11].mxu0  ;;  %v1251_v43 = vpop.f32.mrb[7].mxu1 }
 0x24e   :  { %v1258_v44 = vcombine.low %v1178_v29, %v1180_v40  ;;  %v1259_v49 = vcombine.low %v1249_v38, %v1251_v43 }
 0x250   :  { %v1266_v50 = vrot.slane %v1258_v44, %v6235_v36  ;;  %v1273_v51 = vrot.slane %v1259_v49, %v6235_v36 }
 0x252   :  { %v1274_v52 = vcombine.low %v1266_v50, %v1273_v51 }
 0x254   :  { %v1281_v59 = vrot.slane %v1274_v52, %v6235_v36 }
 0x256   :  { %v1283_v61 = vadd.f32 %v1281_v59, %v1111_v60 }
 0x258   :  { %v4415_v62 = vmul.f32 -1.442695, %v1283_v61  ;;  %v1291_v20 = vrot.slane %v1283_v61, 1  ;;  %v1302_v5 = vrot.slane %v1283_v61, 3  ;;  %v1299_v12 = vrot.slane %v1283_v61, 2 }
 0x25a   :  { %5666 = vpow2.f32 %v4415_v62  ;;  %v4416_v4 = vmul.f32 -1.442695, %v1291_v20  ;;  %v4417_v7 = vmul.f32 -1.442695, %v1302_v5 }
 0x25b   :  { %v1316_v20 = vld [vmem:[#allocation2 + $0x2] ss:$8 sm:$0xf] }
 0x25c   :  { %5668 = vpow2.f32 %v4416_v4 }
 0x25d   :  { %5670 = vpow2.f32 %v4417_v7 }
 0x264   :  { %v5667_v8 = vpop.eup %5666 }
 0x265   :  { %v1287_v13 = vadd.f32 1.0, %v5667_v8 }
 0x266   :  { %v5669_v17 = vpop.eup %5668 }
 0x267   :  { %5672 = vrcp.f32 %v1287_v13  ;;  %v1296_v19 = vadd.f32 1.0, %v5669_v17  ;;  %v5671_v22 = vpop.eup %5670 }
 0x268   :  { %5674 = vtanh.f32 %v1299_v12  ;;  %v1307_v32 = vadd.f32 1.0, %v5671_v22 }
 0x269   :  { %5676 = vrcp.f32 %v1296_v19 }
 0x26a   :  { %5678 = vrcp.f32 %v1307_v32 }
 0x271   :  { %v5673_v23 = vpop.eup %5672 }
 0x272   :  { %v5675_v24 = vpop.eup %5674 }
 0x273   :  { %v5677_v25 = vpop.eup %5676  ;;  %v1311_v35 = vmul.f32 %v5675_v24, %v5673_v23 }
 0x274   :  { %v1310_v33 = vmul.f32 %v5677_v25, %v6240_v30  ;;  %v5679_v38 = vpop.eup %5678 }
 0x276   :  { %v6281_v29 = vadd.f32 %v1311_v35, %v1310_v33 }
 0x278   :  { %5680 = vtanh.f32 %v6281_v29 }
 0x282   :  { %v5681_v40 = vpop.eup %5680 }
 0x283   :  { %v1314_v43 = vmul.f32 %v5681_v40, %v5679_v38 }
 0x285   :  { %1382 = vmatmul.mubr.f32.vlgmr.msra.gmra.mrb[12].mxu0 %v1314_v43  ;;  %1453 = vmatmul.mubr.f32.vlgmr.msra.gmra.mrb[8].mxu1 %v1314_v43 }
 0x286   :  { %4841 = vmatpush1.bf16.msra.mxu0 %v6123_v6  ;;  %4873 = vmatpush1.bf16.msra.mxu1 %v6078_v37 }
 0x287   :  { %4843 = vmatprep.subr.bf16.mxu0 %v6125_v9  ;;  %4875 = vmatprep.subr.bf16.mxu1 %v6081_v39 }
 0x288   :  { %1586 = vmatprep.mubr.f32.mxu0 %v5952_v0  ;;  %1657 = vmatprep.mubr.f32.mxu1 %v5952_v0 }
 0x28a   :  { %4845 = vmatpush1.bf16.msra.mxu0 %v6137_v18  ;;  %4877 = vmatpush1.bf16.msra.mxu1 %v6092_v47 }
 0x28b   :  { %4847 = vmatprep.subr.bf16.mxu0 %v6140_v21  ;;  %4879 = vmatprep.subr.bf16.mxu1 %v6096_v48 }
 0x28e   :  { %4849 = vmatpush1.bf16.msra.mxu0 %v6151_v31  ;;  %4881 = vmatpush1.bf16.msra.mxu1 %v6105_v55 }
 0x28f   :  { %4851 = vmatprep.subr.bf16.mxu0 %v6155_v34  ;;  %4883 = vmatprep.subr.bf16.mxu1 %v6109_v56 }
 0x292   :  { %4853 = vmatpush1.bf16.msra.mxu0 %v6164_v45  ;;  %4885 = vmatpush1.bf16.msra.mxu1 %v6115_v2 }
 0x293   :  { %4855 = vmatprep.subr.bf16.mxu0 %v6167_v46  ;;  %4887 = vmatprep.subr.bf16.mxu1 %v6120_v3 }
 0x296   :  { %4857 = vmatpush1.bf16.msra.mxu0 %v6174_v57  ;;  %4889 = vmatpush1.bf16.msra.mxu1 %v6128_v14 }
 0x297   :  { %4859 = vmatprep.subr.bf16.mxu0 %v6177_v58  ;;  %4891 = vmatprep.subr.bf16.mxu1 %v6133_v15 }
 0x29a   :  { %4861 = vmatpush1.bf16.msra.mxu0 %v6182_v63  ;;  %4893 = vmatpush1.bf16.msra.mxu1 %v6143_v26 }
 0x29b   :  { %4863 = vmatprep.subr.bf16.mxu0 %v6185_v1  ;;  %4895 = vmatprep.subr.bf16.mxu1 %v6148_v27 }
 0x29e   :  { %4865 = vmatpush1.bf16.msra.mxu0 %v6192_v10  ;;  %4897 = vmatpush1.bf16.msra.mxu1 %v6158_v41 }
 0x29f   :  { %4867 = vmatprep.subr.bf16.mxu0 %v6195_v11  ;;  %4899 = vmatprep.subr.bf16.mxu1 %v6161_v42 }
 0x2a2   :  { %4869 = vmatpush1.bf16.msra.mxu0 %v6200_v16  ;;  %4901 = vmatpush1.bf16.msra.mxu1 %v6170_v53 }
 0x2a3   :  { %4903 = vmatprep.subr.bf16.mxu0 %v6101_v54  ;;  %4935 = vmatprep.subr.bf16.mxu1 %v6055_v28 }
 0x358   :  { %v1383_v30 = vpop.f32.mrb[12].mxu0  ;;  %v1454_v44 = vpop.f32.mrb[8].mxu1 }
 0x359   :  { %v1385_v49 = vpop.f32.mrb[13].mxu0  ;;  %v1456_v50 = vpop.f32.mrb[9].mxu1 }
 0x35a   :  { %v1463_v51 = vcombine.low %v1383_v30, %v1385_v49  ;;  %v1464_v52 = vcombine.low %v1454_v44, %v1456_v50 }
 0x35c   :  { %v1471_v59 = vrot.slane %v1463_v51, %v6235_v36  ;;  %v1478_v60 = vrot.slane %v1464_v52, %v6235_v36 }
 0x35e   :  { %v1479_v61 = vcombine.low %v1471_v59, %v1478_v60 }
 0x360   :  { %v1486_v62 = vrot.slane %v1479_v61, %v6235_v36 }
 0x362   :  { %v1488_v4 = vadd.f32 %v1486_v62, %v1316_v20 }
 0x364   :  { %v4418_v5 = vmul.f32 -1.442695, %v1488_v4  ;;  %v1496_v7 = vrot.slane %v1488_v4, 1  ;;  %v1507_v12 = vrot.slane %v1488_v4, 3  ;;  %v1504_v19 = vrot.slane %v1488_v4, 2 }
 0x366   :  { %5682 = vpow2.f32 %v4418_v5  ;;  %v4419_v8 = vmul.f32 -1.442695, %v1496_v7  ;;  %v4420_v13 = vmul.f32 -1.442695, %v1507_v12 }
 0x367   :  { %v1521_v7 = vld [vmem:[#allocation2 + $0x3] ss:$8 sm:$0xf] }
 0x368   :  { %5684 = vpow2.f32 %v4419_v8 }
 0x369   :  { %5686 = vpow2.f32 %v4420_v13 }
 0x370   :  { %v5683_v17 = vpop.eup %5682 }
 0x371   :  { %v1492_v22 = vadd.f32 1.0, %v5683_v17 }
 0x372   :  { %v5685_v23 = vpop.eup %5684 }
 0x373   :  { %5688 = vrcp.f32 %v1492_v22  ;;  %v1501_v24 = vadd.f32 1.0, %v5685_v23  ;;  %v5687_v25 = vpop.eup %5686 }
 0x374   :  { %5690 = vtanh.f32 %v1504_v19  ;;  %v1512_v38 = vadd.f32 1.0, %v5687_v25 }
 0x375   :  { %5692 = vrcp.f32 %v1501_v24 }
 0x376   :  { %5694 = vrcp.f32 %v1512_v38 }
 0x37d   :  { %v5689_v32 = vpop.eup %5688 }
 0x37e   :  { %v5691_v33 = vpop.eup %5690 }
 0x37f   :  { %v5693_v35 = vpop.eup %5692  ;;  %v1516_v43 = vmul.f32 %v5691_v33, %v5689_v32 }
 0x380   :  { %v1515_v40 = vmul.f32 %v5693_v35, %v6281_v29  ;;  %v5695_v44 = vpop.eup %5694 }
 0x382   :  { %v6322_v30 = vadd.f32 %v1516_v43, %v1515_v40 }
 0x384   :  { %5696 = vtanh.f32 %v6322_v30 }
 0x38e   :  { %v5697_v49 = vpop.eup %5696 }
 0x38f   :  { %v1519_v50 = vmul.f32 %v5697_v49, %v5695_v44 }
 0x391   :  { %1587 = vmatmul.mubr.f32.vlgmr.msra.gmra.mrb[14].mxu0 %v1519_v50  ;;  %1658 = vmatmul.mubr.f32.vlgmr.msra.gmra.mrb[10].mxu1 %v1519_v50 }
 0x392   :  { %4905 = vmatpush1.bf16.msra.mxu0 %v6123_v6  ;;  %4937 = vmatpush1.bf16.msra.mxu1 %v6078_v37 }
 0x393   :  { %4907 = vmatprep.subr.bf16.mxu0 %v6125_v9  ;;  %4939 = vmatprep.subr.bf16.mxu1 %v6081_v39 }
 0x394   :  { %1791 = vmatprep.mubr.f32.mxu0 %v5952_v0  ;;  %1862 = vmatprep.mubr.f32.mxu1 %v5952_v0 }
 0x396   :  { %4909 = vmatpush1.bf16.msra.mxu0 %v6137_v18  ;;  %4941 = vmatpush1.bf16.msra.mxu1 %v6092_v47 }
 0x397   :  { %4911 = vmatprep.subr.bf16.mxu0 %v6140_v21  ;;  %4943 = vmatprep.subr.bf16.mxu1 %v6096_v48 }
 0x39a   :  { %4913 = vmatpush1.bf16.msra.mxu0 %v6151_v31  ;;  %4945 = vmatpush1.bf16.msra.mxu1 %v6105_v55 }
 0x39b   :  { %4915 = vmatprep.subr.bf16.mxu0 %v6155_v34  ;;  %4947 = vmatprep.subr.bf16.mxu1 %v6109_v56 }
 0x39e   :  { %4917 = vmatpush1.bf16.msra.mxu0 %v6164_v45  ;;  %4949 = vmatpush1.bf16.msra.mxu1 %v6115_v2 }
 0x39f   :  { %4919 = vmatprep.subr.bf16.mxu0 %v6167_v46  ;;  %4951 = vmatprep.subr.bf16.mxu1 %v6120_v3 }
 0x3a2   :  { %4921 = vmatpush1.bf16.msra.mxu0 %v6174_v57  ;;  %4953 = vmatpush1.bf16.msra.mxu1 %v6128_v14 }
 0x3a3   :  { %4923 = vmatprep.subr.bf16.mxu0 %v6177_v58  ;;  %4955 = vmatprep.subr.bf16.mxu1 %v6133_v15 }
 0x3a6   :  { %4925 = vmatpush1.bf16.msra.mxu0 %v6182_v63  ;;  %4957 = vmatpush1.bf16.msra.mxu1 %v6143_v26 }
 0x3a7   :  { %4927 = vmatprep.subr.bf16.mxu0 %v6185_v1  ;;  %4959 = vmatprep.subr.bf16.mxu1 %v6148_v27 }
 0x3aa   :  { %4929 = vmatpush1.bf16.msra.mxu0 %v6192_v10  ;;  %4961 = vmatpush1.bf16.msra.mxu1 %v6158_v41 }
 0x3ab   :  { %4931 = vmatprep.subr.bf16.mxu0 %v6195_v11  ;;  %4963 = vmatprep.subr.bf16.mxu1 %v6161_v42 }
 0x3ae   :  { %4933 = vmatpush1.bf16.msra.mxu0 %v6200_v16  ;;  %4965 = vmatpush1.bf16.msra.mxu1 %v6170_v53 }
 0x3af   :  { %4967 = vmatprep.subr.bf16.mxu0 %v6101_v54  ;;  %4999 = vmatprep.subr.bf16.mxu1 %v6055_v28 }
 0x464   :  { %v1588_v29 = vpop.f32.mrb[14].mxu0  ;;  %v1659_v51 = vpop.f32.mrb[10].mxu1 }
 0x465   :  { %v1590_v52 = vpop.f32.mrb[15].mxu0  ;;  %v1661_v59 = vpop.f32.mrb[11].mxu1 }
 0x466   :  { %v1668_v60 = vcombine.low %v1588_v29, %v1590_v52  ;;  %v1669_v61 = vcombine.low %v1659_v51, %v1661_v59 }
 0x468   :  { %v1676_v62 = vrot.slane %v1668_v60, %v6235_v36  ;;  %v1683_v20 = vrot.slane %v1669_v61, %v6235_v36 }
 0x46a   :  { %v1684_v4 = vcombine.low %v1676_v62, %v1683_v20 }
 0x46c   :  { %v1691_v5 = vrot.slane %v1684_v4, %v6235_v36 }
 0x46e   :  { %v1693_v8 = vadd.f32 %v1691_v5, %v1521_v7 }
 0x470   :  { %v4421_v12 = vmul.f32 -1.442695, %v1693_v8  ;;  %v1701_v13 = vrot.slane %v1693_v8, 1  ;;  %v1712_v19 = vrot.slane %v1693_v8, 3  ;;  %v1709_v24 = vrot.slane %v1693_v8, 2 }
 0x472   :  { %5698 = vpow2.f32 %v4421_v12  ;;  %v4422_v17 = vmul.f32 -1.442695, %v1701_v13  ;;  %v4423_v22 = vmul.f32 -1.442695, %v1712_v19 }
 0x473   :  { %v1726_v13 = vld [vmem:[#allocation2 + $0x4] ss:$8 sm:$0xf] }
 0x474   :  { %5700 = vpow2.f32 %v4422_v17 }
 0x475   :  { %5702 = vpow2.f32 %v4423_v22 }
 0x47c   :  { %v5699_v23 = vpop.eup %5698 }
 0x47d   :  { %v1697_v25 = vadd.f32 1.0, %v5699_v23 }
 0x47e   :  { %v5701_v32 = vpop.eup %5700 }
 0x47f   :  { %5704 = vrcp.f32 %v1697_v25  ;;  %v1706_v33 = vadd.f32 1.0, %v5701_v32  ;;  %v5703_v35 = vpop.eup %5702 }
 0x480   :  { %5706 = vtanh.f32 %v1709_v24  ;;  %v1717_v44 = vadd.f32 1.0, %v5703_v35 }
 0x481   :  { %5708 = vrcp.f32 %v1706_v33 }
 0x482   :  { %5710 = vrcp.f32 %v1717_v44 }
 0x489   :  { %v5705_v38 = vpop.eup %5704 }
 0x48a   :  { %v5707_v40 = vpop.eup %5706 }
 0x48b   :  { %v5709_v43 = vpop.eup %5708  ;;  %v1721_v50 = vmul.f32 %v5707_v40, %v5705_v38 }
 0x48c   :  { %v1720_v49 = vmul.f32 %v5709_v43, %v6322_v30  ;;  %v5711_v51 = vpop.eup %5710 }
 0x48e   :  { %v6363_v29 = vadd.f32 %v1721_v50, %v1720_v49 }
 0x490   :  { %5712 = vtanh.f32 %v6363_v29 }
 0x49a   :  { %v5713_v52 = vpop.eup %5712 }
 0x49b   :  { %v1724_v59 = vmul.f32 %v5713_v52, %v5711_v51 }
 0x49d   :  { %1792 = vmatmul.mubr.f32.vlgmr.msra.gmra.mrb[16].mxu0 %v1724_v59  ;;  %1863 = vmatmul.mubr.f32.vlgmr.msra.gmra.mrb[12].mxu1 %v1724_v59 }
 0x49e   :  { %4969 = vmatpush1.bf16.msra.mxu0 %v6123_v6  ;;  %5001 = vmatpush1.bf16.msra.mxu1 %v6078_v37 }
 0x49f   :  { %4971 = vmatprep.subr.bf16.mxu0 %v6125_v9  ;;  %5003 = vmatprep.subr.bf16.mxu1 %v6081_v39 }
 0x4a0   :  { %1996 = vmatprep.mubr.f32.mxu0 %v5952_v0  ;;  %2067 = vmatprep.mubr.f32.mxu1 %v5952_v0 }
 0x4a2   :  { %4973 = vmatpush1.bf16.msra.mxu0 %v6137_v18  ;;  %5005 = vmatpush1.bf16.msra.mxu1 %v6092_v47 }
 0x4a3   :  { %4975 = vmatprep.subr.bf16.mxu0 %v6140_v21  ;;  %5007 = vmatprep.subr.bf16.mxu1 %v6096_v48 }
 0x4a6   :  { %4977 = vmatpush1.bf16.msra.mxu0 %v6151_v31  ;;  %5009 = vmatpush1.bf16.msra.mxu1 %v6105_v55 }
 0x4a7   :  { %4979 = vmatprep.subr.bf16.mxu0 %v6155_v34  ;;  %5011 = vmatprep.subr.bf16.mxu1 %v6109_v56 }
 0x4aa   :  { %4981 = vmatpush1.bf16.msra.mxu0 %v6164_v45  ;;  %5013 = vmatpush1.bf16.msra.mxu1 %v6115_v2 }
 0x4ab   :  { %4983 = vmatprep.subr.bf16.mxu0 %v6167_v46  ;;  %5015 = vmatprep.subr.bf16.mxu1 %v6120_v3 }
 0x4ae   :  { %4985 = vmatpush1.bf16.msra.mxu0 %v6174_v57  ;;  %5017 = vmatpush1.bf16.msra.mxu1 %v6128_v14 }
 0x4af   :  { %4987 = vmatprep.subr.bf16.mxu0 %v6177_v58  ;;  %5019 = vmatprep.subr.bf16.mxu1 %v6133_v15 }
 0x4b2   :  { %4989 = vmatpush1.bf16.msra.mxu0 %v6182_v63  ;;  %5021 = vmatpush1.bf16.msra.mxu1 %v6143_v26 }
 0x4b3   :  { %4991 = vmatprep.subr.bf16.mxu0 %v6185_v1  ;;  %5023 = vmatprep.subr.bf16.mxu1 %v6148_v27 }
 0x4b6   :  { %4993 = vmatpush1.bf16.msra.mxu0 %v6192_v10  ;;  %5025 = vmatpush1.bf16.msra.mxu1 %v6158_v41 }
 0x4b7   :  { %4995 = vmatprep.subr.bf16.mxu0 %v6195_v11  ;;  %5027 = vmatprep.subr.bf16.mxu1 %v6161_v42 }
 0x4ba   :  { %4997 = vmatpush1.bf16.msra.mxu0 %v6200_v16  ;;  %5029 = vmatpush1.bf16.msra.mxu1 %v6170_v53 }
 0x4bb   :  { %5031 = vmatprep.subr.bf16.mxu0 %v6101_v54  ;;  %5063 = vmatprep.subr.bf16.mxu1 %v6055_v28 }
 0x570   :  { %v1793_v30 = vpop.f32.mrb[16].mxu0  ;;  %v1864_v60 = vpop.f32.mrb[12].mxu1 }
 0x571   :  { %v1795_v61 = vpop.f32.mrb[17].mxu0  ;;  %v1866_v62 = vpop.f32.mrb[13].mxu1 }
 0x572   :  { %v1873_v20 = vcombine.low %v1793_v30, %v1795_v61  ;;  %v1874_v4 = vcombine.low %v1864_v60, %v1866_v62 }
 0x574   :  { %v1881_v5 = vrot.slane %v1873_v20, %v6235_v36  ;;  %v1888_v7 = vrot.slane %v1874_v4, %v6235_v36 }
 0x576   :  { %v1889_v8 = vcombine.low %v1881_v5, %v1888_v7 }
 0x578   :  { %v1896_v12 = vrot.slane %v1889_v8, %v6235_v36 }
 0x57a   :  { %v1898_v17 = vadd.f32 %v1896_v12, %v1726_v13 }
 0x57c   :  { %v4424_v19 = vmul.f32 -1.442695, %v1898_v17  ;;  %v1906_v22 = vrot.slane %v1898_v17, 1  ;;  %v1917_v24 = vrot.slane %v1898_v17, 3  ;;  %v1914_v33 = vrot.slane %v1898_v17, 2 }
 0x57e   :  { %5714 = vpow2.f32 %v4424_v19  ;;  %v4425_v23 = vmul.f32 -1.442695, %v1906_v22  ;;  %v4426_v25 = vmul.f32 -1.442695, %v1917_v24 }
 0x57f   :  { %v1931_v22 = vld [vmem:[#allocation2 + $0x5] ss:$8 sm:$0xf] }
 0x580   :  { %5716 = vpow2.f32 %v4425_v23 }
 0x581   :  { %5718 = vpow2.f32 %v4426_v25 }
 0x588   :  { %v5715_v32 = vpop.eup %5714 }
 0x589   :  { %v1902_v35 = vadd.f32 1.0, %v5715_v32 }
 0x58a   :  { %v5717_v38 = vpop.eup %5716 }
 0x58b   :  { %5720 = vrcp.f32 %v1902_v35  ;;  %v1911_v40 = vadd.f32 1.0, %v5717_v38  ;;  %v5719_v43 = vpop.eup %5718 }
 0x58c   :  { %5722 = vtanh.f32 %v1914_v33  ;;  %v1922_v51 = vadd.f32 1.0, %v5719_v43 }
 0x58d   :  { %5724 = vrcp.f32 %v1911_v40 }
 0x58e   :  { %5726 = vrcp.f32 %v1922_v51 }
 0x595   :  { %v5721_v44 = vpop.eup %5720 }
 0x596   :  { %v5723_v49 = vpop.eup %5722 }
 0x597   :  { %v5725_v50 = vpop.eup %5724  ;;  %v1926_v59 = vmul.f32 %v5723_v49, %v5721_v44 }
 0x598   :  { %v1925_v52 = vmul.f32 %v5725_v50, %v6363_v29  ;;  %v5727_v60 = vpop.eup %5726 }
 0x59a   :  { %v6404_v30 = vadd.f32 %v1926_v59, %v1925_v52 }
 0x59c   :  { %5728 = vtanh.f32 %v6404_v30 }
 0x5a6   :  { %v5729_v61 = vpop.eup %5728 }
 0x5a7   :  { %v1929_v62 = vmul.f32 %v5729_v61, %v5727_v60 }
 0x5a9   :  { %1997 = vmatmul.mubr.f32.vlgmr.msra.gmra.mrb[18].mxu0 %v1929_v62  ;;  %2068 = vmatmul.mubr.f32.vlgmr.msra.gmra.mrb[14].mxu1 %v1929_v62 }
 0x5aa   :  { %5033 = vmatpush1.bf16.msra.mxu0 %v6123_v6  ;;  %5065 = vmatpush1.bf16.msra.mxu1 %v6078_v37 }
 0x5ab   :  { %5035 = vmatprep.subr.bf16.mxu0 %v6125_v9  ;;  %5067 = vmatprep.subr.bf16.mxu1 %v6081_v39 }
 0x5ac   :  { %2201 = vmatprep.mubr.f32.mxu0 %v5952_v0  ;;  %2272 = vmatprep.mubr.f32.mxu1 %v5952_v0 }
 0x5ae   :  { %5037 = vmatpush1.bf16.msra.mxu0 %v6137_v18  ;;  %5069 = vmatpush1.bf16.msra.mxu1 %v6092_v47 }
 0x5af   :  { %5039 = vmatprep.subr.bf16.mxu0 %v6140_v21  ;;  %5071 = vmatprep.subr.bf16.mxu1 %v6096_v48 }
 0x5b2   :  { %5041 = vmatpush1.bf16.msra.mxu0 %v6151_v31  ;;  %5073 = vmatpush1.bf16.msra.mxu1 %v6105_v55 }
 0x5b3   :  { %5043 = vmatprep.subr.bf16.mxu0 %v6155_v34  ;;  %5075 = vmatprep.subr.bf16.mxu1 %v6109_v56 }
 0x5b6   :  { %5045 = vmatpush1.bf16.msra.mxu0 %v6164_v45  ;;  %5077 = vmatpush1.bf16.msra.mxu1 %v6115_v2 }
 0x5b7   :  { %5047 = vmatprep.subr.bf16.mxu0 %v6167_v46  ;;  %5079 = vmatprep.subr.bf16.mxu1 %v6120_v3 }
 0x5ba   :  { %5049 = vmatpush1.bf16.msra.mxu0 %v6174_v57  ;;  %5081 = vmatpush1.bf16.msra.mxu1 %v6128_v14 }
 0x5bb   :  { %5051 = vmatprep.subr.bf16.mxu0 %v6177_v58  ;;  %5083 = vmatprep.subr.bf16.mxu1 %v6133_v15 }
 0x5be   :  { %5053 = vmatpush1.bf16.msra.mxu0 %v6182_v63  ;;  %5085 = vmatpush1.bf16.msra.mxu1 %v6143_v26 }
 0x5bf   :  { %5055 = vmatprep.subr.bf16.mxu0 %v6185_v1  ;;  %5087 = vmatprep.subr.bf16.mxu1 %v6148_v27 }
 0x5c2   :  { %5057 = vmatpush1.bf16.msra.mxu0 %v6192_v10  ;;  %5089 = vmatpush1.bf16.msra.mxu1 %v6158_v41 }
 0x5c3   :  { %5059 = vmatprep.subr.bf16.mxu0 %v6195_v11  ;;  %5091 = vmatprep.subr.bf16.mxu1 %v6161_v42 }
 0x5c6   :  { %5061 = vmatpush1.bf16.msra.mxu0 %v6200_v16  ;;  %5093 = vmatpush1.bf16.msra.mxu1 %v6170_v53 }
 0x5c7   :  { %5095 = vmatprep.subr.bf16.mxu0 %v6101_v54  ;;  %5127 = vmatprep.subr.bf16.mxu1 %v6055_v28 }
 0x67c   :  { %v1998_v29 = vpop.f32.mrb[18].mxu0  ;;  %v2069_v20 = vpop.f32.mrb[14].mxu1 }
 0x67d   :  { %v2000_v4 = vpop.f32.mrb[19].mxu0  ;;  %v2071_v5 = vpop.f32.mrb[15].mxu1 }
 0x67e   :  { %v2078_v7 = vcombine.low %v1998_v29, %v2000_v4  ;;  %v2079_v8 = vcombine.low %v2069_v20, %v2071_v5 }
 0x680   :  { %v2086_v12 = vrot.slane %v2078_v7, %v6235_v36  ;;  %v2093_v13 = vrot.slane %v2079_v8, %v6235_v36 }
 0x682   :  { %v2094_v17 = vcombine.low %v2086_v12, %v2093_v13 }
 0x684   :  { %v2101_v19 = vrot.slane %v2094_v17, %v6235_v36 }
 0x686   :  { %v2103_v23 = vadd.f32 %v2101_v19, %v1931_v22 }
 0x688   :  { %v4427_v24 = vmul.f32 -1.442695, %v2103_v23  ;;  %v2111_v25 = vrot.slane %v2103_v23, 1  ;;  %v2122_v33 = vrot.slane %v2103_v23, 3  ;;  %v2119_v40 = vrot.slane %v2103_v23, 2 }
 0x68a   :  { %5730 = vpow2.f32 %v4427_v24  ;;  %v4428_v32 = vmul.f32 -1.442695, %v2111_v25  ;;  %v4429_v35 = vmul.f32 -1.442695, %v2122_v33 }
 0x68b   :  { %v2136_v25 = vld [vmem:[#allocation2 + $0x6] ss:$8 sm:$0xf] }
 0x68c   :  { %5732 = vpow2.f32 %v4428_v32 }
 0x68d   :  { %5734 = vpow2.f32 %v4429_v35 }
 0x694   :  { %v5731_v38 = vpop.eup %5730 }
 0x695   :  { %v2107_v43 = vadd.f32 1.0, %v5731_v38 }
 0x696   :  { %v5733_v44 = vpop.eup %5732 }
 0x697   :  { %5736 = vrcp.f32 %v2107_v43  ;;  %v2116_v49 = vadd.f32 1.0, %v5733_v44  ;;  %v5735_v50 = vpop.eup %5734 }
 0x698   :  { %5738 = vtanh.f32 %v2119_v40  ;;  %v2127_v60 = vadd.f32 1.0, %v5735_v50 }
 0x699   :  { %5740 = vrcp.f32 %v2116_v49 }
 0x69a   :  { %5742 = vrcp.f32 %v2127_v60 }
 0x6a1   :  { %v5737_v51 = vpop.eup %5736 }
 0x6a2   :  { %v5739_v52 = vpop.eup %5738 }
 0x6a3   :  { %v5741_v59 = vpop.eup %5740  ;;  %v2131_v62 = vmul.f32 %v5739_v52, %v5737_v51 }
 0x6a4   :  { %v2130_v61 = vmul.f32 %v5741_v59, %v6404_v30  ;;  %v5743_v20 = vpop.eup %5742 }
 0x6a6   :  { %v6445_v29 = vadd.f32 %v2131_v62, %v2130_v61 }
 0x6a8   :  { %5744 = vtanh.f32 %v6445_v29 }
 0x6b2   :  { %v5745_v4 = vpop.eup %5744 }
 0x6b3   :  { %v2134_v5 = vmul.f32 %v5745_v4, %v5743_v20 }
 0x6b5   :  { %2202 = vmatmul.mubr.f32.vlgmr.msra.gmra.mrb[20].mxu0 %v2134_v5  ;;  %2273 = vmatmul.mubr.f32.vlgmr.msra.gmra.mrb[16].mxu1 %v2134_v5 }
 0x6b6   :  { %5097 = vmatpush1.bf16.msra.mxu0 %v6123_v6  ;;  %5129 = vmatpush1.bf16.msra.mxu1 %v6078_v37 }
 0x6b7   :  { %5099 = vmatprep.subr.bf16.mxu0 %v6125_v9  ;;  %5131 = vmatprep.subr.bf16.mxu1 %v6081_v39 }
 0x6b8   :  { %2406 = vmatprep.mubr.f32.mxu0 %v5952_v0  ;;  %2477 = vmatprep.mubr.f32.mxu1 %v5952_v0 }
 0x6ba   :  { %5101 = vmatpush1.bf16.msra.mxu0 %v6137_v18  ;;  %5133 = vmatpush1.bf16.msra.mxu1 %v6092_v47 }
 0x6bb   :  { %5103 = vmatprep.subr.bf16.mxu0 %v6140_v21  ;;  %5135 = vmatprep.subr.bf16.mxu1 %v6096_v48 }
 0x6be   :  { %5105 = vmatpush1.bf16.msra.mxu0 %v6151_v31  ;;  %5137 = vmatpush1.bf16.msra.mxu1 %v6105_v55 }
 0x6bf   :  { %5107 = vmatprep.subr.bf16.mxu0 %v6155_v34  ;;  %5139 = vmatprep.subr.bf16.mxu1 %v6109_v56 }
 0x6c2   :  { %5109 = vmatpush1.bf16.msra.mxu0 %v6164_v45  ;;  %5141 = vmatpush1.bf16.msra.mxu1 %v6115_v2 }
 0x6c3   :  { %5111 = vmatprep.subr.bf16.mxu0 %v6167_v46  ;;  %5143 = vmatprep.subr.bf16.mxu1 %v6120_v3 }
 0x6c6   :  { %5113 = vmatpush1.bf16.msra.mxu0 %v6174_v57  ;;  %5145 = vmatpush1.bf16.msra.mxu1 %v6128_v14 }
 0x6c7   :  { %5115 = vmatprep.subr.bf16.mxu0 %v6177_v58  ;;  %5147 = vmatprep.subr.bf16.mxu1 %v6133_v15 }
 0x6ca   :  { %5117 = vmatpush1.bf16.msra.mxu0 %v6182_v63  ;;  %5149 = vmatpush1.bf16.msra.mxu1 %v6143_v26 }
 0x6cb   :  { %5119 = vmatprep.subr.bf16.mxu0 %v6185_v1  ;;  %5151 = vmatprep.subr.bf16.mxu1 %v6148_v27 }
 0x6ce   :  { %5121 = vmatpush1.bf16.msra.mxu0 %v6192_v10  ;;  %5153 = vmatpush1.bf16.msra.mxu1 %v6158_v41 }
 0x6cf   :  { %5123 = vmatprep.subr.bf16.mxu0 %v6195_v11  ;;  %5155 = vmatprep.subr.bf16.mxu1 %v6161_v42 }
 0x6d2   :  { %5125 = vmatpush1.bf16.msra.mxu0 %v6200_v16  ;;  %5157 = vmatpush1.bf16.msra.mxu1 %v6170_v53 }
 0x6d3   :  { %5159 = vmatprep.subr.bf16.mxu0 %v6101_v54  ;;  %5191 = vmatprep.subr.bf16.mxu1 %v6055_v28 }
 0x788   :  { %v2203_v30 = vpop.f32.mrb[20].mxu0  ;;  %v2274_v7 = vpop.f32.mrb[16].mxu1 }
 0x789   :  { %v2205_v8 = vpop.f32.mrb[21].mxu0  ;;  %v2276_v12 = vpop.f32.mrb[17].mxu1 }
 0x78a   :  { %v2283_v13 = vcombine.low %v2203_v30, %v2205_v8  ;;  %v2284_v17 = vcombine.low %v2274_v7, %v2276_v12 }
 0x78c   :  { %v2291_v19 = vrot.slane %v2283_v13, %v6235_v36  ;;  %v2298_v22 = vrot.slane %v2284_v17, %v6235_v36 }
 0x78e   :  { %v2299_v23 = vcombine.low %v2291_v19, %v2298_v22 }
 0x790   :  { %v2306_v24 = vrot.slane %v2299_v23, %v6235_v36 }
 0x792   :  { %v2308_v32 = vadd.f32 %v2306_v24, %v2136_v25 }
 0x794   :  { %v4430_v33 = vmul.f32 -1.442695, %v2308_v32  ;;  %v2316_v35 = vrot.slane %v2308_v32, 1  ;;  %v2327_v40 = vrot.slane %v2308_v32, 3  ;;  %v2324_v49 = vrot.slane %v2308_v32, 2 }
 0x796   :  { %5746 = vpow2.f32 %v4430_v33  ;;  %v4431_v38 = vmul.f32 -1.442695, %v2316_v35  ;;  %v4432_v43 = vmul.f32 -1.442695, %v2327_v40 }
 0x797   :  { %v2341_v35 = vld [vmem:[#allocation2 + $0x7] ss:$8 sm:$0xf] }
 0x798   :  { %5748 = vpow2.f32 %v4431_v38 }
 0x799   :  { %5750 = vpow2.f32 %v4432_v43 }
 0x7a0   :  { %v5747_v44 = vpop.eup %5746 }
 0x7a1   :  { %v2312_v50 = vadd.f32 1.0, %v5747_v44 }
 0x7a2   :  { %v5749_v51 = vpop.eup %5748 }
 0x7a3   :  { %5752 = vrcp.f32 %v2312_v50  ;;  %v2321_v52 = vadd.f32 1.0, %v5749_v51  ;;  %v5751_v59 = vpop.eup %5750 }
 0x7a4   :  { %5754 = vtanh.f32 %v2324_v49  ;;  %v2332_v20 = vadd.f32 1.0, %v5751_v59 }
 0x7a5   :  { %5756 = vrcp.f32 %v2321_v52 }
 0x7a6   :  { %5758 = vrcp.f32 %v2332_v20 }
 0x7ad   :  { %v5753_v60 = vpop.eup %5752 }
 0x7ae   :  { %v5755_v61 = vpop.eup %5754 }
 0x7af   :  { %v5757_v62 = vpop.eup %5756  ;;  %v2336_v5 = vmul.f32 %v5755_v61, %v5753_v60 }
 0x7b0   :  { %v2335_v4 = vmul.f32 %v5757_v62, %v6445_v29  ;;  %v5759_v7 = vpop.eup %5758 }
 0x7b2   :  { %v6486_v30 = vadd.f32 %v2336_v5, %v2335_v4 }
 0x7b4   :  { %5760 = vtanh.f32 %v6486_v30 }
 0x7be   :  { %v5761_v8 = vpop.eup %5760 }
 0x7bf   :  { %v2339_v12 = vmul.f32 %v5761_v8, %v5759_v7 }
 0x7c1   :  { %2407 = vmatmul.mubr.f32.vlgmr.msra.gmra.mrb[22].mxu0 %v2339_v12  ;;  %2478 = vmatmul.mubr.f32.vlgmr.msra.gmra.mrb[18].mxu1 %v2339_v12 }
 0x7c2   :  { %5161 = vmatpush1.bf16.msra.mxu0 %v6123_v6  ;;  %5193 = vmatpush1.bf16.msra.mxu1 %v6078_v37 }
 0x7c3   :  { %5163 = vmatprep.subr.bf16.mxu0 %v6125_v9  ;;  %5195 = vmatprep.subr.bf16.mxu1 %v6081_v39 }
 0x7c4   :  { %2611 = vmatprep.mubr.f32.mxu0 %v5952_v0  ;;  %2682 = vmatprep.mubr.f32.mxu1 %v5952_v0 }
 0x7c6   :  { %5165 = vmatpush1.bf16.msra.mxu0 %v6137_v18  ;;  %5197 = vmatpush1.bf16.msra.mxu1 %v6092_v47 }
 0x7c7   :  { %5167 = vmatprep.subr.bf16.mxu0 %v6140_v21  ;;  %5199 = vmatprep.subr.bf16.mxu1 %v6096_v48 }
 0x7ca   :  { %5169 = vmatpush1.bf16.msra.mxu0 %v6151_v31  ;;  %5201 = vmatpush1.bf16.msra.mxu1 %v6105_v55 }
 0x7cb   :  { %5171 = vmatprep.subr.bf16.mxu0 %v6155_v34  ;;  %5203 = vmatprep.subr.bf16.mxu1 %v6109_v56 }
 0x7ce   :  { %5173 = vmatpush1.bf16.msra.mxu0 %v6164_v45  ;;  %5205 = vmatpush1.bf16.msra.mxu1 %v6115_v2 }
 0x7cf   :  { %5175 = vmatprep.subr.bf16.mxu0 %v6167_v46  ;;  %5207 = vmatprep.subr.bf16.mxu1 %v6120_v3 }
 0x7d2   :  { %5177 = vmatpush1.bf16.msra.mxu0 %v6174_v57  ;;  %5209 = vmatpush1.bf16.msra.mxu1 %v6128_v14 }
 0x7d3   :  { %5179 = vmatprep.subr.bf16.mxu0 %v6177_v58  ;;  %5211 = vmatprep.subr.bf16.mxu1 %v6133_v15 }
 0x7d6   :  { %5181 = vmatpush1.bf16.msra.mxu0 %v6182_v63  ;;  %5213 = vmatpush1.bf16.msra.mxu1 %v6143_v26 }
 0x7d7   :  { %5183 = vmatprep.subr.bf16.mxu0 %v6185_v1  ;;  %5215 = vmatprep.subr.bf16.mxu1 %v6148_v27 }
 0x7da   :  { %5185 = vmatpush1.bf16.msra.mxu0 %v6192_v10  ;;  %5217 = vmatpush1.bf16.msra.mxu1 %v6158_v41 }
 0x7db   :  { %5187 = vmatprep.subr.bf16.mxu0 %v6195_v11  ;;  %5219 = vmatprep.subr.bf16.mxu1 %v6161_v42 }
 0x7de   :  { %5189 = vmatpush1.bf16.msra.mxu0 %v6200_v16  ;;  %5221 = vmatpush1.bf16.msra.mxu1 %v6170_v53 }
 0x7df   :  { %5223 = vmatprep.subr.bf16.mxu0 %v6101_v54  ;;  %5255 = vmatprep.subr.bf16.mxu1 %v6055_v28 }
 0x894   :  { %v2408_v29 = vpop.f32.mrb[22].mxu0  ;;  %v2479_v13 = vpop.f32.mrb[18].mxu1 }
 0x895   :  { %v2410_v17 = vpop.f32.mrb[23].mxu0  ;;  %v2481_v19 = vpop.f32.mrb[19].mxu1 }
 0x896   :  { %v2488_v22 = vcombine.low %v2408_v29, %v2410_v17  ;;  %v2489_v23 = vcombine.low %v2479_v13, %v2481_v19 }
 0x898   :  { %v2496_v24 = vrot.slane %v2488_v22, %v6235_v36  ;;  %v2503_v25 = vrot.slane %v2489_v23, %v6235_v36 }
 0x89a   :  { %v2504_v32 = vcombine.low %v2496_v24, %v2503_v25 }
 0x89c   :  { %v2511_v33 = vrot.slane %v2504_v32, %v6235_v36 }
 0x89e   :  { %v2513_v38 = vadd.f32 %v2511_v33, %v2341_v35 }
 0x8a0   :  { %v4433_v40 = vmul.f32 -1.442695, %v2513_v38  ;;  %v2521_v43 = vrot.slane %v2513_v38, 1  ;;  %v2532_v49 = vrot.slane %v2513_v38, 3  ;;  %v2529_v52 = vrot.slane %v2513_v38, 2 }
 0x8a2   :  { %5762 = vpow2.f32 %v4433_v40  ;;  %v4434_v44 = vmul.f32 -1.442695, %v2521_v43  ;;  %v4435_v50 = vmul.f32 -1.442695, %v2532_v49 }
 0x8a3   :  { %v2546_v43 = vld [vmem:[#allocation2 + $0x20] ss:$8 sm:$0xf] }
 0x8a4   :  { %5764 = vpow2.f32 %v4434_v44 }
 0x8a5   :  { %5766 = vpow2.f32 %v4435_v50 }
 0x8ac   :  { %v5763_v51 = vpop.eup %5762 }
 0x8ad   :  { %v2517_v59 = vadd.f32 1.0, %v5763_v51 }
 0x8ae   :  { %v5765_v60 = vpop.eup %5764 }
 0x8af   :  { %5768 = vrcp.f32 %v2517_v59  ;;  %v2526_v61 = vadd.f32 1.0, %v5765_v60  ;;  %v5767_v62 = vpop.eup %5766 }
 0x8b0   :  { %5770 = vtanh.f32 %v2529_v52  ;;  %v2537_v7 = vadd.f32 1.0, %v5767_v62 }
 0x8b1   :  { %5772 = vrcp.f32 %v2526_v61 }
 0x8b2   :  { %5774 = vrcp.f32 %v2537_v7 }
 0x8b9   :  { %v5769_v20 = vpop.eup %5768 }
 0x8ba   :  { %v5771_v4 = vpop.eup %5770 }
 0x8bb   :  { %v5773_v5 = vpop.eup %5772  ;;  %v2541_v12 = vmul.f32 %v5771_v4, %v5769_v20 }
 0x8bc   :  { %v2540_v8 = vmul.f32 %v5773_v5, %v6486_v30  ;;  %v5775_v13 = vpop.eup %5774 }
 0x8be   :  { %v6527_v29 = vadd.f32 %v2541_v12, %v2540_v8 }
 0x8c0   :  { %5776 = vtanh.f32 %v6527_v29 }
 0x8ca   :  { %v5777_v17 = vpop.eup %5776 }
 0x8cb   :  { %v2544_v19 = vmul.f32 %v5777_v17, %v5775_v13 }
 0x8cd   :  { %2612 = vmatmul.mubr.f32.vlgmr.msra.gmra.mrb[24].mxu0 %v2544_v19  ;;  %2683 = vmatmul.mubr.f32.vlgmr.msra.gmra.mrb[20].mxu1 %v2544_v19 }
 0x8ce   :  { %5225 = vmatpush1.bf16.msra.mxu0 %v6123_v6  ;;  %5257 = vmatpush1.bf16.msra.mxu1 %v6078_v37 }
 0x8cf   :  { %5227 = vmatprep.subr.bf16.mxu0 %v6125_v9  ;;  %5259 = vmatprep.subr.bf16.mxu1 %v6081_v39 }
 0x8d0   :  { %2816 = vmatprep.mubr.f32.mxu0 %v5952_v0  ;;  %2887 = vmatprep.mubr.f32.mxu1 %v5952_v0 }
 0x8d2   :  { %5229 = vmatpush1.bf16.msra.mxu0 %v6137_v18  ;;  %5261 = vmatpush1.bf16.msra.mxu1 %v6092_v47 }
 0x8d3   :  { %5231 = vmatprep.subr.bf16.mxu0 %v6140_v21  ;;  %5263 = vmatprep.subr.bf16.mxu1 %v6096_v48 }
 0x8d6   :  { %5233 = vmatpush1.bf16.msra.mxu0 %v6151_v31  ;;  %5265 = vmatpush1.bf16.msra.mxu1 %v6105_v55 }
 0x8d7   :  { %5235 = vmatprep.subr.bf16.mxu0 %v6155_v34  ;;  %5267 = vmatprep.subr.bf16.mxu1 %v6109_v56 }
 0x8da   :  { %5237 = vmatpush1.bf16.msra.mxu0 %v6164_v45  ;;  %5269 = vmatpush1.bf16.msra.mxu1 %v6115_v2 }
 0x8db   :  { %5239 = vmatprep.subr.bf16.mxu0 %v6167_v46  ;;  %5271 = vmatprep.subr.bf16.mxu1 %v6120_v3 }
 0x8de   :  { %5241 = vmatpush1.bf16.msra.mxu0 %v6174_v57  ;;  %5273 = vmatpush1.bf16.msra.mxu1 %v6128_v14 }
 0x8df   :  { %5243 = vmatprep.subr.bf16.mxu0 %v6177_v58  ;;  %5275 = vmatprep.subr.bf16.mxu1 %v6133_v15 }
 0x8e2   :  { %5245 = vmatpush1.bf16.msra.mxu0 %v6182_v63  ;;  %5277 = vmatpush1.bf16.msra.mxu1 %v6143_v26 }
 0x8e3   :  { %5247 = vmatprep.subr.bf16.mxu0 %v6185_v1  ;;  %5279 = vmatprep.subr.bf16.mxu1 %v6148_v27 }
 0x8e6   :  { %5249 = vmatpush1.bf16.msra.mxu0 %v6192_v10  ;;  %5281 = vmatpush1.bf16.msra.mxu1 %v6158_v41 }
 0x8e7   :  { %5251 = vmatprep.subr.bf16.mxu0 %v6195_v11  ;;  %5283 = vmatprep.subr.bf16.mxu1 %v6161_v42 }
 0x8ea   :  { %5253 = vmatpush1.bf16.msra.mxu0 %v6200_v16  ;;  %5285 = vmatpush1.bf16.msra.mxu1 %v6170_v53 }
 0x8eb   :  { %5287 = vmatprep.subr.bf16.mxu0 %v6101_v54  ;;  %5319 = vmatprep.subr.bf16.mxu1 %v6055_v28 }
 0x9a0   :  { %v2613_v30 = vpop.f32.mrb[24].mxu0  ;;  %v2684_v22 = vpop.f32.mrb[20].mxu1 }
 0x9a1   :  { %v2615_v23 = vpop.f32.mrb[25].mxu0  ;;  %v2686_v24 = vpop.f32.mrb[21].mxu1 }
 0x9a2   :  { %v2693_v25 = vcombine.low %v2613_v30, %v2615_v23  ;;  %v2694_v32 = vcombine.low %v2684_v22, %v2686_v24 }
 0x9a4   :  { %v2701_v33 = vrot.slane %v2693_v25, %v6235_v36  ;;  %v2708_v35 = vrot.slane %v2694_v32, %v6235_v36 }
 0x9a6   :  { %v2709_v38 = vcombine.low %v2701_v33, %v2708_v35 }
 0x9a8   :  { %v2716_v40 = vrot.slane %v2709_v38, %v6235_v36 }
 0x9aa   :  { %v2718_v44 = vadd.f32 %v2716_v40, %v2546_v43 }
 0x9ac   :  { %v4436_v49 = vmul.f32 -1.442695, %v2718_v44  ;;  %v2726_v50 = vrot.slane %v2718_v44, 1  ;;  %v2737_v52 = vrot.slane %v2718_v44, 3  ;;  %v2734_v61 = vrot.slane %v2718_v44, 2 }
 0x9ae   :  { %5778 = vpow2.f32 %v4436_v49  ;;  %v4437_v51 = vmul.f32 -1.442695, %v2726_v50  ;;  %v4438_v59 = vmul.f32 -1.442695, %v2737_v52 }
 0x9af   :  { %v2751_v50 = vld [vmem:[#allocation2 + $0x21] ss:$8 sm:$0xf] }
 0x9b0   :  { %5780 = vpow2.f32 %v4437_v51 }
 0x9b1   :  { %5782 = vpow2.f32 %v4438_v59 }
 0x9b8   :  { %v5779_v60 = vpop.eup %5778 }
 0x9b9   :  { %v2722_v62 = vadd.f32 1.0, %v5779_v60 }
 0x9ba   :  { %v5781_v20 = vpop.eup %5780 }
 0x9bb   :  { %5784 = vrcp.f32 %v2722_v62  ;;  %v2731_v4 = vadd.f32 1.0, %v5781_v20  ;;  %v5783_v5 = vpop.eup %5782 }
 0x9bc   :  { %5786 = vtanh.f32 %v2734_v61  ;;  %v2742_v13 = vadd.f32 1.0, %v5783_v5 }
 0x9bd   :  { %5788 = vrcp.f32 %v2731_v4 }
 0x9be   :  { %5790 = vrcp.f32 %v2742_v13 }
 0x9c5   :  { %v5785_v7 = vpop.eup %5784 }
 0x9c6   :  { %v5787_v8 = vpop.eup %5786 }
 0x9c7   :  { %v5789_v12 = vpop.eup %5788  ;;  %v2746_v19 = vmul.f32 %v5787_v8, %v5785_v7 }
 0x9c8   :  { %v2745_v17 = vmul.f32 %v5789_v12, %v6527_v29  ;;  %v5791_v22 = vpop.eup %5790 }
 0x9ca   :  { %v6568_v30 = vadd.f32 %v2746_v19, %v2745_v17 }
 0x9cc   :  { %5792 = vtanh.f32 %v6568_v30 }
 0x9d6   :  { %v5793_v23 = vpop.eup %5792 }
 0x9d7   :  { %v2749_v24 = vmul.f32 %v5793_v23, %v5791_v22 }
 0x9d9   :  { %2817 = vmatmul.mubr.f32.vlgmr.msra.gmra.mrb[26].mxu0 %v2749_v24  ;;  %2888 = vmatmul.mubr.f32.vlgmr.msra.gmra.mrb[22].mxu1 %v2749_v24 }
 0x9da   :  { %5289 = vmatpush1.bf16.msra.mxu0 %v6123_v6  ;;  %5321 = vmatpush1.bf16.msra.mxu1 %v6078_v37 }
 0x9db   :  { %5291 = vmatprep.subr.bf16.mxu0 %v6125_v9  ;;  %5323 = vmatprep.subr.bf16.mxu1 %v6081_v39 }
 0x9dc   :  { %3021 = vmatprep.mubr.f32.mxu0 %v5952_v0  ;;  %3092 = vmatprep.mubr.f32.mxu1 %v5952_v0 }
 0x9de   :  { %5293 = vmatpush1.bf16.msra.mxu0 %v6137_v18  ;;  %5325 = vmatpush1.bf16.msra.mxu1 %v6092_v47 }
 0x9df   :  { %5295 = vmatprep.subr.bf16.mxu0 %v6140_v21  ;;  %5327 = vmatprep.subr.bf16.mxu1 %v6096_v48 }
 0x9e2   :  { %5297 = vmatpush1.bf16.msra.mxu0 %v6151_v31  ;;  %5329 = vmatpush1.bf16.msra.mxu1 %v6105_v55 }
 0x9e3   :  { %5299 = vmatprep.subr.bf16.mxu0 %v6155_v34  ;;  %5331 = vmatprep.subr.bf16.mxu1 %v6109_v56 }
 0x9e6   :  { %5301 = vmatpush1.bf16.msra.mxu0 %v6164_v45  ;;  %5333 = vmatpush1.bf16.msra.mxu1 %v6115_v2 }
 0x9e7   :  { %5303 = vmatprep.subr.bf16.mxu0 %v6167_v46  ;;  %5335 = vmatprep.subr.bf16.mxu1 %v6120_v3 }
 0x9ea   :  { %5305 = vmatpush1.bf16.msra.mxu0 %v6174_v57  ;;  %5337 = vmatpush1.bf16.msra.mxu1 %v6128_v14 }
 0x9eb   :  { %5307 = vmatprep.subr.bf16.mxu0 %v6177_v58  ;;  %5339 = vmatprep.subr.bf16.mxu1 %v6133_v15 }
 0x9ee   :  { %5309 = vmatpush1.bf16.msra.mxu0 %v6182_v63  ;;  %5341 = vmatpush1.bf16.msra.mxu1 %v6143_v26 }
 0x9ef   :  { %5311 = vmatprep.subr.bf16.mxu0 %v6185_v1  ;;  %5343 = vmatprep.subr.bf16.mxu1 %v6148_v27 }
 0x9f2   :  { %5313 = vmatpush1.bf16.msra.mxu0 %v6192_v10  ;;  %5345 = vmatpush1.bf16.msra.mxu1 %v6158_v41 }
 0x9f3   :  { %5315 = vmatprep.subr.bf16.mxu0 %v6195_v11  ;;  %5347 = vmatprep.subr.bf16.mxu1 %v6161_v42 }
 0x9f6   :  { %5317 = vmatpush1.bf16.msra.mxu0 %v6200_v16  ;;  %5349 = vmatpush1.bf16.msra.mxu1 %v6170_v53 }
 0x9f7   :  { %5351 = vmatprep.subr.bf16.mxu0 %v6101_v54  ;;  %5383 = vmatprep.subr.bf16.mxu1 %v6055_v28 }
 0xaac   :  { %v2818_v29 = vpop.f32.mrb[26].mxu0  ;;  %v2889_v25 = vpop.f32.mrb[22].mxu1 }
 0xaad   :  { %v2820_v32 = vpop.f32.mrb[27].mxu0  ;;  %v2891_v33 = vpop.f32.mrb[23].mxu1 }
 0xaae   :  { %v2898_v35 = vcombine.low %v2818_v29, %v2820_v32  ;;  %v2899_v38 = vcombine.low %v2889_v25, %v2891_v33 }
 0xab0   :  { %v2906_v40 = vrot.slane %v2898_v35, %v6235_v36  ;;  %v2913_v43 = vrot.slane %v2899_v38, %v6235_v36 }
 0xab2   :  { %v2914_v44 = vcombine.low %v2906_v40, %v2913_v43 }
 0xab4   :  { %v2921_v49 = vrot.slane %v2914_v44, %v6235_v36 }
 0xab6   :  { %v2923_v51 = vadd.f32 %v2921_v49, %v2751_v50 }
 0xab8   :  { %v4439_v52 = vmul.f32 -1.442695, %v2923_v51  ;;  %v2931_v59 = vrot.slane %v2923_v51, 1  ;;  %v2942_v61 = vrot.slane %v2923_v51, 3  ;;  %v2939_v4 = vrot.slane %v2923_v51, 2 }
 0xaba   :  { %5794 = vpow2.f32 %v4439_v52  ;;  %v4440_v60 = vmul.f32 -1.442695, %v2931_v59  ;;  %v4441_v62 = vmul.f32 -1.442695, %v2942_v61 }
 0xabb   :  { %v2956_v59 = vld [vmem:[#allocation2 + $0x22] ss:$8 sm:$0xf] }
 0xabc   :  { %5796 = vpow2.f32 %v4440_v60 }
 0xabd   :  { %5798 = vpow2.f32 %v4441_v62 }
 0xac4   :  { %v5795_v20 = vpop.eup %5794 }
 0xac5   :  { %v2927_v5 = vadd.f32 1.0, %v5795_v20 }
 0xac6   :  { %v5797_v7 = vpop.eup %5796 }
 0xac7   :  { %5800 = vrcp.f32 %v2927_v5  ;;  %v2936_v8 = vadd.f32 1.0, %v5797_v7  ;;  %v5799_v12 = vpop.eup %5798 }
 0xac8   :  { %5802 = vtanh.f32 %v2939_v4  ;;  %v2947_v22 = vadd.f32 1.0, %v5799_v12 }
 0xac9   :  { %5804 = vrcp.f32 %v2936_v8 }
 0xaca   :  { %5806 = vrcp.f32 %v2947_v22 }
 0xad1   :  { %v5801_v13 = vpop.eup %5800 }
 0xad2   :  { %v5803_v17 = vpop.eup %5802 }
 0xad3   :  { %v5805_v19 = vpop.eup %5804  ;;  %v2951_v24 = vmul.f32 %v5803_v17, %v5801_v13 }
 0xad4   :  { %v2950_v23 = vmul.f32 %v5805_v19, %v6568_v30  ;;  %v5807_v25 = vpop.eup %5806 }
 0xad6   :  { %v6609_v29 = vadd.f32 %v2951_v24, %v2950_v23 }
 0xad8   :  { %5808 = vtanh.f32 %v6609_v29 }
 0xae2   :  { %v5809_v32 = vpop.eup %5808 }
 0xae3   :  { %v2954_v33 = vmul.f32 %v5809_v32, %v5807_v25 }
 0xae5   :  { %3022 = vmatmul.mubr.f32.vlgmr.msra.gmra.mrb[28].mxu0 %v2954_v33  ;;  %3093 = vmatmul.mubr.f32.vlgmr.msra.gmra.mrb[24].mxu1 %v2954_v33 }
 0xae6   :  { %5353 = vmatpush1.bf16.msra.mxu0 %v6123_v6  ;;  %5385 = vmatpush1.bf16.msra.mxu1 %v6078_v37 }
 0xae7   :  { %5355 = vmatprep.subr.bf16.mxu0 %v6125_v9  ;;  %5387 = vmatprep.subr.bf16.mxu1 %v6081_v39 }
 0xae8   :  { %3226 = vmatprep.mubr.f32.mxu0 %v5952_v0  ;;  %3297 = vmatprep.mubr.f32.mxu1 %v5952_v0 }
 0xaea   :  { %5357 = vmatpush1.bf16.msra.mxu0 %v6137_v18  ;;  %5389 = vmatpush1.bf16.msra.mxu1 %v6092_v47 }
 0xaeb   :  { %5359 = vmatprep.subr.bf16.mxu0 %v6140_v21  ;;  %5391 = vmatprep.subr.bf16.mxu1 %v6096_v48 }
 0xaee   :  { %5361 = vmatpush1.bf16.msra.mxu0 %v6151_v31  ;;  %5393 = vmatpush1.bf16.msra.mxu1 %v6105_v55 }
 0xaef   :  { %5363 = vmatprep.subr.bf16.mxu0 %v6155_v34  ;;  %5395 = vmatprep.subr.bf16.mxu1 %v6109_v56 }
 0xaf2   :  { %5365 = vmatpush1.bf16.msra.mxu0 %v6164_v45  ;;  %5397 = vmatpush1.bf16.msra.mxu1 %v6115_v2 }
 0xaf3   :  { %5367 = vmatprep.subr.bf16.mxu0 %v6167_v46  ;;  %5399 = vmatprep.subr.bf16.mxu1 %v6120_v3 }
 0xaf6   :  { %5369 = vmatpush1.bf16.msra.mxu0 %v6174_v57  ;;  %5401 = vmatpush1.bf16.msra.mxu1 %v6128_v14 }
 0xaf7   :  { %5371 = vmatprep.subr.bf16.mxu0 %v6177_v58  ;;  %5403 = vmatprep.subr.bf16.mxu1 %v6133_v15 }
 0xafa   :  { %5373 = vmatpush1.bf16.msra.mxu0 %v6182_v63  ;;  %5405 = vmatpush1.bf16.msra.mxu1 %v6143_v26 }
 0xafb   :  { %5375 = vmatprep.subr.bf16.mxu0 %v6185_v1  ;;  %5407 = vmatprep.subr.bf16.mxu1 %v6148_v27 }
 0xafe   :  { %5377 = vmatpush1.bf16.msra.mxu0 %v6192_v10  ;;  %5409 = vmatpush1.bf16.msra.mxu1 %v6158_v41 }
 0xaff   :  { %5379 = vmatprep.subr.bf16.mxu0 %v6195_v11  ;;  %5411 = vmatprep.subr.bf16.mxu1 %v6161_v42 }
 0xb02   :  { %5381 = vmatpush1.bf16.msra.mxu0 %v6200_v16  ;;  %5413 = vmatpush1.bf16.msra.mxu1 %v6170_v53 }
 0xb03   :  { %5415 = vmatprep.subr.bf16.mxu0 %v6101_v54  ;;  %5447 = vmatprep.subr.bf16.mxu1 %v6055_v28 }
 0xbb8   :  { %v3023_v30 = vpop.f32.mrb[28].mxu0  ;;  %v3094_v35 = vpop.f32.mrb[24].mxu1 }
 0xbb9   :  { %v3025_v38 = vpop.f32.mrb[29].mxu0  ;;  %v3096_v40 = vpop.f32.mrb[25].mxu1 }
 0xbba   :  { %v3103_v43 = vcombine.low %v3023_v30, %v3025_v38  ;;  %v3104_v44 = vcombine.low %v3094_v35, %v3096_v40 }
 0xbbc   :  { %v3111_v49 = vrot.slane %v3103_v43, %v6235_v36  ;;  %v3118_v50 = vrot.slane %v3104_v44, %v6235_v36 }
 0xbbe   :  { %v3119_v51 = vcombine.low %v3111_v49, %v3118_v50 }
 0xbc0   :  { %v3126_v52 = vrot.slane %v3119_v51, %v6235_v36 }
 0xbc2   :  { %v3128_v60 = vadd.f32 %v3126_v52, %v2956_v59 }
 0xbc4   :  { %v4442_v61 = vmul.f32 -1.442695, %v3128_v60  ;;  %v3136_v62 = vrot.slane %v3128_v60, 1  ;;  %v3147_v4 = vrot.slane %v3128_v60, 3  ;;  %v3144_v8 = vrot.slane %v3128_v60, 2 }
 0xbc6   :  { %5810 = vpow2.f32 %v4442_v61  ;;  %v4443_v20 = vmul.f32 -1.442695, %v3136_v62  ;;  %v4444_v5 = vmul.f32 -1.442695, %v3147_v4 }
 0xbc7   :  { %v3161_v62 = vld [vmem:[#allocation2 + $0x23] ss:$8 sm:$0xf] }
 0xbc8   :  { %5812 = vpow2.f32 %v4443_v20 }
 0xbc9   :  { %5814 = vpow2.f32 %v4444_v5 }
 0xbd0   :  { %v5811_v7 = vpop.eup %5810 }
 0xbd1   :  { %v3132_v12 = vadd.f32 1.0, %v5811_v7 }
 0xbd2   :  { %v5813_v13 = vpop.eup %5812 }
 0xbd3   :  { %5816 = vrcp.f32 %v3132_v12  ;;  %v3141_v17 = vadd.f32 1.0, %v5813_v13  ;;  %v5815_v19 = vpop.eup %5814 }
 0xbd4   :  { %5818 = vtanh.f32 %v3144_v8  ;;  %v3152_v25 = vadd.f32 1.0, %v5815_v19 }
 0xbd5   :  { %5820 = vrcp.f32 %v3141_v17 }
 0xbd6   :  { %5822 = vrcp.f32 %v3152_v25 }
 0xbdd   :  { %v5817_v22 = vpop.eup %5816 }
 0xbde   :  { %v5819_v23 = vpop.eup %5818 }
 0xbdf   :  { %v5821_v24 = vpop.eup %5820  ;;  %v3156_v33 = vmul.f32 %v5819_v23, %v5817_v22 }
 0xbe0   :  { %v3155_v32 = vmul.f32 %v5821_v24, %v6609_v29  ;;  %v5823_v35 = vpop.eup %5822 }
 0xbe2   :  { %v6650_v30 = vadd.f32 %v3156_v33, %v3155_v32 }
 0xbe4   :  { %5824 = vtanh.f32 %v6650_v30 }
 0xbee   :  { %v5825_v38 = vpop.eup %5824 }
 0xbef   :  { %v3159_v40 = vmul.f32 %v5825_v38, %v5823_v35 }
 0xbf1   :  { %3227 = vmatmul.mubr.f32.vlgmr.msra.gmra.mrb[30].mxu0 %v3159_v40  ;;  %3298 = vmatmul.mubr.f32.vlgmr.msra.gmra.mrb[26].mxu1 %v3159_v40 }
 0xbf2   :  { %5417 = vmatpush1.bf16.msra.mxu0 %v6123_v6  ;;  %5449 = vmatpush1.bf16.msra.mxu1 %v6078_v37 }
 0xbf3   :  { %5419 = vmatprep.subr.bf16.mxu0 %v6125_v9  ;;  %5451 = vmatprep.subr.bf16.mxu1 %v6081_v39 }
 0xbf4   :  { %3431 = vmatprep.mubr.f32.mxu0 %v5952_v0  ;;  %3502 = vmatprep.mubr.f32.mxu1 %v5952_v0 }
 0xbf6   :  { %5421 = vmatpush1.bf16.msra.mxu0 %v6137_v18  ;;  %5453 = vmatpush1.bf16.msra.mxu1 %v6092_v47 }
 0xbf7   :  { %5423 = vmatprep.subr.bf16.mxu0 %v6140_v21  ;;  %5455 = vmatprep.subr.bf16.mxu1 %v6096_v48 }
 0xbfa   :  { %5425 = vmatpush1.bf16.msra.mxu0 %v6151_v31  ;;  %5457 = vmatpush1.bf16.msra.mxu1 %v6105_v55 }
 0xbfb   :  { %5427 = vmatprep.subr.bf16.mxu0 %v6155_v34  ;;  %5459 = vmatprep.subr.bf16.mxu1 %v6109_v56 }
 0xbfe   :  { %5429 = vmatpush1.bf16.msra.mxu0 %v6164_v45  ;;  %5461 = vmatpush1.bf16.msra.mxu1 %v6115_v2 }
 0xbff   :  { %5431 = vmatprep.subr.bf16.mxu0 %v6167_v46  ;;  %5463 = vmatprep.subr.bf16.mxu1 %v6120_v3 }
 0xc02   :  { %5433 = vmatpush1.bf16.msra.mxu0 %v6174_v57  ;;  %5465 = vmatpush1.bf16.msra.mxu1 %v6128_v14 }
 0xc03   :  { %5435 = vmatprep.subr.bf16.mxu0 %v6177_v58  ;;  %5467 = vmatprep.subr.bf16.mxu1 %v6133_v15 }
 0xc06   :  { %5437 = vmatpush1.bf16.msra.mxu0 %v6182_v63  ;;  %5469 = vmatpush1.bf16.msra.mxu1 %v6143_v26 }
 0xc07   :  { %5439 = vmatprep.subr.bf16.mxu0 %v6185_v1  ;;  %5471 = vmatprep.subr.bf16.mxu1 %v6148_v27 }
 0xc0a   :  { %5441 = vmatpush1.bf16.msra.mxu0 %v6192_v10  ;;  %5473 = vmatpush1.bf16.msra.mxu1 %v6158_v41 }
 0xc0b   :  { %5443 = vmatprep.subr.bf16.mxu0 %v6195_v11  ;;  %5475 = vmatprep.subr.bf16.mxu1 %v6161_v42 }
 0xc0e   :  { %5445 = vmatpush1.bf16.msra.mxu0 %v6200_v16  ;;  %5477 = vmatpush1.bf16.msra.mxu1 %v6170_v53 }
 0xc0f   :  { %5479 = vmatprep.subr.bf16.mxu0 %v6101_v54  ;;  %5511 = vmatprep.subr.bf16.mxu1 %v6055_v28 }
 0xcc4   :  { %v3228_v29 = vpop.f32.mrb[30].mxu0  ;;  %v3299_v43 = vpop.f32.mrb[26].mxu1 }
 0xcc5   :  { %v3230_v44 = vpop.f32.mrb[31].mxu0  ;;  %v3301_v49 = vpop.f32.mrb[27].mxu1 }
 0xcc6   :  { %v3308_v50 = vcombine.low %v3228_v29, %v3230_v44  ;;  %v3309_v51 = vcombine.low %v3299_v43, %v3301_v49 }
 0xcc8   :  { %v3316_v52 = vrot.slane %v3308_v50, %v6235_v36  ;;  %v3323_v59 = vrot.slane %v3309_v51, %v6235_v36  ;;  %v3776_v50 = vld [vmem:[#allocation6] sm:$0xff]  ;;  %v3777_v51 = vld [vmem:[#allocation6 + $0x8] sm:$0xff] }
 0xcca   :  { %v3324_v60 = vcombine.low %v3316_v52, %v3323_v59  ;;  %v5543_v52 = vpack.c.bf16 %v3777_v51, %v3776_v50  ;;  %v5955_v59 = vmov 0.0|0.0  }
 0xccc   :  { %v3331_v61 = vrot.slane %v3324_v60, %v6235_v36  ;;  %v3778_v60 = vld [vmem:[#allocation6 + $0x10] sm:$0xff] }
 0xcce   :  { %v3333_v20 = vadd.f32 %v3331_v61, %v3161_v62  ;;  %v3779_v61 = vld [vmem:[#allocation6 + $0x18] sm:$0xff] }
 0xccf   :  { %v5546_v62 = vpack.c.bf16 %v3779_v61, %v3778_v60 }
 0xcd0   :  { %v4445_v4 = vmul.f32 -1.442695, %v3333_v20  ;;  %v3341_v5 = vrot.slane %v3333_v20, 1  ;;  %v3352_v28 = vrot.slane %v3333_v20, 3  ;;  %v3349_v12 = vrot.slane %v3333_v20, 2  ;;  %v3780_v20 = vld [vmem:[#allocation6 + $0x20] sm:$0xff] }
 0xcd2   :  { %5826 = vpow2.f32 %v4445_v4  ;;  %v4446_v54 = vmul.f32 -1.442695, %v3341_v5  ;;  %v4447_v7 = vmul.f32 -1.442695, %v3352_v28  ;;  %v3781_v4 = vld [vmem:[#allocation6 + $0x28] sm:$0xff] }
 0xcd3   :  { %v3793_v5 = vld [vmem:[#allocation6 + $0x80] sm:$0xf]  ;;  %v3943_v28 = vld [vmem:[#allocation6 + $0x88] sm:$0xf] }
 0xcd4   :  { %5828 = vpow2.f32 %v4446_v54  ;;  %v3792_v54 = vld [vmem:[%s6812_s1] sm:$0x1] }
 0xcd5   :  { %5830 = vpow2.f32 %v4447_v7  ;;  %v5549_v7 = vpack.c.bf16 %v3781_v4, %v3780_v20 }
 0xcdc   :  { %v5827_v8 = vpop.eup %5826 }
 0xcdd   :  { %v3337_v13 = vadd.f32 1.0, %v5827_v8  ;;  %v3782_v8 = vld [vmem:[#allocation6 + $0x30] sm:$0xff] }
 0xcde   :  { %v5829_v17 = vpop.eup %5828 }
 0xcdf   :  { %5832 = vrcp.f32 %v3337_v13  ;;  %v3346_v19 = vadd.f32 1.0, %v5829_v17  ;;  %v5831_v22 = vpop.eup %5830  ;;  %v3942_v13 = vld [vmem:[%s6812_s1 + $0x1] sm:$0x1]  ;;  %v4022_v17 = vld [vmem:[#allocation6 + $0x90] sm:$0xf] }
 0xce0   :  { %5834 = vtanh.f32 %v3349_v12  ;;  %v3357_v32 = vadd.f32 1.0, %v5831_v22  ;;  %v3783_v12 = vld [vmem:[#allocation6 + $0x38] sm:$0xff]  ;;  %v3784_v22 = vld [vmem:[#allocation6 + $0x40] sm:$0xff] }
 0xce1   :  { %5836 = vrcp.f32 %v3346_v19  ;;  %v5552_v19 = vpack.c.bf16 %v3783_v12, %v3782_v8 }
 0xce2   :  { %5838 = vrcp.f32 %v3357_v32  ;;  %v3787_v32 = vld [vmem:[#allocation6 + $0x58] sm:$0xff] }
 0xce9   :  { %v5833_v23 = vpop.eup %5832 }
 0xcea   :  { %v5835_v24 = vpop.eup %5834 }
 0xceb   :  { %v5837_v25 = vpop.eup %5836  ;;  %v3361_v35 = vmul.f32 %v5835_v24, %v5833_v23  ;;  %v3785_v23 = vld [vmem:[#allocation6 + $0x48] sm:$0xff] }
 0xcec   :  { %v3360_v33 = vmul.f32 %v5837_v25, %v6650_v30  ;;  %v5839_v40 = vpop.eup %5838  ;;  %v5555_v24 = vpack.c.bf16 %v3785_v23, %v3784_v22  ;;  %v3786_v25 = vld [vmem:[#allocation6 + $0x50] sm:$0xff] }
 0xcee   :  { %v6691_v38 = vadd.f32 %v3361_v35, %v3360_v33  ;;  %v5558_v33 = vpack.c.bf16 %v3787_v32, %v3786_v25  ;;  %v3788_v35 = vld [vmem:[#allocation6 + $0x60] sm:$0xff] }
 0xcf0   :  { %5840 = vtanh.f32 %v6691_v38 }
 0xcfa   :  { %v5841_v29 = vpop.eup %5840 }
 0xcfb   :  { %v3364_v43 = vmul.f32 %v5841_v29, %v5839_v40  ;;  %v3790_v29 = vld [vmem:[#allocation6 + $0x70] sm:$0xff] }
 0xcfd   :  { %3432 = vmatmul.mubr.f32.vlgmr.msra.gmra.mrb[32].mxu0 %v3364_v43  ;;  %3503 = vmatmul.mubr.f32.vlgmr.msra.gmra.mrb[28].mxu1 %v3364_v43  ;;  %v3791_v43 = vld [vmem:[#allocation6 + $0x78] sm:$0xff] }
 0xcfe   :  { %5481 = vmatpush1.bf16.msra.mxu0 %v6123_v6  ;;  %5513 = vmatpush1.bf16.msra.mxu1 %v6078_v37 }
 0xcff   :  { %5483 = vmatprep.subr.bf16.mxu0 %v6125_v9  ;;  %5515 = vmatprep.subr.bf16.mxu1 %v6081_v39 }
 0xd00   :  { %3636 = vmatprep.mubr.f32.mxu0 %v5952_v0  ;;  %3707 = vmatprep.mubr.f32.mxu1 %v5952_v0 }
 0xd02   :  { %5485 = vmatpush1.bf16.msra.mxu0 %v6137_v18  ;;  %5517 = vmatpush1.bf16.msra.mxu1 %v6092_v47 }
 0xd03   :  { %5487 = vmatprep.subr.bf16.mxu0 %v6140_v21  ;;  %5519 = vmatprep.subr.bf16.mxu1 %v6096_v48 }
 0xd06   :  { %5489 = vmatpush1.bf16.msra.mxu0 %v6151_v31  ;;  %5521 = vmatpush1.bf16.msra.mxu1 %v6105_v55 }
 0xd07   :  { %5491 = vmatprep.subr.bf16.mxu0 %v6155_v34  ;;  %5523 = vmatprep.subr.bf16.mxu1 %v6109_v56 }
 0xd0a   :  { %5493 = vmatpush1.bf16.msra.mxu0 %v6164_v45  ;;  %5525 = vmatpush1.bf16.msra.mxu1 %v6115_v2 }
 0xd0b   :  { %5495 = vmatprep.subr.bf16.mxu0 %v6167_v46  ;;  %5527 = vmatprep.subr.bf16.mxu1 %v6120_v3 }
 0xd0e   :  { %5497 = vmatpush1.bf16.msra.mxu0 %v6174_v57  ;;  %5529 = vmatpush1.bf16.msra.mxu1 %v6128_v14  ;;  %v3366_v14 = vld [vmem:[#allocation2 + $0x24] ss:$8 sm:$0xf] }
 0xd0f   :  { %5499 = vmatprep.subr.bf16.mxu0 %v6177_v58  ;;  %5531 = vmatprep.subr.bf16.mxu1 %v6133_v15 }
 0xd12   :  { %5501 = vmatpush1.bf16.msra.mxu0 %v6182_v63  ;;  %5533 = vmatpush1.bf16.msra.mxu1 %v6143_v26 }
 0xd13   :  { %5503 = vmatprep.subr.bf16.mxu0 %v6185_v1  ;;  %5535 = vmatprep.subr.bf16.mxu1 %v6148_v27 }
 0xd16   :  { %5505 = vmatpush1.bf16.msra.mxu0 %v6192_v10  ;;  %5537 = vmatpush1.bf16.msra.mxu1 %v6158_v41 }
 0xd17   :  { %5507 = vmatprep.subr.bf16.mxu0 %v6195_v11  ;;  %5539 = vmatprep.subr.bf16.mxu1 %v6161_v42 }
 0xd1a   :  { %5509 = vmatpush1.bf16.msra.mxu0 %v6200_v16  ;;  %5541 = vmatpush1.bf16.msra.mxu1 %v6170_v53 }
 0xd1b   :  { %4521 = vmatprep.subr.mxu0 %v5952_v0  ;;  %5542 = vmatprep.subr.bf16.mxu1 %v5955_v59 }
 0xdd0   :  { %v3433_v37 = vpop.f32.mrb[32].mxu0  ;;  %v3504_v39 = vpop.f32.mrb[28].mxu1 }
 0xdd1   :  { %v3435_v47 = vpop.f32.mrb[33].mxu0  ;;  %v3506_v48 = vpop.f32.mrb[29].mxu1 }
 0xdd2   :  { %v3513_v55 = vcombine.low %v3433_v37, %v3435_v47  ;;  %v3514_v56 = vcombine.low %v3504_v39, %v3506_v48  ;;  %v5564_v37 = vpack.c.bf16 %v3791_v43, %v3790_v29  ;;  %v4021_v39 = vld [vmem:[%s6812_s1 + $0x2] sm:$0x1]  ;;  %v4101_v47 = vld [vmem:[#allocation6 + $0x98] sm:$0xf]  ;;  %v4182_v48 = vld [vmem:[#allocation6 + $0xa8] sm:$0xff] }
 0xdd4   :  { %v3521_v2 = vrot.slane %v3513_v55, %v6235_v36  ;;  %v3528_v3 = vrot.slane %v3514_v56, %v6235_v36  ;;  %v4183_v55 = vld [vmem:[#allocation6 + $0xb0] sm:$0xff]  ;;  %v4100_v56 = vld [vmem:[%s6812_s1 + $0x3] sm:$0x1]  ;;  %s5957_s1 = smov [#allocation8]  }
 0xdd5   :  { %s4364_s12 = sshll.u32 %s5957_s1, 4  ;;  %s4365_s12 = int_to_ptr.vmem [resolvable:$true] %s4364_s12 }
 0xdd6   :  { %v3529_v6 = vcombine.low %v3521_v2, %v3528_v3  ;;  %v5567_v2 = vpack.c.bf16 %v4183_v55, %v4182_v48  ;;  %v4184_v3 = vld [vmem:[#allocation6 + $0xb8] sm:$0xff]  ;;  %s5918_s2 = scalar_lea.vmem %s4365_s12, 16  ;;  %s5922_s13 = scalar_lea.vmem %s4365_s12, 32 }
 0xdd7   :  { %p5919_p2 = scmp.ne.s32.totalorder %s4365_s12, %s5918_s2  ;;  %p5923_p3 = scmp.lt.s32.totalorder %s4365_s12, %s4365_s12 }
 0xdd8   :  { %v3536_v9 = vrot.slane %v3529_v6, %v6235_v36  ;;  %v4185_v6 = vld [vmem:[#allocation6 + $0xc0] sm:$0xff]  ;;  %p5924_p4 = scmp.lt.s32.totalorder %s5922_s13, %s5918_s2 }
 0xdda   :  { %v3538_v15 = vadd.f32 %v3536_v9, %v3366_v14  ;;  %v5570_v9 = vpack.c.bf16 %v4185_v6, %v4184_v3  ;;  %v4186_v14 = vld [vmem:[#allocation6 + $0xc8] sm:$0xff]  ;;  %v4270_v3 = vld [vmem:[#allocation6 + $0x130] sm:$0xff]  ;;  %v4271_v6 = vld [vmem:[#allocation6 + $0x138] sm:$0xff]  ;;  %p5925_p5 = por %p5924_p4, %p5923_p3 }
 0xddc   :  { %v4448_v18 = vmul.f32 -1.442695, %v3538_v15  ;;  %v3546_v21 = vrot.slane %v3538_v15, 1  ;;  %v3557_v27 = vrot.slane %v3538_v15, 3  ;;  %v3554_v41 = vrot.slane %v3538_v15, 2  ;;  %v4187_v15 = vld [vmem:[#allocation6 + $0xd0] sm:$0xff]  ;;  %p5926_p6 = pnand %p5925_p5, %p5919_p2 }
 0xdde   :  { %5842 = vpow2.f32 %v4448_v18  ;;  %v4449_v26 = vmul.f32 -1.442695, %v3546_v21  ;;  %v4450_v31 = vmul.f32 -1.442695, %v3557_v27  ;;  %v5573_v18 = vpack.c.bf16 %v4187_v15, %v4186_v14  ;;  %v4188_v21 = vld [vmem:[#allocation6 + $0xd8] sm:$0xff]  ;;  %v4273_v15 = vld [vmem:[#allocation6 + $0x148] sm:$0xff] }
 0xddf   :  { %v5591_v14 = vpack.c.bf16 %v4271_v6, %v4270_v3 }
 0xde0   :  { %5844 = vpow2.f32 %v4449_v26  ;;  %v4189_v26 = vld [vmem:[#allocation6 + $0xe0] sm:$0xff] }
 0xde1   :  { %5846 = vpow2.f32 %v4450_v31  ;;  %v5576_v27 = vpack.c.bf16 %v4189_v26, %v4188_v21  ;;  %v4190_v31 = vld [vmem:[#allocation6 + $0xe8] sm:$0xff]  ;;  %v4274_v21 = vld [vmem:[#allocation6 + $0x150] sm:$0xff]  ;;  %v4275_v26 = vld [vmem:[#allocation6 + $0x158] sm:$0xff] }
 0xde8   :  { %v5843_v34 = vpop.eup %5842 }
 0xde9   :  { %v3542_v42 = vadd.f32 1.0, %v5843_v34  ;;  %v4191_v34 = vld [vmem:[#allocation6 + $0xf0] sm:$0xff] }
 0xdea   :  { %v5845_v45 = vpop.eup %5844 }
 0xdeb   :  { %5848 = vrcp.f32 %v3542_v42  ;;  %v3551_v46 = vadd.f32 1.0, %v5845_v45  ;;  %v5847_v53 = vpop.eup %5846 }
 0xdec   :  { %5850 = vtanh.f32 %v3554_v41  ;;  %v3562_v1 = vadd.f32 1.0, %v5847_v53  ;;  %v5579_v41 = vpack.c.bf16 %v4191_v34, %v4190_v31  ;;  %v4276_v31 = vld [vmem:[#allocation6 + $0x160] sm:$0xff]  ;;  %v4277_v34 = vld [vmem:[#allocation6 + $0x168] sm:$0xff] }
 0xded   :  { %5852 = vrcp.f32 %v3551_v46 }
 0xdee   :  { %5854 = vrcp.f32 %v3562_v1 }
 0xdf5   :  { %v5849_v57 = vpop.eup %5848 }
 0xdf6   :  { %v5851_v58 = vpop.eup %5850 }
 0xdf7   :  { %v5853_v63 = vpop.eup %5852  ;;  %v3566_v11 = vmul.f32 %v5851_v58, %v5849_v57 }
 0xdf8   :  { %v3565_v10 = vmul.f32 %v5853_v63, %v6691_v38  ;;  %v5855_v30 = vpop.eup %5854  ;;  %v3789_v38 = vld [vmem:[#allocation6 + $0x68] sm:$0xff] }
 0xdf9   :  { %v5561_v40 = vpack.c.bf16 %v3789_v38, %v3788_v35  ;;  %v4192_v38 = vld [vmem:[#allocation6 + $0xf8] sm:$0xff] }
 0xdfa   :  { %v6731_v16 = vadd.f32 %v3566_v11, %v3565_v10 }
 0xdfc   :  { %5856 = vtanh.f32 %v6731_v16 }
 0xe06   :  { %v5857_v44 = vpop.eup %5856 }
 0xe07   :  { %v3569_v49 = vmul.f32 %v5857_v44, %v5855_v30  ;;  %v3571_v30 = vld [vmem:[#allocation2 + $0x25] ss:$8 sm:$0xf] }
 0xe09   :  { %3637 = vmatmul.mubr.f32.vlgmr.msra.gmra.mrb[34].mxu0 %v3569_v49  ;;  %3708 = vmatmul.mubr.f32.vlgmr.msra.gmra.mrb[30].mxu1 %v3569_v49 }
 0xe0a   :  { %5544 = vmatpush3.bf16.msra.mxu1 %v5543_v52  ;;  %4523 = vmatprep.mubr.msk.f32.mxu0 %vm5956_vm2, %v5952_v0 }
 0xe0b   :  { %5545 = vmatprep.subr.bf16.mxu1 %v5955_v59  ;;  %4558 = vmatprep.mubr.msk.f32.mxu1 %vm5956_vm2, %v5952_v0 }
 0xe0c   :  { %4522 = vmatpush3.msk.msra.mxu0 %vm3798_vm0, %v3793_v5 }
 0xe0d   :  { %4524 = vmatmul.mubr.msk.f32.vlgmr.msra.gmra.mrb[36].mxu0 %vm3794_vm3, %v3792_v54  ;;  %4561 = vmatprep.subr.mxu0 %v5952_v0 }
 0xe0e   :  { %5547 = vmatpush3.bf16.msra.mxu1 %v5546_v62  ;;  %4562 = vmatpush3.msk.msra.mxu0 %vm3798_vm0, %v3943_v28 }
 0xe0f   :  { %5548 = vmatprep.subr.bf16.mxu1 %v5955_v59  ;;  %4563 = vmatprep.mubr.msk.f32.mxu0 %vm5956_vm2, %v5952_v0 }
 0xe10   :  { %4566 = vmatprep.subr.mxu0 %v5952_v0 }
 0xe11   :  { %4564 = vmatmul.mubr.msk.f32.vlgmr.msra.gmra.mrb[38].mxu0 %vm3794_vm3, %v3942_v13 }
 0xe12   :  { %5550 = vmatpush3.bf16.msra.mxu1 %v5549_v7  ;;  %4567 = vmatpush3.msk.msra.mxu0 %vm3798_vm0, %v4022_v17 }
 0xe13   :  { %5551 = vmatprep.subr.bf16.mxu1 %v5955_v59  ;;  %4568 = vmatprep.mubr.msk.f32.mxu0 %vm5956_vm2, %v5952_v0 }
 0xe14   :  { %4571 = vmatprep.subr.mxu0 %v5952_v0 }
 0xe15   :  { %4569 = vmatmul.mubr.msk.f32.vlgmr.msra.gmra.mrb[40].mxu0 %vm3794_vm3, %v4021_v39  ;;  %v4194_v39 = vld [vmem:[#allocation6 + $0x108] sm:$0xff] }
 0xe16   :  { %5553 = vmatpush3.bf16.msra.mxu1 %v5552_v19  ;;  %4572 = vmatpush3.msk.msra.mxu0 %vm3798_vm0, %v4101_v47  ;;  %v4195_v47 = vld [vmem:[#allocation6 + $0x110] sm:$0xff] }
 0xe17   :  { %5554 = vmatprep.subr.bf16.mxu1 %v5955_v59  ;;  %4573 = vmatprep.mubr.msk.f32.mxu0 %vm5956_vm2, %v5952_v0  ;;  %v5585_v55 = vpack.c.bf16 %v4195_v47, %v4194_v39 }
 0xe18   :  { %5566 = vmatprep.subr.bf16.mxu0 %v5955_v59 }
 0xe19   :  { %4574 = vmatmul.mubr.msk.f32.vlgmr.msra.gmra.mrb[42].mxu0 %vm3794_vm3, %v4100_v56  ;;  %v4197_v56 = vld [vmem:[#allocation6 + $0x120] sm:$0xff] }
 0xe1a   :  { %5556 = vmatpush3.bf16.msra.mxu1 %v5555_v24  ;;  %5568 = vmatpush3.bf16.msra.mxu0 %v5567_v2 }
 0xe1b   :  { %5557 = vmatprep.subr.bf16.mxu1 %v5955_v59  ;;  %4608 = vmatprep.mubr.msk.f32.mxu0 %vm5956_vm2, %v5952_v0 }
 0xe1c   :  { %5569 = vmatprep.subr.bf16.mxu0 %v5955_v59 }
 0xe1e   :  { %5559 = vmatpush3.bf16.msra.mxu1 %v5558_v33  ;;  %5571 = vmatpush3.bf16.msra.mxu0 %v5570_v9  ;;  %v4272_v9 = vld [vmem:[#allocation6 + $0x140] sm:$0xff] }
 0xe1f   :  { %5560 = vmatprep.subr.bf16.mxu1 %v5955_v59  ;;  %5572 = vmatprep.subr.bf16.mxu0 %v5955_v59 }
 0xe22   :  { %5562 = vmatpush3.bf16.msra.mxu1 %v5561_v40  ;;  %5574 = vmatpush3.bf16.msra.mxu0 %v5573_v18  ;;  %v4193_v40 = vld [vmem:[#allocation6 + $0x100] sm:$0xff]  ;;  %v5594_v18 = vpack.c.bf16 %v4273_v15, %v4272_v9 }
 0xe23   :  { %5563 = vmatprep.subr.bf16.mxu1 %v5955_v59  ;;  %5575 = vmatprep.subr.bf16.mxu0 %v5955_v59  ;;  %v5582_v29 = vpack.c.bf16 %v4193_v40, %v4192_v38 }
 0xe26   :  { %5565 = vmatpush3.bf16.msra.mxu1 %v5564_v37  ;;  %5577 = vmatpush3.bf16.msra.mxu0 %v5576_v27  ;;  %v5597_v27 = vpack.c.bf16 %v4275_v26, %v4274_v21 }
 0xe27   :  { %5590 = vmatprep.subr.bf16.mxu1 %v5955_v59  ;;  %5578 = vmatprep.subr.bf16.mxu0 %v5955_v59 }
 0xe2a   :  { %5580 = vmatpush3.bf16.msra.mxu0 %v5579_v41  ;;  %v5600_v41 = vpack.c.bf16 %v4277_v34, %v4276_v31 }
 0xe2b   :  { %5581 = vmatprep.subr.bf16.mxu0 %v5955_v59 }
 0xe2e   :  { %5583 = vmatpush3.bf16.msra.mxu0 %v5582_v29 }
 0xe2f   :  { %5584 = vmatprep.subr.bf16.mxu0 %v5955_v59 }
 0xe32   :  { %5586 = vmatpush3.bf16.msra.mxu0 %v5585_v55 }
 0xe33   :  { %5587 = vmatprep.subr.bf16.mxu0 %v5955_v59 }
 0xedc   :  { %v3638_v42 = vpop.f32.mrb[34].mxu0  ;;  %v3709_v45 = vpop.f32.mrb[30].mxu1 }
 0xedd   :  { %v3640_v46 = vpop.f32.mrb[35].mxu0  ;;  %v3711_v53 = vpop.f32.mrb[31].mxu1 }
 0xede   :  { %v3718_v57 = vcombine.low %v3638_v42, %v3640_v46  ;;  %v3719_v58 = vcombine.low %v3709_v45, %v3711_v53  ;;  %v4278_v42 = vld [vmem:[#allocation6 + $0x170] sm:$0xff]  ;;  %v4279_v45 = vld [vmem:[#allocation6 + $0x178] sm:$0xff]  ;;  %v4280_v53 = vld [vmem:[#allocation6 + $0x180] sm:$0xff] }
 0xedf   :  { %v5603_v46 = vpack.c.bf16 %v4279_v45, %v4278_v42 }
 0xee0   :  { %v3726_v63 = vrot.slane %v3718_v57, %v6235_v36  ;;  %v3733_v1 = vrot.slane %v3719_v58, %v6235_v36  ;;  %v3868_v25 = vpop.f32.mrb[36].mxu0  ;;  %v4281_v57 = vld [vmem:[#allocation6 + $0x188] sm:$0xff] }
 0xee1   :  { %v4525_v32 = vpop.f32.mrb[37].mxu0  ;;  %v5606_v58 = vpack.c.bf16 %v4281_v57, %v4280_v53 }
 0xee2   :  { %v3734_v10 = vcombine.low %v3726_v63, %v3733_v1  ;;  %v4282_v63 = vld [vmem:[#allocation6 + $0x190] sm:$0xff]  ;;  %v4283_v1 = vld [vmem:[#allocation6 + $0x198] sm:$0xff] }
 0xee4   :  { %v3741_v11 = vrot.slane %v3734_v10, %v6235_v36  ;;  %v4016_v33 = vpop.f32.mrb[38].mxu0  ;;  %v5609_v10 = vpack.c.bf16 %v4283_v1, %v4282_v63 }
 0xee5   :  { %v4565_v35 = vpop.f32.mrb[39].mxu0 }
 0xee6   :  { %v3743_v44 = vadd.f32 %v3741_v11, %v3571_v30 }
 0xee8   :  { %v4451_v49 = vmul.f32 -1.442695, %v3743_v44  ;;  %v3751_v50 = vrot.slane %v3743_v44, 1  ;;  %v3762_v52 = vrot.slane %v3743_v44, 3  ;;  %v3759_v62 = vrot.slane %v3743_v44, 2 }
 0xeea   :  { %5858 = vpow2.f32 %v4451_v49  ;;  %v4452_v51 = vmul.f32 -1.442695, %v3751_v50  ;;  %v4453_v60 = vmul.f32 -1.442695, %v3762_v52 }
 0xeec   :  { %5860 = vpow2.f32 %v4452_v51  ;;  %v4179_v51 = vld [vmem:[#allocation6 + $0xa0] sm:$0x1] }
 0xeed   :  { %5862 = vpow2.f32 %v4453_v60 }
 0xef4   :  { %v5859_v61 = vpop.eup %5858 }
 0xef5   :  { %v3747_v20 = vadd.f32 1.0, %v5859_v61 }
 0xef6   :  { %v5861_v4 = vpop.eup %5860 }
 0xef7   :  { %5864 = vrcp.f32 %v3747_v20  ;;  %v3756_v5 = vadd.f32 1.0, %v5861_v4  ;;  %v5863_v54 = vpop.eup %5862  ;;  %v4285_v20 = vld [vmem:[#allocation6 + $0x1a8] sm:$0xff] }
 0xef8   :  { %5866 = vtanh.f32 %v3759_v62  ;;  %v3767_v8 = vadd.f32 1.0, %v5863_v54  ;;  %v4284_v62 = vld [vmem:[#allocation6 + $0x1a0] sm:$0xff] }
 0xef9   :  { %5868 = vrcp.f32 %v3756_v5  ;;  %v5612_v4 = vpack.c.bf16 %v4285_v20, %v4284_v62  ;;  %v4198_v5 = vld [vmem:[#allocation6 + $0x128] sm:$0x1] }
 0xefa   :  { %5870 = vrcp.f32 %v3767_v8 }
 0xf01   :  { %v5865_v36 = vpop.eup %5864 }
 0xf02   :  { %v5867_v28 = vpop.eup %5866 }
 0xf03   :  { %v5869_v7 = vpop.eup %5868  ;;  %v3771_v13 = vmul.f32 %v5867_v28, %v5865_v36 }
 0xf04   :  { %v3770_v12 = vmul.f32 %v5869_v7, %v6731_v16  ;;  %v5871_v19 = vpop.eup %5870  ;;  %v4095_v16 = vpop.f32.mrb[40].mxu0 }
 0xf05   :  { %v4570_v43 = vpop.f32.mrb[41].mxu0 }
 0xf06   :  { %v3772_v17 = vadd.f32 %v3771_v13, %v3770_v12  ;;  %v4174_v37 = vpop.f32.mrb[42].mxu0 }
 0xf07   :  { %v4575_v48 = vpop.f32.mrb[43].mxu0 }
 0xf08   :  { %5872 = vtanh.f32 %v3772_v17 }
 0xf12   :  { %v5873_v22 = vpop.eup %5872 }
 0xf13   :  { %v3774_v23 = vmul.f32 %v5873_v22, %v5871_v19 }
 0xf15   :  { %v3775_v24 = vmax.f32 %v3774_v23, 0.0 }
 0xf17   :  { %4559 = vmatmul.mubr.f32.vlgmr.msra.gmra.mrb[32].mxu1 %v3775_v24 }
 0xf18   :  { %4643 = vmatprep.mubr.msk.f32.mxu1 %vm5956_vm2, %v5952_v0  ;;  %v4196_v0 = vld [vmem:[#allocation6 + $0x118] sm:$0xff]  ;;  %5592 = vmatpush3.bf16.msra.mxu1 %v5591_v14 }
 0xf19   :  { %v5588_v2 = vpack.c.bf16 %v4197_v56, %v4196_v0  ;;  %5593 = vmatprep.subr.bf16.mxu1 %v5955_v59 }
 0xf1b   :  { %5589 = vmatpush3.bf16.msra.mxu0 %v5588_v2 }
 0xf1c   :  { %5595 = vmatpush3.bf16.msra.mxu1 %v5594_v18 }
 0xf1d   :  { %5596 = vmatprep.subr.bf16.mxu1 %v5955_v59 }
 0xf20   :  { %5598 = vmatpush3.bf16.msra.mxu1 %v5597_v27 }
 0xf21   :  { %5599 = vmatprep.subr.bf16.mxu1 %v5955_v59 }
 0xf24   :  { %5601 = vmatpush3.bf16.msra.mxu1 %v5600_v41 }
 0xf25   :  { %5602 = vmatprep.subr.bf16.mxu1 %v5955_v59 }
 0xf28   :  { %5604 = vmatpush3.bf16.msra.mxu1 %v5603_v46 }
 0xf29   :  { %5605 = vmatprep.subr.bf16.mxu1 %v5955_v59 }
 0xf2c   :  { %5607 = vmatpush3.bf16.msra.mxu1 %v5606_v58 }
 0xf2d   :  { %5608 = vmatprep.subr.bf16.mxu1 %v5955_v59 }
 0xf30   :  { %5610 = vmatpush3.bf16.msra.mxu1 %v5609_v10 }
 0xf31   :  { %5611 = vmatprep.subr.bf16.mxu1 %v5955_v59  ;;  %v4286_v59 = vld [vmem:[#allocation6 + $0x1b0] sm:$0x1] }
 0xf34   :  { %5613 = vmatpush3.bf16.msra.mxu1 %v5612_v4 }
 0xfea   :  { %v3938_v11 = vpop.f32.mrb[32].mxu1 }
 0xfeb   :  { %v3939_v30 = vadd.f32 %v3938_v11, %v3868_v25  ;;  %v4560_v44 = vpop.f32.mrb[33].mxu1 }
 0xfed   :  { %v4020_v49 = vadd.f32 %v4016_v33, %v3939_v30 }
 0xfef   :  { %v4099_v50 = vadd.f32 %v4095_v16, %v4020_v49 }
 0xff1   :  { %v4178_v52 = vadd.f32 %v4174_v37, %v4099_v50 }
 0xff3   :  { %v4180_v60 = vadd.f32 %v4179_v51, %v4178_v52 }
 0xff5   :  { %v4181_v61 = vmax.f32 %v4180_v60, 0.0 }
 0xff7   :  { %4609 = vmatmul.mubr.f32.vlgmr.msra.gmra.mrb[44].mxu0 %v4181_v61 }
0x10ca   :  { %v4265_v54 = vpop.f32.mrb[44].mxu0 }
0x10cb   :  { %v4266_v36 = vadd.f32 %v4265_v54, %v4198_v5  ;;  %v4610_v28 = vpop.f32.mrb[45].mxu0 }
0x10cd   :  { %v4269_v7 = vmax.f32 %v4266_v36, 0.0 }
0x10cf   :  { %4644 = vmatmul.mubr.f32.vlgmr.msra.gmra.mrb[34].mxu1 %v4269_v7 }
0x11a2   :  { %v4353_v8 = vpop.f32.mrb[34].mxu1 }
0x11a3   :  { %v4354_v12 = vadd.f32 %v4353_v8, %v4286_v59  ;;  %v4645_v13 = vpop.f32.mrb[35].mxu1 }
0x11a5   :  { %4357 = vst [vmem:[#allocation8] sm:$0x1] %v4354_v12 }
0x11a6   :  { %5929 = shalt.err (!%p5926_p6)
}
0x11a7   :  { %s5930_s3 = scalar_lea.hbm %s6815_s4, 16 }
0x11a8   :  { %p5931_p7 = scmp.ne.s32.totalorder %s6815_s4, %s5930_s3  ;;  %p5934_p8 = scmp.lt.u32.totalorder %s5930_s3, %s6815_s4 }
0x11aa   :  { %p5936_p9 = pnand %p5934_p8, %p5931_p7 }
0x11ac   :  { %5939 = shalt.err (!%p5936_p9)
}
0x11ad   :  { %4367 = dma.vmem_to_hbm [thread:$0]  %s4365_s12, 16, %s6815_s4, [#allocation5]  }
0x11ae   :  { %5944 = dma.done.wait [#allocation5], 16  }
0x11af   :  { %5945 = vsyncadd [#allocation5], 4294967280 }
0x11b0   :  { %4371 = vsyncpa [#allocation4], 1 }
0x11b1   :  { %4372 = vsyncpa [#allocation7], 1 }
0x11b2   :  { %4373 = vsyncpa [#allocation5], 1 }

</bundles_post_ra>
